<compile_context>
chip_gen: v6e
topology: v6e:2x2x1
jax: 0.10.0
libtpu: 0.0.40
codegen_flags: <defaults>
</compile_context>

<pallas_src>
import functools

import jax
import jax.numpy as jnp
from jax.experimental import pallas as pl
from jax.experimental.pallas import tpu as pltpu


# ----------------------------------------------------------------------------
# hardware-budget helpers
# ----------------------------------------------------------------------------
@functools.lru_cache(maxsize=None)
def _vmem_budget_bytes():
    """~3/4 of physical VMEM, capped at 100 MiB.

    v5e/v6e (128 MiB physical) -> 96 MiB; v7x (64 MiB) -> 48 MiB.
    Falls back to a v7x-safe 48 MiB if the query is unavailable.
    """
    cap = 64 * 1024 * 1024
    try:
        info = pltpu.get_tpu_info()
        cap = int(getattr(info, "vmem_capacity_bytes", cap))
    except Exception:
        pass
    return int(min(cap * 3 // 4, 100 * 1024 * 1024))


def _round_up(x, m):
    return ((x + m - 1) // m) * m


def _pick_tile(n, max_tile, align):
    """Largest tile <= max_tile that divides n and is a multiple of `align`,
    falling back to the full dimension (a full-extent block is always legal)."""
    if n <= max_tile:
        return n
    max_tile = (max_tile // align) * align
    for t in range(max_tile, align - 1, -align):
        if n % t == 0:
            return t
    return n


def _pick_time_chunk(T, bytes_per_t, budget, max_chunk=64):
    """Timesteps per sequential grid step: a multiple of 8 dividing T, capped so
    the double-buffered per-chunk blocks stay within ~1/3 of the VMEM budget."""
    cap_t = max(8, budget // (3 * max(bytes_per_t, 1)))
    max_chunk = int(min(max_chunk, cap_t))
    cands = [c for c in range(8, min(T, max_chunk) + 1, 8) if T % c == 0]
    return max(cands) if cands else T


def _pick_batch_block(B_pad):
    """Split the serial recurrence over batch halves (v7x megacore) only when
    each half still keeps full 16-row bf16 sublane packing."""
    if B_pad >= 32 and B_pad % 32 == 0:
        return B_pad // 2
    return B_pad


# ----------------------------------------------------------------------------
# kernel 1: generic parallel matmul + bias (used for the input projection)
# ----------------------------------------------------------------------------
def _matmul_bias_kernel(x_ref, w_ref, b_ref, o_ref):
    o_ref[...] = (
        jnp.dot(x_ref[...], w_ref[...], preferred_element_type=jnp.float32)
        + b_ref[...]
    ).astype(o_ref.dtype)


def _matmul_bias(x_bf16, w_bf16, bias_f32, *, mt_max, nt_max, vmem_limit):
    M, K = x_bf16.shape
    K2, N = w_bf16.shape
    assert K == K2
    Mt = _pick_tile(M, mt_max, 16)    # 16-row alignment: full bf16 sublane packing
    Nt = _pick_tile(N, nt_max, 128)
    return pl.pallas_call(
        _matmul_bias_kernel,
        out_shape=jax.ShapeDtypeStruct((M, N), jnp.float32),
        grid_spec=pltpu.PrefetchScalarGridSpec(
            num_scalar_prefetch=0,
            grid=(M // Mt, N // Nt),
            in_specs=[
                pl.BlockSpec((Mt, K), lambda i, j: (i, 0)),
                pl.BlockSpec((K, Nt), lambda i, j: (0, j)),
                pl.BlockSpec((1, Nt), lambda i, j: (0, j)),
            ],
            out_specs=pl.BlockSpec((Mt, Nt), lambda i, j: (i, j)),
        ),
        compiler_params=pltpu.CompilerParams(
            dimension_semantics=("parallel", "parallel"),
            vmem_limit_bytes=vmem_limit),
    )(x_bf16, w_bf16, bias_f32)


# ----------------------------------------------------------------------------
# kernel 2: sequential LSTM recurrence, chunked over time, batch-block parallel
# ----------------------------------------------------------------------------
def _lstm_chunk_kernel(xp_ref, whh_ref, h_out_ref, h_scr, c_scr, *, tc, hidden):
    """One grid step == `tc` LSTM timesteps for one batch block.

    xp_ref   : (tc, Bb, 4H) f32   precomputed x @ W_ih^T + b   (time-major)
    whh_ref  : (H, 4H)      bf16  hidden->gates weights (pre-transposed)
    h_out_ref: (tc, Bb, H)  bf16  hidden states for this chunk (time-major)
    h_scr/c_scr : (Bb, H) f32 VMEM scratch, persist across time grid steps
    """
    @pl.when(pl.program_id(1) == 0)          # first time-chunk of this batch block
    def _():
        h_scr[...] = jnp.zeros_like(h_scr)
        c_scr[...] = jnp.zeros_like(c_scr)

    # Hoist the weight load out of the unrolled serial loop so only the tiny
    # (Bb, H) LHS push is on the per-step critical path.
    whh = whh_ref[...]

    def step(i, carry):
        h_prev = h_scr[...]
        c_prev = c_scr[...]
        # Only the recurrent matmul stays in the serial loop (bf16 MXU, f32 acc).
        gates = xp_ref[i] + jnp.dot(
            h_prev.astype(jnp.bfloat16), whh,
            preferred_element_type=jnp.float32)                   # (Bb, 4H) f32
        # PyTorch LSTM gate order: i, f, g, o (lane-aligned slices, f32 math).
        i_g = jax.nn.sigmoid(gates[:, 0 * hidden:1 * hidden])
        f_g = jax.nn.sigmoid(gates[:, 1 * hidden:2 * hidden])
        g_g = jnp.tanh(gates[:, 2 * hidden:3 * hidden])
        o_g = jax.nn.sigmoid(gates[:, 3 * hidden:4 * hidden])
        c_new = f_g * c_prev + i_g * g_g
        h_new = o_g * jnp.tanh(c_new)
        h_scr[...] = h_new
        c_scr[...] = c_new
        h_out_ref[i] = h_new.astype(h_out_ref.dtype)              # bf16 store
        return carry

    jax.lax.fori_loop(0, tc, step, 0, unroll=True)


def _lstm_recurrence(x_proj_tb4h, w_hh_t_bf16, *, tc, bblk, vmem_limit):
    T, B, H4 = x_proj_tb4h.shape
    H = H4 // 4
    nb = B // bblk
    kernel = functools.partial(_lstm_chunk_kernel, tc=tc, hidden=H)
    return pl.pallas_call(
        kernel,
        out_shape=jax.ShapeDtypeStruct((T, B, H), jnp.bfloat16),
        grid_spec=pltpu.PrefetchScalarGridSpec(
            num_scalar_prefetch=0,
            grid=(nb, T // tc),
            in_specs=[
                pl.BlockSpec((tc, bblk, H4), lambda b, t: (t, b, 0)),
                pl.BlockSpec((H, H4), lambda b, t: (0, 0)),
            ],
            out_specs=pl.BlockSpec((tc, bblk, H), lambda b, t: (t, b, 0)),
            scratch_shapes=[
                pltpu.VMEM((bblk, H), jnp.float32),   # h (f32 recurrent state)
                pltpu.VMEM((bblk, H), jnp.float32),   # c
            ],
        ),
        compiler_params=pltpu.CompilerParams(
            # batch blocks are independent (megacore on v7x); time must be serial
            dimension_semantics=("parallel", "arbitrary"),
            vmem_limit_bytes=vmem_limit),
    )(x_proj_tb4h, w_hh_t_bf16)


# ----------------------------------------------------------------------------
# kernel 3: parallel output projection, written batch-first directly
# ----------------------------------------------------------------------------
def _logits_kernel(h_ref, w_ref, b_ref, o_ref, *, tc, batch):
    H = h_ref.shape[-1]
    Vt = w_ref.shape[-1]
    h = h_ref[...].reshape(tc * batch, H)                 # already bf16
    p = jnp.dot(h, w_ref[...], preferred_element_type=jnp.float32) + b_ref[...]
    # (tc*B, Vt) time-major rows -> (B, tc, Vt) batch-first block, in VMEM, so
    # the big logits array needs no extra HBM transpose pass in the wrapper.
    p3 = p.reshape(tc, batch, Vt)
    o_ref[...] = pltpu.einshape("tbv->btv", p3).astype(o_ref.dtype)


def _output_projection(h_seq_tbh, w_lin_t_bf16, b_lin_f32, *, tc, vt_max,
                       vmem_limit, out_dtype=jnp.float32):
    T, B, H = h_seq_tbh.shape
    H2, V = w_lin_t_bf16.shape
    assert H == H2
    Vt = _pick_tile(V, vt_max, 128)
    kernel = functools.partial(_logits_kernel, tc=tc, batch=B)
    # Vocab axis OUTER, time axis INNER: each W_lin tile is DMA'd from HBM once
    # and stays resident while the (much smaller) h_seq chunks stream past.
    return pl.pallas_call(
        kernel,
        out_shape=jax.ShapeDtypeStruct((B, T, V), out_dtype),
        grid_spec=pltpu.PrefetchScalarGridSpec(
            num_scalar_prefetch=0,
            grid=(V // Vt, T // tc),
            in_specs=[
                pl.BlockSpec((tc, B, H), lambda v, t: (t, 0, 0)),
                pl.BlockSpec((H, Vt), lambda v, t: (0, v)),
                pl.BlockSpec((1, Vt), lambda v, t: (0, v)),
            ],
            out_specs=pl.BlockSpec((B, tc, Vt), lambda v, t: (0, t, v)),
        ),
        compiler_params=pltpu.CompilerParams(
            dimension_semantics=("parallel", "parallel"),
            vmem_limit_bytes=vmem_limit),
    )(h_seq_tbh, w_lin_t_bf16, b_lin_f32)


# ----------------------------------------------------------------------------
# full decoder forward
# ----------------------------------------------------------------------------
def decoder_lstm_pallas(inputs_bte, w_ih, w_hh, b_ih, b_hh, w_lin, b_lin,
                        logits_dtype=jnp.float32):
    """inputs_bte: (B, T, E) batch_first float32.  Returns (B, T, V) logits."""
    B, T, E = inputs_bte.shape
    H = w_hh.shape[1]
    V = w_lin.shape[0]

    # Lane-aligned gate slices (4 free vreg views per step instead of 4 XLU
    # lane rotations on the serial critical path).
    assert H % 128 == 0, f"hidden_size must be a multiple of 128, got {H}"

    # Pad batch to a whole number of 16-row bf16 sublane tiles; padded rows are
    # sliced off at the end.
    B_pad = _round_up(B, 16)
    if B_pad != B:
        inputs_bte = jnp.pad(inputs_bte, ((0, B_pad - B), (0, 0), (0, 0)))

    budget = _vmem_budget_bytes()
    big_tiles = budget >= 64 * 1024 * 1024          # v5e/v6e: wider tiles
    mt_max = nt_max = vt_max = 1024 if big_tiles else 512

    # Per-timestep VMEM cost of one recurrence chunk (double-buffered f32 xp
    # input block + double-buffered bf16 h_out block) -> caps tc on v7x.
    bytes_per_t = B_pad * 4 * H * 4 * 2 + B_pad * H * 2 * 2
    tc = _pick_time_chunk(T, bytes_per_t, budget)
    bblk = _pick_batch_block(B_pad)

    # ---- 1. input projection (hoisted out of the recurrence, bias folded in) ----
    x_tbe = jnp.transpose(inputs_bte, (1, 0, 2))                      # (T, Bp, E)
    wih_t = jnp.transpose(w_ih).astype(jnp.bfloat16)                  # (E, 4H)
    bias = (b_ih + b_hh).reshape(1, 4 * H).astype(jnp.float32)        # (1, 4H)
    x_proj = _matmul_bias(
        x_tbe.reshape(T * B_pad, E).astype(jnp.bfloat16), wih_t, bias,
        mt_max=mt_max, nt_max=nt_max, vmem_limit=budget,
    ).reshape(T, B_pad, 4 * H)                                        # (T, Bp, 4H) f32

    # ---- 2. sequential LSTM recurrence (only h @ W_hh stays in the loop) ----
    whh_t = jnp.transpose(w_hh).astype(jnp.bfloat16)                  # (H, 4H)
    h_seq = _lstm_recurrence(x_proj, whh_t, tc=tc, bblk=bblk,
                             vmem_limit=budget)                       # (T, Bp, H) bf16

    # ---- 3. output projection, big parallel matmul, batch-first output ----
    wlin_t = jnp.transpose(w_lin).astype(jnp.bfloat16)                # (H, V)
    blin = b_lin.reshape(1, V).astype(jnp.float32)                    # (1, V)
    logits = _output_projection(h_seq, wlin_t, blin, tc=tc, vt_max=vt_max,
                                vmem_limit=budget,
                                out_dtype=logits_dtype)               # (Bp, T, V)

    return logits[:B]


@jax.jit
def decoder_rnn_forward(features, captions, params):
    """Mirrors DecoderRNN.forward.

    features: (B, E) float32   — pre-processed image features
    captions: (B, L) int32     — token ids
    returns : (B, L, V) float32 logits  (seq len = 1 + (L-1) = L)
    """
    emb = jnp.take(params["embedding"], captions[:, :-1], axis=0)     # (B, L-1, E)
    inputs = jnp.concatenate([features[:, None, :], emb], axis=1)     # (B, L, E)
    return decoder_lstm_pallas(inputs,
                               params["w_ih"], params["w_hh"],
                               params["b_ih"], params["b_hh"],
                               params["w_lin"], params["b_lin"])


def init_params(key, embed_size, hidden_size, vocab_size):
    ks = jax.random.split(key, 7)
    s = 0.1
    return {
        "embedding": s * jax.random.normal(ks[0], (vocab_size, embed_size), jnp.float32),
        "w_ih": s * jax.random.normal(ks[1], (4 * hidden_size, embed_size), jnp.float32),
        "w_hh": s * jax.random.normal(ks[2], (4 * hidden_size, hidden_size), jnp.float32),
        "b_ih": s * jax.random.normal(ks[3], (4 * hidden_size,), jnp.float32),
        "b_hh": s * jax.random.normal(ks[4], (4 * hidden_size,), jnp.float32),
        "w_lin": s * jax.random.normal(ks[5], (vocab_size, hidden_size), jnp.float32),
        "b_lin": s * jax.random.normal(ks[6], (vocab_size,), jnp.float32),
    }


def _reference_forward(features, captions, params):
    """Pure-JAX f32 reference (lax.scan LSTM) for correctness checking."""
    emb = jnp.take(params["embedding"], captions[:, :-1], axis=0)
    inputs = jnp.concatenate([features[:, None, :], emb], axis=1)     # (B, T, E)
    B, T, E = inputs.shape
    H = params["w_hh"].shape[1]
    b = params["b_ih"] + params["b_hh"]

    def step(carry, x_t):
        h, c = carry
        gates = x_t @ params["w_ih"].T + h @ params["w_hh"].T + b
        i = jax.nn.sigmoid(gates[:, 0 * H:1 * H])
        f = jax.nn.sigmoid(gates[:, 1 * H:2 * H])
        g = jnp.tanh(gates[:, 2 * H:3 * H])
        o = jax.nn.sigmoid(gates[:, 3 * H:4 * H])
        c = f * c + i * g
        h = o * jnp.tanh(c)
        return (h, c), h

    h0 = jnp.zeros((B, H), jnp.float32)
    (_, _), hs = jax.lax.scan(step, (h0, h0), jnp.transpose(inputs, (1, 0, 2)))
    out = jnp.transpose(hs, (1, 0, 2))                                 # (B, T, H)
    return out @ params["w_lin"].T + params["b_lin"]


if __name__ == "__main__":
    B, E, H, V, L = 2, 128, 128, 512, 8
    key = jax.random.PRNGKey(0)
    k_par, k_feat, k_cap = jax.random.split(key, 3)

    params = init_params(k_par, E, H, V)
    features = jax.random.normal(k_feat, (B, E), jnp.float32)
    captions = jax.random.randint(k_cap, (B, L), 0, V, dtype=jnp.int32)

    logits = decoder_rnn_forward(features, captions, params)
    logits = jax.block_until_ready(logits)

    ref = _reference_forward(features, captions, params)
    assert logits.shape == (B, L, V), logits.shape
    # bf16 matmul operands / bf16 h_seq (f32 accumulation) => loosened tolerance.
    max_err = float(jnp.max(jnp.abs(logits - ref)))
    assert jnp.allclose(logits, ref, atol=5e-2, rtol=5e-2), max_err

    print("KERNEL_OK")
</pallas_src>

<mosaic_0001>
module attributes {stable_mosaic.version = 11 : i64} {
  func.func @_matmul_bias_kernel(%arg0: i32, %arg1: i32, %arg2: memref<128x128xbf16, #tpu.memory_space<vmem>>, %arg3: memref<128x512xbf16, #tpu.memory_space<vmem>>, %arg4: memref<1x512xf32, #tpu.memory_space<vmem>>, %arg5: memref<128x512xf32, #tpu.memory_space<vmem>>) attributes {dimension_semantics = [#tpu.dimension_semantics<parallel>, #tpu.dimension_semantics<parallel>], iteration_bounds = array<i64: 1, 1>, scalar_prefetch = 0 : i64, scratch_operands = 0 : i64, tpu.core_type = #tpu.core_type<tc>, window_params = [{transform_indices = @transform_0, window_bounds = array<i64: 128, 128>}, {transform_indices = @transform_1, window_bounds = array<i64: 128, 512>}, {transform_indices = @transform_2, window_bounds = array<i64: 1, 512>}, {transform_indices = @transform_3, window_bounds = array<i64: 128, 512>}]} {
    %c0 = arith.constant 0 : index
    %c0_0 = arith.constant 0 : index
    %0 = vector.load %arg2[%c0, %c0_0] : memref<128x128xbf16, #tpu.memory_space<vmem>>, vector<128x128xbf16>
    %c0_1 = arith.constant 0 : index
    %c0_2 = arith.constant 0 : index
    %1 = vector.load %arg3[%c0_1, %c0_2] : memref<128x512xbf16, #tpu.memory_space<vmem>>, vector<128x512xbf16>
    %cst = arith.constant dense<0.000000e+00> : vector<128x512xf32>
    %2 = tpu.matmul %0, %1, %cst {dimension_numbers = #tpu.dot_dimension_numbers<[1], [0], [0], [1], [0, 0, 1, 1], [], []>} : vector<128x128xbf16>, vector<128x512xbf16>, vector<128x512xf32> -> vector<128x512xf32>
    %c0_3 = arith.constant 0 : index
    %c0_4 = arith.constant 0 : index
    %3 = vector.load %arg4[%c0_3, %c0_4] : memref<1x512xf32, #tpu.memory_space<vmem>>, vector<1x512xf32>
    %4 = vector.broadcast %3 : vector<1x512xf32> to vector<128x512xf32>
    %5 = arith.addf %2, %4 : vector<128x512xf32>
    %c0_5 = arith.constant 0 : index
    %c0_6 = arith.constant 0 : index
    %6 = vector.load %arg5[%c0_5, %c0_6] : memref<128x512xf32, #tpu.memory_space<vmem>>, vector<128x512xf32>
    tpu.vector_store %arg5[%c0_5, %c0_6], %5 {strides = array<i32>} : memref<128x512xf32, #tpu.memory_space<vmem>>, vector<128x512xf32>,
    return
  }
  func.func @transform_0(%arg0: i32, %arg1: i32) -> (i32, i32) {
    %c0_i32 = arith.constant 0 : i32
    %c0_i32_0 = arith.constant 0 : i32
    return %arg0, %c0_i32 : i32, i32
  }
  func.func @transform_1(%arg0: i32, %arg1: i32) -> (i32, i32) {
    %c0_i32 = arith.constant 0 : i32
    %c0_i32_0 = arith.constant 0 : i32
    return %c0_i32, %arg1 : i32, i32
  }
  func.func @transform_2(%arg0: i32, %arg1: i32) -> (i32, i32) {
    %c0_i32 = arith.constant 0 : i32
    %c0_i32_0 = arith.constant 0 : i32
    return %c0_i32, %arg1 : i32, i32
  }
  func.func @transform_3(%arg0: i32, %arg1: i32) -> (i32, i32) {
    %c0_i32 = arith.constant 0 : i32
    return %arg0, %arg1 : i32, i32
  }
}

module attributes {stable_mosaic.version = 11 : i64} {
  func.func @_lstm_chunk_kernel(%arg0: i32, %arg1: i32, %arg2: memref<8x16x512xf32, #tpu.memory_space<vmem>>, %arg3: memref<128x512xbf16, #tpu.memory_space<vmem>>, %arg4: memref<8x16x128xbf16, #tpu.memory_space<vmem>>, %arg5: memref<16x128xf32, #tpu.memory_space<vmem>>, %arg6: memref<16x128xf32, #tpu.memory_space<vmem>>) attributes {dimension_semantics = [#tpu.dimension_semantics<parallel>, #tpu.dimension_semantics<arbitrary>], iteration_bounds = array<i64: 1, 1>, scalar_prefetch = 0 : i64, scratch_operands = 2 : i64, tpu.core_type = #tpu.core_type<tc>, window_params = [{transform_indices = @transform_0, window_bounds = array<i64: 8, 16, 512>}, {pipeline_mode = #tpu.pipeline_mode<synchronous>, transform_indices = @transform_1, window_bounds = array<i64: 128, 512>}, {transform_indices = @transform_2, window_bounds = array<i64: 8, 16, 128>}]} {
    %c0_i32 = arith.constant 0 : i32
    %0 = arith.cmpi eq, %arg1, %c0_i32 : i32
    %1 = arith.extui %0 : i1 to i32
    %c0_i32_0 = arith.constant 0 : i32
    %2 = arith.cmpi ne, %1, %c0_i32_0 : i32
    scf.if %2 {
      %cst_130 = arith.constant 0.000000e+00 : f32
      %324 = vector.broadcast %cst_130 : f32 to vector<16x128xf32>
      %c0_131 = arith.constant 0 : index
      %c0_132 = arith.constant 0 : index
      %325 = vector.load %arg5[%c0_131, %c0_132] : memref<16x128xf32, #tpu.memory_space<vmem>>, vector<16x128xf32>
      tpu.vector_store %arg5[%c0_131, %c0_132], %324 {strides = array<i32>} : memref<16x128xf32, #tpu.memory_space<vmem>>, vector<16x128xf32>,
      %cst_133 = arith.constant 0.000000e+00 : f32
      %326 = vector.broadcast %cst_133 : f32 to vector<16x128xf32>
      %c0_134 = arith.constant 0 : index
      %c0_135 = arith.constant 0 : index
      %327 = vector.load %arg6[%c0_134, %c0_135] : memref<16x128xf32, #tpu.memory_space<vmem>>, vector<16x128xf32>
      tpu.vector_store %arg6[%c0_134, %c0_135], %326 {strides = array<i32>} : memref<16x128xf32, #tpu.memory_space<vmem>>, vector<16x128xf32>,
    } else {
    }
    %c0 = arith.constant 0 : index
    %c0_1 = arith.constant 0 : index
    %3 = vector.load %arg3[%c0, %c0_1] : memref<128x512xbf16, #tpu.memory_space<vmem>>, vector<128x512xbf16>
    %c0_i32_2 = arith.constant 0 : i32
    %c0_3 = arith.constant 0 : index
    %c0_4 = arith.constant 0 : index
    %4 = vector.load %arg5[%c0_3, %c0_4] : memref<16x128xf32, #tpu.memory_space<vmem>>, vector<16x128xf32>
    %c0_5 = arith.constant 0 : index
    %c0_6 = arith.constant 0 : index
    %5 = vector.load %arg6[%c0_5, %c0_6] : memref<16x128xf32, #tpu.memory_space<vmem>>, vector<16x128xf32>
    %6 = arith.index_cast %c0_i32_2 : i32 to index
    %c0_7 = arith.constant 0 : index
    %c0_8 = arith.constant 0 : index
    %7 = vector.load %arg2[%6, %c0_7, %c0_8] : memref<8x16x512xf32, #tpu.memory_space<vmem>>, vector<1x16x512xf32>
    %8 = vector.shape_cast %7 : vector<1x16x512xf32> to vector<16x512xf32>
    %9 = arith.truncf %4 : vector<16x128xf32> to vector<16x128xbf16>
    %cst = arith.constant dense<0.000000e+00> : vector<16x512xf32>
    %10 = tpu.matmul %9, %3, %cst {dimension_numbers = #tpu.dot_dimension_numbers<[1], [0], [0], [1], [0, 0, 1, 1], [], []>} : vector<16x128xbf16>, vector<128x512xbf16>, vector<16x512xf32> -> vector<16x512xf32>
    %11 = arith.addf %8, %10 : vector<16x512xf32>
    %12 = vector.extract_strided_slice %11 {offsets = [0, 0], sizes = [16, 128], strides = [1, 1]} : vector<16x512xf32> to vector<16x128xf32>
    %13 = arith.negf %12 : vector<16x128xf32>
    %14 = math.exp %13 : vector<16x128xf32>
    %cst_9 = arith.constant 1.000000e+00 : f32
    %15 = vector.broadcast %cst_9 : f32 to vector<16x128xf32>
    %16 = arith.addf %15, %14 : vector<16x128xf32>
    %17 = arith.divf %15, %16 : vector<16x128xf32>
    %18 = vector.extract_strided_slice %11 {offsets = [0, 128], sizes = [16, 128], strides = [1, 1]} : vector<16x512xf32> to vector<16x128xf32>
    %19 = arith.negf %18 : vector<16x128xf32>
    %20 = math.exp %19 : vector<16x128xf32>
    %cst_10 = arith.constant 1.000000e+00 : f32
    %21 = vector.broadcast %cst_10 : f32 to vector<16x128xf32>
    %22 = arith.addf %21, %20 : vector<16x128xf32>
    %23 = arith.divf %21, %22 : vector<16x128xf32>
    %24 = vector.extract_strided_slice %11 {offsets = [0, 256], sizes = [16, 128], strides = [1, 1]} : vector<16x512xf32> to vector<16x128xf32>
    %25 = math.tanh %24 : vector<16x128xf32>
    %26 = vector.extract_strided_slice %11 {offsets = [0, 384], sizes = [16, 128], strides = [1, 1]} : vector<16x512xf32> to vector<16x128xf32>
    %27 = arith.negf %26 : vector<16x128xf32>
    %28 = math.exp %27 : vector<16x128xf32>
    %cst_11 = arith.constant 1.000000e+00 : f32
    %29 = vector.broadcast %cst_11 : f32 to vector<16x128xf32>
    %30 = arith.addf %29, %28 : vector<16x128xf32>
    %31 = arith.divf %29, %30 : vector<16x128xf32>
    %32 = arith.mulf %23, %5 : vector<16x128xf32>
    %33 = arith.mulf %17, %25 : vector<16x128xf32>
    %34 = arith.addf %32, %33 : vector<16x128xf32>
    %35 = math.tanh %34 : vector<16x128xf32>
    %36 = arith.mulf %31, %35 : vector<16x128xf32>
    %c0_12 = arith.constant 0 : index
    %c0_13 = arith.constant 0 : index
    %37 = vector.load %arg5[%c0_12, %c0_13] : memref<16x128xf32, #tpu.memory_space<vmem>>, vector<16x128xf32>
    tpu.vector_store %arg5[%c0_12, %c0_13], %36 {strides = array<i32>} : memref<16x128xf32, #tpu.memory_space<vmem>>, vector<16x128xf32>,
    %c0_14 = arith.constant 0 : index
    %c0_15 = arith.constant 0 : index
    %38 = vector.load %arg6[%c0_14, %c0_15] : memref<16x128xf32, #tpu.memory_space<vmem>>, vector<16x128xf32>
    tpu.vector_store %arg6[%c0_14, %c0_15], %34 {strides = array<i32>} : memref<16x128xf32, #tpu.memory_space<vmem>>, vector<16x128xf32>,
    %39 = arith.truncf %36 : vector<16x128xf32> to vector<16x128xbf16>
    %40 = arith.index_cast %c0_i32_2 : i32 to index
    %c0_16 = arith.constant 0 : index
    %c0_17 = arith.constant 0 : index
    %41 = vector.load %arg4[%40, %c0_16, %c0_17] : memref<8x16x128xbf16, #tpu.memory_space<vmem>>, vector<1x16x128xbf16>
    %42 = vector.shape_cast %41 : vector<1x16x128xbf16> to vector<16x128xbf16>
    %43 = vector.shape_cast %39 : vector<16x128xbf16> to vector<1x16x128xbf16>
    tpu.vector_store %arg4[%40, %c0_16, %c0_17], %43 {strides = array<i32>} : memref<8x16x128xbf16, #tpu.memory_space<vmem>>, vector<1x16x128xbf16>,
    %c1_i32 = arith.constant 1 : i32
    %c0_18 = arith.constant 0 : index
    %c0_19 = arith.constant 0 : index
    %44 = vector.load %arg5[%c0_18, %c0_19] : memref<16x128xf32, #tpu.memory_space<vmem>>, vector<16x128xf32>
    %c0_20 = arith.constant 0 : index
    %c0_21 = arith.constant 0 : index
    %45 = vector.load %arg6[%c0_20, %c0_21] : memref<16x128xf32, #tpu.memory_space<vmem>>, vector<16x128xf32>
    %46 = arith.index_cast %c1_i32 : i32 to index
    %c0_22 = arith.constant 0 : index
    %c0_23 = arith.constant 0 : index
    %47 = vector.load %arg2[%46, %c0_22, %c0_23] : memref<8x16x512xf32, #tpu.memory_space<vmem>>, vector<1x16x512xf32>
    %48 = vector.shape_cast %47 : vector<1x16x512xf32> to vector<16x512xf32>
    %49 = arith.truncf %44 : vector<16x128xf32> to vector<16x128xbf16>
    %cst_24 = arith.constant dense<0.000000e+00> : vector<16x512xf32>
    %50 = tpu.matmul %49, %3, %cst_24 {dimension_numbers = #tpu.dot_dimension_numbers<[1], [0], [0], [1], [0, 0, 1, 1], [], []>} : vector<16x128xbf16>, vector<128x512xbf16>, vector<16x512xf32> -> vector<16x512xf32>
    %51 = arith.addf %48, %50 : vector<16x512xf32>
    %52 = vector.extract_strided_slice %51 {offsets = [0, 0], sizes = [16, 128], strides = [1, 1]} : vector<16x512xf32> to vector<16x128xf32>
    %53 = arith.negf %52 : vector<16x128xf32>
    %54 = math.exp %53 : vector<16x128xf32>
    %cst_25 = arith.constant 1.000000e+00 : f32
    %55 = vector.broadcast %cst_25 : f32 to vector<16x128xf32>
    %56 = arith.addf %55, %54 : vector<16x128xf32>
    %57 = arith.divf %55, %56 : vector<16x128xf32>
    %58 = vector.extract_strided_slice %51 {offsets = [0, 128], sizes = [16, 128], strides = [1, 1]} : vector<16x512xf32> to vector<16x128xf32>
    %59 = arith.negf %58 : vector<16x128xf32>
    %60 = math.exp %59 : vector<16x128xf32>
    %cst_26 = arith.constant 1.000000e+00 : f32
    %61 = vector.broadcast %cst_26 : f32 to vector<16x128xf32>
    %62 = arith.addf %61, %60 : vector<16x128xf32>
    %63 = arith.divf %61, %62 : vector<16x128xf32>
    %64 = vector.extract_strided_slice %51 {offsets = [0, 256], sizes = [16, 128], strides = [1, 1]} : vector<16x512xf32> to vector<16x128xf32>
    %65 = math.tanh %64 : vector<16x128xf32>
    %66 = vector.extract_strided_slice %51 {offsets = [0, 384], sizes = [16, 128], strides = [1, 1]} : vector<16x512xf32> to vector<16x128xf32>
    %67 = arith.negf %66 : vector<16x128xf32>
    %68 = math.exp %67 : vector<16x128xf32>
    %cst_27 = arith.constant 1.000000e+00 : f32
    %69 = vector.broadcast %cst_27 : f32 to vector<16x128xf32>
    %70 = arith.addf %69, %68 : vector<16x128xf32>
    %71 = arith.divf %69, %70 : vector<16x128xf32>
    %72 = arith.mulf %63, %45 : vector<16x128xf32>
    %73 = arith.mulf %57, %65 : vector<16x128xf32>
    %74 = arith.addf %72, %73 : vector<16x128xf32>
    %75 = math.tanh %74 : vector<16x128xf32>
    %76 = arith.mulf %71, %75 : vector<16x128xf32>
    %c0_28 = arith.constant 0 : index
    %c0_29 = arith.constant 0 : index
    %77 = vector.load %arg5[%c0_28, %c0_29] : memref<16x128xf32, #tpu.memory_space<vmem>>, vector<16x128xf32>
    tpu.vector_store %arg5[%c0_28, %c0_29], %76 {strides = array<i32>} : memref<16x128xf32, #tpu.memory_space<vmem>>, vector<16x128xf32>,
    %c0_30 = arith.constant 0 : index
    %c0_31 = arith.constant 0 : index
    %78 = vector.load %arg6[%c0_30, %c0_31] : memref<16x128xf32, #tpu.memory_space<vmem>>, vector<16x128xf32>
    tpu.vector_store %arg6[%c0_30, %c0_31], %74 {strides = array<i32>} : memref<16x128xf32, #tpu.memory_space<vmem>>, vector<16x128xf32>,
    %79 = arith.truncf %76 : vector<16x128xf32> to vector<16x128xbf16>
    %80 = arith.index_cast %c1_i32 : i32 to index
    %c0_32 = arith.constant 0 : index
    %c0_33 = arith.constant 0 : index
    %81 = vector.load %arg4[%80, %c0_32, %c0_33] : memref<8x16x128xbf16, #tpu.memory_space<vmem>>, vector<1x16x128xbf16>
    %82 = vector.shape_cast %81 : vector<1x16x128xbf16> to vector<16x128xbf16>
    %83 = vector.shape_cast %79 : vector<16x128xbf16> to vector<1x16x128xbf16>
    tpu.vector_store %arg4[%80, %c0_32, %c0_33], %83 {strides = array<i32>} : memref<8x16x128xbf16, #tpu.memory_space<vmem>>, vector<1x16x128xbf16>,
    %c2_i32 = arith.constant 2 : i32
    %c0_34 = arith.constant 0 : index
    %c0_35 = arith.constant 0 : index
    %84 = vector.load %arg5[%c0_34, %c0_35] : memref<16x128xf32, #tpu.memory_space<vmem>>, vector<16x128xf32>
    %c0_36 = arith.constant 0 : index
    %c0_37 = arith.constant 0 : index
    %85 = vector.load %arg6[%c0_36, %c0_37] : memref<16x128xf32, #tpu.memory_space<vmem>>, vector<16x128xf32>
    %86 = arith.index_cast %c2_i32 : i32 to index
    %c0_38 = arith.constant 0 : index
    %c0_39 = arith.constant 0 : index
    %87 = vector.load %arg2[%86, %c0_38, %c0_39] : memref<8x16x512xf32, #tpu.memory_space<vmem>>, vector<1x16x512xf32>
    %88 = vector.shape_cast %87 : vector<1x16x512xf32> to vector<16x512xf32>
    %89 = arith.truncf %84 : vector<16x128xf32> to vector<16x128xbf16>
    %cst_40 = arith.constant dense<0.000000e+00> : vector<16x512xf32>
    %90 = tpu.matmul %89, %3, %cst_40 {dimension_numbers = #tpu.dot_dimension_numbers<[1], [0], [0], [1], [0, 0, 1, 1], [], []>} : vector<16x128xbf16>, vector<128x512xbf16>, vector<16x512xf32> -> vector<16x512xf32>
    %91 = arith.addf %88, %90 : vector<16x512xf32>
    %92 = vector.extract_strided_slice %91 {offsets = [0, 0], sizes = [16, 128], strides = [1, 1]} : vector<16x512xf32> to vector<16x128xf32>
    %93 = arith.negf %92 : vector<16x128xf32>
    %94 = math.exp %93 : vector<16x128xf32>
    %cst_41 = arith.constant 1.000000e+00 : f32
    %95 = vector.broadcast %cst_41 : f32 to vector<16x128xf32>
    %96 = arith.addf %95, %94 : vector<16x128xf32>
    %97 = arith.divf %95, %96 : vector<16x128xf32>
    %98 = vector.extract_strided_slice %91 {offsets = [0, 128], sizes = [16, 128], strides = [1, 1]} : vector<16x512xf32> to vector<16x128xf32>
    %99 = arith.negf %98 : vector<16x128xf32>
    %100 = math.exp %99 : vector<16x128xf32>
    %cst_42 = arith.constant 1.000000e+00 : f32
    %101 = vector.broadcast %cst_42 : f32 to vector<16x128xf32>
    %102 = arith.addf %101, %100 : vector<16x128xf32>
    %103 = arith.divf %101, %102 : vector<16x128xf32>
    %104 = vector.extract_strided_slice %91 {offsets = [0, 256], sizes = [16, 128], strides = [1, 1]} : vector<16x512xf32> to vector<16x128xf32>
    %105 = math.tanh %104 : vector<16x128xf32>
    %106 = vector.extract_strided_slice %91 {offsets = [0, 384], sizes = [16, 128], strides = [1, 1]} : vector<16x512xf32> to vector<16x128xf32>
    %107 = arith.negf %106 : vector<16x128xf32>
    %108 = math.exp %107 : vector<16x128xf32>
    %cst_43 = arith.constant 1.000000e+00 : f32
    %109 = vector.broadcast %cst_43 : f32 to vector<16x128xf32>
    %110 = arith.addf %109, %108 : vector<16x128xf32>
    %111 = arith.divf %109, %110 : vector<16x128xf32>
    %112 = arith.mulf %103, %85 : vector<16x128xf32>
    %113 = arith.mulf %97, %105 : vector<16x128xf32>
    %114 = arith.addf %112, %113 : vector<16x128xf32>
    %115 = math.tanh %114 : vector<16x128xf32>
    %116 = arith.mulf %111, %115 : vector<16x128xf32>
    %c0_44 = arith.constant 0 : index
    %c0_45 = arith.constant 0 : index
    %117 = vector.load %arg5[%c0_44, %c0_45] : memref<16x128xf32, #tpu.memory_space<vmem>>, vector<16x128xf32>
    tpu.vector_store %arg5[%c0_44, %c0_45], %116 {strides = array<i32>} : memref<16x128xf32, #tpu.memory_space<vmem>>, vector<16x128xf32>,
    %c0_46 = arith.constant 0 : index
    %c0_47 = arith.constant 0 : index
    %118 = vector.load %arg6[%c0_46, %c0_47] : memref<16x128xf32, #tpu.memory_space<vmem>>, vector<16x128xf32>
    tpu.vector_store %arg6[%c0_46, %c0_47], %114 {strides = array<i32>} : memref<16x128xf32, #tpu.memory_space<vmem>>, vector<16x128xf32>,
    %119 = arith.truncf %116 : vector<16x128xf32> to vector<16x128xbf16>
    %120 = arith.index_cast %c2_i32 : i32 to index
    %c0_48 = arith.constant 0 : index
    %c0_49 = arith.constant 0 : index
    %121 = vector.load %arg4[%120, %c0_48, %c0_49] : memref<8x16x128xbf16, #tpu.memory_space<vmem>>, vector<1x16x128xbf16>
    %122 = vector.shape_cast %121 : vector<1x16x128xbf16> to vector<16x128xbf16>
    %123 = vector.shape_cast %119 : vector<16x128xbf16> to vector<1x16x128xbf16>
    tpu.vector_store %arg4[%120, %c0_48, %c0_49], %123 {strides = array<i32>} : memref<8x16x128xbf16, #tpu.memory_space<vmem>>, vector<1x16x128xbf16>,
    %c3_i32 = arith.constant 3 : i32
    %c0_50 = arith.constant 0 : index
    %c0_51 = arith.constant 0 : index
    %124 = vector.load %arg5[%c0_50, %c0_51] : memref<16x128xf32, #tpu.memory_space<vmem>>, vector<16x128xf32>
    %c0_52 = arith.constant 0 : index
    %c0_53 = arith.constant 0 : index
    %125 = vector.load %arg6[%c0_52, %c0_53] : memref<16x128xf32, #tpu.memory_space<vmem>>, vector<16x128xf32>
    %126 = arith.index_cast %c3_i32 : i32 to index
    %c0_54 = arith.constant 0 : index
    %c0_55 = arith.constant 0 : index
    %127 = vector.load %arg2[%126, %c0_54, %c0_55] : memref<8x16x512xf32, #tpu.memory_space<vmem>>, vector<1x16x512xf32>
    %128 = vector.shape_cast %127 : vector<1x16x512xf32> to vector<16x512xf32>
    %129 = arith.truncf %124 : vector<16x128xf32> to vector<16x128xbf16>
    %cst_56 = arith.constant dense<0.000000e+00> : vector<16x512xf32>
    %130 = tpu.matmul %129, %3, %cst_56 {dimension_numbers = #tpu.dot_dimension_numbers<[1], [0], [0], [1], [0, 0, 1, 1], [], []>} : vector<16x128xbf16>, vector<128x512xbf16>, vector<16x512xf32> -> vector<16x512xf32>
    %131 = arith.addf %128, %130 : vector<16x512xf32>
    %132 = vector.extract_strided_slice %131 {offsets = [0, 0], sizes = [16, 128], strides = [1, 1]} : vector<16x512xf32> to vector<16x128xf32>
    %133 = arith.negf %132 : vector<16x128xf32>
    %134 = math.exp %133 : vector<16x128xf32>
    %cst_57 = arith.constant 1.000000e+00 : f32
    %135 = vector.broadcast %cst_57 : f32 to vector<16x128xf32>
    %136 = arith.addf %135, %134 : vector<16x128xf32>
    %137 = arith.divf %135, %136 : vector<16x128xf32>
    %138 = vector.extract_strided_slice %131 {offsets = [0, 128], sizes = [16, 128], strides = [1, 1]} : vector<16x512xf32> to vector<16x128xf32>
    %139 = arith.negf %138 : vector<16x128xf32>
    %140 = math.exp %139 : vector<16x128xf32>
    %cst_58 = arith.constant 1.000000e+00 : f32
    %141 = vector.broadcast %cst_58 : f32 to vector<16x128xf32>
    %142 = arith.addf %141, %140 : vector<16x128xf32>
    %143 = arith.divf %141, %142 : vector<16x128xf32>
    %144 = vector.extract_strided_slice %131 {offsets = [0, 256], sizes = [16, 128], strides = [1, 1]} : vector<16x512xf32> to vector<16x128xf32>
    %145 = math.tanh %144 : vector<16x128xf32>
    %146 = vector.extract_strided_slice %131 {offsets = [0, 384], sizes = [16, 128], strides = [1, 1]} : vector<16x512xf32> to vector<16x128xf32>
    %147 = arith.negf %146 : vector<16x128xf32>
    %148 = math.exp %147 : vector<16x128xf32>
    %cst_59 = arith.constant 1.000000e+00 : f32
    %149 = vector.broadcast %cst_59 : f32 to vector<16x128xf32>
    %150 = arith.addf %149, %148 : vector<16x128xf32>
    %151 = arith.divf %149, %150 : vector<16x128xf32>
    %152 = arith.mulf %143, %125 : vector<16x128xf32>
    %153 = arith.mulf %137, %145 : vector<16x128xf32>
    %154 = arith.addf %152, %153 : vector<16x128xf32>
    %155 = math.tanh %154 : vector<16x128xf32>
    %156 = arith.mulf %151, %155 : vector<16x128xf32>
    %c0_60 = arith.constant 0 : index
    %c0_61 = arith.constant 0 : index
    %157 = vector.load %arg5[%c0_60, %c0_61] : memref<16x128xf32, #tpu.memory_space<vmem>>, vector<16x128xf32>
    tpu.vector_store %arg5[%c0_60, %c0_61], %156 {strides = array<i32>} : memref<16x128xf32, #tpu.memory_space<vmem>>, vector<16x128xf32>,
    %c0_62 = arith.constant 0 : index
    %c0_63 = arith.constant 0 : index
    %158 = vector.load %arg6[%c0_62, %c0_63] : memref<16x128xf32, #tpu.memory_space<vmem>>, vector<16x128xf32>
    tpu.vector_store %arg6[%c0_62, %c0_63], %154 {strides = array<i32>} : memref<16x128xf32, #tpu.memory_space<vmem>>, vector<16x128xf32>,
    %159 = arith.truncf %156 : vector<16x128xf32> to vector<16x128xbf16>
    %160 = arith.index_cast %c3_i32 : i32 to index
    %c0_64 = arith.constant 0 : index
    %c0_65 = arith.constant 0 : index
    %161 = vector.load %arg4[%160, %c0_64, %c0_65] : memref<8x16x128xbf16, #tpu.memory_space<vmem>>, vector<1x16x128xbf16>
    %162 = vector.shape_cast %161 : vector<1x16x128xbf16> to vector<16x128xbf16>
    %163 = vector.shape_cast %159 : vector<16x128xbf16> to vector<1x16x128xbf16>
    tpu.vector_store %arg4[%160, %c0_64, %c0_65], %163 {strides = array<i32>} : memref<8x16x128xbf16, #tpu.memory_space<vmem>>, vector<1x16x128xbf16>,
    %c4_i32 = arith.constant 4 : i32
    %c0_66 = arith.constant 0 : index
    %c0_67 = arith.constant 0 : index
    %164 = vector.load %arg5[%c0_66, %c0_67] : memref<16x128xf32, #tpu.memory_space<vmem>>, vector<16x128xf32>
    %c0_68 = arith.constant 0 : index
    %c0_69 = arith.constant 0 : index
    %165 = vector.load %arg6[%c0_68, %c0_69] : memref<16x128xf32, #tpu.memory_space<vmem>>, vector<16x128xf32>
    %166 = arith.index_cast %c4_i32 : i32 to index
    %c0_70 = arith.constant 0 : index
    %c0_71 = arith.constant 0 : index
    %167 = vector.load %arg2[%166, %c0_70, %c0_71] : memref<8x16x512xf32, #tpu.memory_space<vmem>>, vector<1x16x512xf32>
    %168 = vector.shape_cast %167 : vector<1x16x512xf32> to vector<16x512xf32>
    %169 = arith.truncf %164 : vector<16x128xf32> to vector<16x128xbf16>
    %cst_72 = arith.constant dense<0.000000e+00> : vector<16x512xf32>
    %170 = tpu.matmul %169, %3, %cst_72 {dimension_numbers = #tpu.dot_dimension_numbers<[1], [0], [0], [1], [0, 0, 1, 1], [], []>} : vector<16x128xbf16>, vector<128x512xbf16>, vector<16x512xf32> -> vector<16x512xf32>
    %171 = arith.addf %168, %170 : vector<16x512xf32>
    %172 = vector.extract_strided_slice %171 {offsets = [0, 0], sizes = [16, 128], strides = [1, 1]} : vector<16x512xf32> to vector<16x128xf32>
    %173 = arith.negf %172 : vector<16x128xf32>
    %174 = math.exp %173 : vector<16x128xf32>
    %cst_73 = arith.constant 1.000000e+00 : f32
    %175 = vector.broadcast %cst_73 : f32 to vector<16x128xf32>
    %176 = arith.addf %175, %174 : vector<16x128xf32>
    %177 = arith.divf %175, %176 : vector<16x128xf32>
    %178 = vector.extract_strided_slice %171 {offsets = [0, 128], sizes = [16, 128], strides = [1, 1]} : vector<16x512xf32> to vector<16x128xf32>
    %179 = arith.negf %178 : vector<16x128xf32>
    %180 = math.exp %179 : vector<16x128xf32>
    %cst_74 = arith.constant 1.000000e+00 : f32
    %181 = vector.broadcast %cst_74 : f32 to vector<16x128xf32>
    %182 = arith.addf %181, %180 : vector<16x128xf32>
    %183 = arith.divf %181, %182 : vector<16x128xf32>
    %184 = vector.extract_strided_slice %171 {offsets = [0, 256], sizes = [16, 128], strides = [1, 1]} : vector<16x512xf32> to vector<16x128xf32>
    %185 = math.tanh %184 : vector<16x128xf32>
    %186 = vector.extract_strided_slice %171 {offsets = [0, 384], sizes = [16, 128], strides = [1, 1]} : vector<16x512xf32> to vector<16x128xf32>
    %187 = arith.negf %186 : vector<16x128xf32>
    %188 = math.exp %187 : vector<16x128xf32>
    %cst_75 = arith.constant 1.000000e+00 : f32
    %189 = vector.broadcast %cst_75 : f32 to vector<16x128xf32>
    %190 = arith.addf %189, %188 : vector<16x128xf32>
    %191 = arith.divf %189, %190 : vector<16x128xf32>
    %192 = arith.mulf %183, %165 : vector<16x128xf32>
    %193 = arith.mulf %177, %185 : vector<16x128xf32>
    %194 = arith.addf %192, %193 : vector<16x128xf32>
    %195 = math.tanh %194 : vector<16x128xf32>
    %196 = arith.mulf %191, %195 : vector<16x128xf32>
    %c0_76 = arith.constant 0 : index
    %c0_77 = arith.constant 0 : index
    %197 = vector.load %arg5[%c0_76, %c0_77] : memref<16x128xf32, #tpu.memory_space<vmem>>, vector<16x128xf32>
    tpu.vector_store %arg5[%c0_76, %c0_77], %196 {strides = array<i32>} : memref<16x128xf32, #tpu.memory_space<vmem>>, vector<16x128xf32>,
    %c0_78 = arith.constant 0 : index
    %c0_79 = arith.constant 0 : index
    %198 = vector.load %arg6[%c0_78, %c0_79] : memref<16x128xf32, #tpu.memory_space<vmem>>, vector<16x128xf32>
    tpu.vector_store %arg6[%c0_78, %c0_79], %194 {strides = array<i32>} : memref<16x128xf32, #tpu.memory_space<vmem>>, vector<16x128xf32>,
    %199 = arith.truncf %196 : vector<16x128xf32> to vector<16x128xbf16>
    %200 = arith.index_cast %c4_i32 : i32 to index
    %c0_80 = arith.constant 0 : index
    %c0_81 = arith.constant 0 : index
    %201 = vector.load %arg4[%200, %c0_80, %c0_81] : memref<8x16x128xbf16, #tpu.memory_space<vmem>>, vector<1x16x128xbf16>
    %202 = vector.shape_cast %201 : vector<1x16x128xbf16> to vector<16x128xbf16>
    %203 = vector.shape_cast %199 : vector<16x128xbf16> to vector<1x16x128xbf16>
    tpu.vector_store %arg4[%200, %c0_80, %c0_81], %203 {strides = array<i32>} : memref<8x16x128xbf16, #tpu.memory_space<vmem>>, vector<1x16x128xbf16>,
    %c5_i32 = arith.constant 5 : i32
    %c0_82 = arith.constant 0 : index
    %c0_83 = arith.constant 0 : index
    %204 = vector.load %arg5[%c0_82, %c0_83] : memref<16x128xf32, #tpu.memory_space<vmem>>, vector<16x128xf32>
    %c0_84 = arith.constant 0 : index
    %c0_85 = arith.constant 0 : index
    %205 = vector.load %arg6[%c0_84, %c0_85] : memref<16x128xf32, #tpu.memory_space<vmem>>, vector<16x128xf32>
    %206 = arith.index_cast %c5_i32 : i32 to index
    %c0_86 = arith.constant 0 : index
    %c0_87 = arith.constant 0 : index
    %207 = vector.load %arg2[%206, %c0_86, %c0_87] : memref<8x16x512xf32, #tpu.memory_space<vmem>>, vector<1x16x512xf32>
    %208 = vector.shape_cast %207 : vector<1x16x512xf32> to vector<16x512xf32>
    %209 = arith.truncf %204 : vector<16x128xf32> to vector<16x128xbf16>
    %cst_88 = arith.constant dense<0.000000e+00> : vector<16x512xf32>
    %210 = tpu.matmul %209, %3, %cst_88 {dimension_numbers = #tpu.dot_dimension_numbers<[1], [0], [0], [1], [0, 0, 1, 1], [], []>} : vector<16x128xbf16>, vector<128x512xbf16>, vector<16x512xf32> -> vector<16x512xf32>
    %211 = arith.addf %208, %210 : vector<16x512xf32>
    %212 = vector.extract_strided_slice %211 {offsets = [0, 0], sizes = [16, 128], strides = [1, 1]} : vector<16x512xf32> to vector<16x128xf32>
    %213 = arith.negf %212 : vector<16x128xf32>
    %214 = math.exp %213 : vector<16x128xf32>
    %cst_89 = arith.constant 1.000000e+00 : f32
    %215 = vector.broadcast %cst_89 : f32 to vector<16x128xf32>
    %216 = arith.addf %215, %214 : vector<16x128xf32>
    %217 = arith.divf %215, %216 : vector<16x128xf32>
    %218 = vector.extract_strided_slice %211 {offsets = [0, 128], sizes = [16, 128], strides = [1, 1]} : vector<16x512xf32> to vector<16x128xf32>
    %219 = arith.negf %218 : vector<16x128xf32>
    %220 = math.exp %219 : vector<16x128xf32>
    %cst_90 = arith.constant 1.000000e+00 : f32
    %221 = vector.broadcast %cst_90 : f32 to vector<16x128xf32>
    %222 = arith.addf %221, %220 : vector<16x128xf32>
    %223 = arith.divf %221, %222 : vector<16x128xf32>
    %224 = vector.extract_strided_slice %211 {offsets = [0, 256], sizes = [16, 128], strides = [1, 1]} : vector<16x512xf32> to vector<16x128xf32>
    %225 = math.tanh %224 : vector<16x128xf32>
    %226 = vector.extract_strided_slice %211 {offsets = [0, 384], sizes = [16, 128], strides = [1, 1]} : vector<16x512xf32> to vector<16x128xf32>
    %227 = arith.negf %226 : vector<16x128xf32>
    %228 = math.exp %227 : vector<16x128xf32>
    %cst_91 = arith.constant 1.000000e+00 : f32
    %229 = vector.broadcast %cst_91 : f32 to vector<16x128xf32>
    %230 = arith.addf %229, %228 : vector<16x128xf32>
    %231 = arith.divf %229, %230 : vector<16x128xf32>
    %232 = arith.mulf %223, %205 : vector<16x128xf32>
    %233 = arith.mulf %217, %225 : vector<16x128xf32>
    %234 = arith.addf %232, %233 : vector<16x128xf32>
    %235 = math.tanh %234 : vector<16x128xf32>
    %236 = arith.mulf %231, %235 : vector<16x128xf32>
    %c0_92 = arith.constant 0 : index
    %c0_93 = arith.constant 0 : index
    %237 = vector.load %arg5[%c0_92, %c0_93] : memref<16x128xf32, #tpu.memory_space<vmem>>, vector<16x128xf32>
    tpu.vector_store %arg5[%c0_92, %c0_93], %236 {strides = array<i32>} : memref<16x128xf32, #tpu.memory_space<vmem>>, vector<16x128xf32>,
    %c0_94 = arith.constant 0 : index
    %c0_95 = arith.constant 0 : index
    %238 = vector.load %arg6[%c0_94, %c0_95] : memref<16x128xf32, #tpu.memory_space<vmem>>, vector<16x128xf32>
    tpu.vector_store %arg6[%c0_94, %c0_95], %234 {strides = array<i32>} : memref<16x128xf32, #tpu.memory_space<vmem>>, vector<16x128xf32>,
    %239 = arith.truncf %236 : vector<16x128xf32> to vector<16x128xbf16>
    %240 = arith.index_cast %c5_i32 : i32 to index
    %c0_96 = arith.constant 0 : index
    %c0_97 = arith.constant 0 : index
    %241 = vector.load %arg4[%240, %c0_96, %c0_97] : memref<8x16x128xbf16, #tpu.memory_space<vmem>>, vector<1x16x128xbf16>
    %242 = vector.shape_cast %241 : vector<1x16x128xbf16> to vector<16x128xbf16>
    %243 = vector.shape_cast %239 : vector<16x128xbf16> to vector<1x16x128xbf16>
    tpu.vector_store %arg4[%240, %c0_96, %c0_97], %243 {strides = array<i32>} : memref<8x16x128xbf16, #tpu.memory_space<vmem>>, vector<1x16x128xbf16>,
    %c6_i32 = arith.constant 6 : i32
    %c0_98 = arith.constant 0 : index
    %c0_99 = arith.constant 0 : index
    %244 = vector.load %arg5[%c0_98, %c0_99] : memref<16x128xf32, #tpu.memory_space<vmem>>, vector<16x128xf32>
    %c0_100 = arith.constant 0 : index
    %c0_101 = arith.constant 0 : index
    %245 = vector.load %arg6[%c0_100, %c0_101] : memref<16x128xf32, #tpu.memory_space<vmem>>, vector<16x128xf32>
    %246 = arith.index_cast %c6_i32 : i32 to index
    %c0_102 = arith.constant 0 : index
    %c0_103 = arith.constant 0 : index
    %247 = vector.load %arg2[%246, %c0_102, %c0_103] : memref<8x16x512xf32, #tpu.memory_space<vmem>>, vector<1x16x512xf32>
    %248 = vector.shape_cast %247 : vector<1x16x512xf32> to vector<16x512xf32>
    %249 = arith.truncf %244 : vector<16x128xf32> to vector<16x128xbf16>
    %cst_104 = arith.constant dense<0.000000e+00> : vector<16x512xf32>
    %250 = tpu.matmul %249, %3, %cst_104 {dimension_numbers = #tpu.dot_dimension_numbers<[1], [0], [0], [1], [0, 0, 1, 1], [], []>} : vector<16x128xbf16>, vector<128x512xbf16>, vector<16x512xf32> -> vector<16x512xf32>
    %251 = arith.addf %248, %250 : vector<16x512xf32>
    %252 = vector.extract_strided_slice %251 {offsets = [0, 0], sizes = [16, 128], strides = [1, 1]} : vector<16x512xf32> to vector<16x128xf32>
    %253 = arith.negf %252 : vector<16x128xf32>
    %254 = math.exp %253 : vector<16x128xf32>
    %cst_105 = arith.constant 1.000000e+00 : f32
    %255 = vector.broadcast %cst_105 : f32 to vector<16x128xf32>
    %256 = arith.addf %255, %254 : vector<16x128xf32>
    %257 = arith.divf %255, %256 : vector<16x128xf32>
    %258 = vector.extract_strided_slice %251 {offsets = [0, 128], sizes = [16, 128], strides = [1, 1]} : vector<16x512xf32> to vector<16x128xf32>
    %259 = arith.negf %258 : vector<16x128xf32>
    %260 = math.exp %259 : vector<16x128xf32>
    %cst_106 = arith.constant 1.000000e+00 : f32
    %261 = vector.broadcast %cst_106 : f32 to vector<16x128xf32>
    %262 = arith.addf %261, %260 : vector<16x128xf32>
    %263 = arith.divf %261, %262 : vector<16x128xf32>
    %264 = vector.extract_strided_slice %251 {offsets = [0, 256], sizes = [16, 128], strides = [1, 1]} : vector<16x512xf32> to vector<16x128xf32>
    %265 = math.tanh %264 : vector<16x128xf32>
    %266 = vector.extract_strided_slice %251 {offsets = [0, 384], sizes = [16, 128], strides = [1, 1]} : vector<16x512xf32> to vector<16x128xf32>
    %267 = arith.negf %266 : vector<16x128xf32>
    %268 = math.exp %267 : vector<16x128xf32>
    %cst_107 = arith.constant 1.000000e+00 : f32
    %269 = vector.broadcast %cst_107 : f32 to vector<16x128xf32>
    %270 = arith.addf %269, %268 : vector<16x128xf32>
    %271 = arith.divf %269, %270 : vector<16x128xf32>
    %272 = arith.mulf %263, %245 : vector<16x128xf32>
    %273 = arith.mulf %257, %265 : vector<16x128xf32>
    %274 = arith.addf %272, %273 : vector<16x128xf32>
    %275 = math.tanh %274 : vector<16x128xf32>
    %276 = arith.mulf %271, %275 : vector<16x128xf32>
    %c0_108 = arith.constant 0 : index
    %c0_109 = arith.constant 0 : index
    %277 = vector.load %arg5[%c0_108, %c0_109] : memref<16x128xf32, #tpu.memory_space<vmem>>, vector<16x128xf32>
    tpu.vector_store %arg5[%c0_108, %c0_109], %276 {strides = array<i32>} : memref<16x128xf32, #tpu.memory_space<vmem>>, vector<16x128xf32>,
    %c0_110 = arith.constant 0 : index
    %c0_111 = arith.constant 0 : index
    %278 = vector.load %arg6[%c0_110, %c0_111] : memref<16x128xf32, #tpu.memory_space<vmem>>, vector<16x128xf32>
    tpu.vector_store %arg6[%c0_110, %c0_111], %274 {strides = array<i32>} : memref<16x128xf32, #tpu.memory_space<vmem>>, vector<16x128xf32>,
    %279 = arith.truncf %276 : vector<16x128xf32> to vector<16x128xbf16>
    %280 = arith.index_cast %c6_i32 : i32 to index
    %c0_112 = arith.constant 0 : index
    %c0_113 = arith.constant 0 : index
    %281 = vector.load %arg4[%280, %c0_112, %c0_113] : memref<8x16x128xbf16, #tpu.memory_space<vmem>>, vector<1x16x128xbf16>
    %282 = vector.shape_cast %281 : vector<1x16x128xbf16> to vector<16x128xbf16>
    %283 = vector.shape_cast %279 : vector<16x128xbf16> to vector<1x16x128xbf16>
    tpu.vector_store %arg4[%280, %c0_112, %c0_113], %283 {strides = array<i32>} : memref<8x16x128xbf16, #tpu.memory_space<vmem>>, vector<1x16x128xbf16>,
    %c7_i32 = arith.constant 7 : i32
    %c0_114 = arith.constant 0 : index
    %c0_115 = arith.constant 0 : index
    %284 = vector.load %arg5[%c0_114, %c0_115] : memref<16x128xf32, #tpu.memory_space<vmem>>, vector<16x128xf32>
    %c0_116 = arith.constant 0 : index
    %c0_117 = arith.constant 0 : index
    %285 = vector.load %arg6[%c0_116, %c0_117] : memref<16x128xf32, #tpu.memory_space<vmem>>, vector<16x128xf32>
    %286 = arith.index_cast %c7_i32 : i32 to index
    %c0_118 = arith.constant 0 : index
    %c0_119 = arith.constant 0 : index
    %287 = vector.load %arg2[%286, %c0_118, %c0_119] : memref<8x16x512xf32, #tpu.memory_space<vmem>>, vector<1x16x512xf32>
    %288 = vector.shape_cast %287 : vector<1x16x512xf32> to vector<16x512xf32>
    %289 = arith.truncf %284 : vector<16x128xf32> to vector<16x128xbf16>
    %cst_120 = arith.constant dense<0.000000e+00> : vector<16x512xf32>
    %290 = tpu.matmul %289, %3, %cst_120 {dimension_numbers = #tpu.dot_dimension_numbers<[1], [0], [0], [1], [0, 0, 1, 1], [], []>} : vector<16x128xbf16>, vector<128x512xbf16>, vector<16x512xf32> -> vector<16x512xf32>
    %291 = arith.addf %288, %290 : vector<16x512xf32>
    %292 = vector.extract_strided_slice %291 {offsets = [0, 0], sizes = [16, 128], strides = [1, 1]} : vector<16x512xf32> to vector<16x128xf32>
    %293 = arith.negf %292 : vector<16x128xf32>
    %294 = math.exp %293 : vector<16x128xf32>
    %cst_121 = arith.constant 1.000000e+00 : f32
    %295 = vector.broadcast %cst_121 : f32 to vector<16x128xf32>
    %296 = arith.addf %295, %294 : vector<16x128xf32>
    %297 = arith.divf %295, %296 : vector<16x128xf32>
    %298 = vector.extract_strided_slice %291 {offsets = [0, 128], sizes = [16, 128], strides = [1, 1]} : vector<16x512xf32> to vector<16x128xf32>
    %299 = arith.negf %298 : vector<16x128xf32>
    %300 = math.exp %299 : vector<16x128xf32>
    %cst_122 = arith.constant 1.000000e+00 : f32
    %301 = vector.broadcast %cst_122 : f32 to vector<16x128xf32>
    %302 = arith.addf %301, %300 : vector<16x128xf32>
    %303 = arith.divf %301, %302 : vector<16x128xf32>
    %304 = vector.extract_strided_slice %291 {offsets = [0, 256], sizes = [16, 128], strides = [1, 1]} : vector<16x512xf32> to vector<16x128xf32>
    %305 = math.tanh %304 : vector<16x128xf32>
    %306 = vector.extract_strided_slice %291 {offsets = [0, 384], sizes = [16, 128], strides = [1, 1]} : vector<16x512xf32> to vector<16x128xf32>
    %307 = arith.negf %306 : vector<16x128xf32>
    %308 = math.exp %307 : vector<16x128xf32>
    %cst_123 = arith.constant 1.000000e+00 : f32
    %309 = vector.broadcast %cst_123 : f32 to vector<16x128xf32>
    %310 = arith.addf %309, %308 : vector<16x128xf32>
    %311 = arith.divf %309, %310 : vector<16x128xf32>
    %312 = arith.mulf %303, %285 : vector<16x128xf32>
    %313 = arith.mulf %297, %305 : vector<16x128xf32>
    %314 = arith.addf %312, %313 : vector<16x128xf32>
    %315 = math.tanh %314 : vector<16x128xf32>
    %316 = arith.mulf %311, %315 : vector<16x128xf32>
    %c0_124 = arith.constant 0 : index
    %c0_125 = arith.constant 0 : index
    %317 = vector.load %arg5[%c0_124, %c0_125] : memref<16x128xf32, #tpu.memory_space<vmem>>, vector<16x128xf32>
    tpu.vector_store %arg5[%c0_124, %c0_125], %316 {strides = array<i32>} : memref<16x128xf32, #tpu.memory_space<vmem>>, vector<16x128xf32>,
    %c0_126 = arith.constant 0 : index
    %c0_127 = arith.constant 0 : index
    %318 = vector.load %arg6[%c0_126, %c0_127] : memref<16x128xf32, #tpu.memory_space<vmem>>, vector<16x128xf32>
    tpu.vector_store %arg6[%c0_126, %c0_127], %314 {strides = array<i32>} : memref<16x128xf32, #tpu.memory_space<vmem>>, vector<16x128xf32>,
    %319 = arith.truncf %316 : vector<16x128xf32> to vector<16x128xbf16>
    %320 = arith.index_cast %c7_i32 : i32 to index
    %c0_128 = arith.constant 0 : index
    %c0_129 = arith.constant 0 : index
    %321 = vector.load %arg4[%320, %c0_128, %c0_129] : memref<8x16x128xbf16, #tpu.memory_space<vmem>>, vector<1x16x128xbf16>
    %322 = vector.shape_cast %321 : vector<1x16x128xbf16> to vector<16x128xbf16>
    %323 = vector.shape_cast %319 : vector<16x128xbf16> to vector<1x16x128xbf16>
    tpu.vector_store %arg4[%320, %c0_128, %c0_129], %323 {strides = array<i32>} : memref<8x16x128xbf16, #tpu.memory_space<vmem>>, vector<1x16x128xbf16>,
    %c8_i32 = arith.constant 8 : i32
    return
  }
  func.func @transform_0(%arg0: i32, %arg1: i32) -> (i32, i32, i32) {
    %c0_i32 = arith.constant 0 : i32
    %c0_i32_0 = arith.constant 0 : i32
    return %arg1, %arg0, %c0_i32 : i32, i32, i32
  }
  func.func @transform_1(%arg0: i32, %arg1: i32) -> (i32, i32) {
    %c0_i32 = arith.constant 0 : i32
    %c0_i32_0 = arith.constant 0 : i32
    %c0_i32_1 = arith.constant 0 : i32
    return %c0_i32, %c0_i32_0 : i32, i32
  }
  func.func @transform_2(%arg0: i32, %arg1: i32) -> (i32, i32, i32) {
    %c0_i32 = arith.constant 0 : i32
    %c0_i32_0 = arith.constant 0 : i32
    return %arg1, %arg0, %c0_i32 : i32, i32, i32
  }
}

module attributes {stable_mosaic.version = 11 : i64} {
  func.func @_logits_kernel(%arg0: i32, %arg1: i32, %arg2: memref<8x16x128xbf16, #tpu.memory_space<vmem>>, %arg3: memref<128x512xbf16, #tpu.memory_space<vmem>>, %arg4: memref<1x512xf32, #tpu.memory_space<vmem>>, %arg5: memref<16x8x512xf32, #tpu.memory_space<vmem>>) attributes {dimension_semantics = [#tpu.dimension_semantics<parallel>, #tpu.dimension_semantics<parallel>], iteration_bounds = array<i64: 1, 1>, scalar_prefetch = 0 : i64, scratch_operands = 0 : i64, tpu.core_type = #tpu.core_type<tc>, window_params = [{transform_indices = @transform_0, window_bounds = array<i64: 8, 16, 128>}, {transform_indices = @transform_1, window_bounds = array<i64: 128, 512>}, {transform_indices = @transform_2, window_bounds = array<i64: 1, 512>}, {transform_indices = @transform_3, window_bounds = array<i64: 16, 8, 512>}]} {
    %c0 = arith.constant 0 : index
    %c0_0 = arith.constant 0 : index
    %c0_1 = arith.constant 0 : index
    %0 = vector.load %arg2[%c0, %c0_0, %c0_1] : memref<8x16x128xbf16, #tpu.memory_space<vmem>>, vector<8x16x128xbf16>
    %1 = vector.shape_cast %0 : vector<8x16x128xbf16> to vector<128x128xbf16>
    %c0_2 = arith.constant 0 : index
    %c0_3 = arith.constant 0 : index
    %2 = vector.load %arg3[%c0_2, %c0_3] : memref<128x512xbf16, #tpu.memory_space<vmem>>, vector<128x512xbf16>
    %cst = arith.constant dense<0.000000e+00> : vector<128x512xf32>
    %3 = tpu.matmul %1, %2, %cst {dimension_numbers = #tpu.dot_dimension_numbers<[1], [0], [0], [1], [0, 0, 1, 1], [], []>} : vector<128x128xbf16>, vector<128x512xbf16>, vector<128x512xf32> -> vector<128x512xf32>
    %c0_4 = arith.constant 0 : index
    %c0_5 = arith.constant 0 : index
    %4 = vector.load %arg4[%c0_4, %c0_5] : memref<1x512xf32, #tpu.memory_space<vmem>>, vector<1x512xf32>
    %5 = vector.broadcast %4 : vector<1x512xf32> to vector<128x512xf32>
    %6 = arith.addf %3, %5 : vector<128x512xf32>
    %7 = vector.shape_cast %6 : vector<128x512xf32> to vector<8x16x512xf32>
    %8 = tpu.transpose %7, [1, 0, 2] : vector<8x16x512xf32> -> vector<16x8x512xf32>
    %c0_6 = arith.constant 0 : index
    %c0_7 = arith.constant 0 : index
    %c0_8 = arith.constant 0 : index
    %9 = vector.load %arg5[%c0_6, %c0_7, %c0_8] : memref<16x8x512xf32, #tpu.memory_space<vmem>>, vector<16x8x512xf32>
    tpu.vector_store %arg5[%c0_6, %c0_7, %c0_8], %8 {strides = array<i32>} : memref<16x8x512xf32, #tpu.memory_space<vmem>>, vector<16x8x512xf32>,
    return
  }
  func.func @transform_0(%arg0: i32, %arg1: i32) -> (i32, i32, i32) {
    %c0_i32 = arith.constant 0 : i32
    %c0_i32_0 = arith.constant 0 : i32
    %c0_i32_1 = arith.constant 0 : i32
    return %arg1, %c0_i32, %c0_i32_0 : i32, i32, i32
  }
  func.func @transform_1(%arg0: i32, %arg1: i32) -> (i32, i32) {
    %c0_i32 = arith.constant 0 : i32
    %c0_i32_0 = arith.constant 0 : i32
    return %c0_i32, %arg0 : i32, i32
  }
  func.func @transform_2(%arg0: i32, %arg1: i32) -> (i32, i32) {
    %c0_i32 = arith.constant 0 : i32
    %c0_i32_0 = arith.constant 0 : i32
    return %c0_i32, %arg0 : i32, i32
  }
  func.func @transform_3(%arg0: i32, %arg1: i32) -> (i32, i32, i32) {
    %c0_i32 = arith.constant 0 : i32
    %c0_i32_0 = arith.constant 0 : i32
    return %c0_i32, %arg1, %arg0 : i32, i32, i32
  }
}

</mosaic_0001>

<bundles_post_ra>
// kernel: decoder_rnn_forward.3
= control target key start
LH: loop header
LB: loop body
LE: loop exit
PB: predicated region body
PF: predicated region fallthrough
CT: control target
= control target key end

     0   :  { %v684_v1 = vmov 0   ;;  %v65_v41 = vlaneseq  ;;  %s1108_s1 = inlined_call_operand.vmem [shape: bf16[128,512], index: 1, kind: input, shape index: {}]   ;;  %s1109_s0 = inlined_call_operand.vmem [shape: bf16[128,128], index: 0, kind: input, shape index: {}]   ;;  %s1110_s2 = inlined_call_operand.vmem [shape: f32[1,512], index: 2, kind: input, shape index: {}]   ;;  %s1111_s3 = inlined_call_operand.vmem [shape: f32[128,512], index: 3, kind: output, shape index: {}]  }
   0x1   :  { %v628_v0 = vld [vmem:[%s1108_s1 + $0xe4] ss:$16 sps:$4 sm:$0xff]   ;;  %325 = vmatprep.mubr.bf16.mxu0 %v684_v1  ;;  %438 = vmatprep.mubr.bf16.mxu1 %v684_v1  ;;  %v630_v2 = vld [vmem:[%s1108_s1 + $0xec] ss:$16 sps:$4 sm:$0xff]   ;;  %v632_v3 = vld [vmem:[%s1108_s1 + $0xe0] ss:$16 sps:$4 sm:$0xff]  }
   0x2   :  { %293 = vmatprep.subr.bf16.mxu0 %v628_v0  ;;  %v633_v4 = vld [vmem:[%s1108_s1 + $0xe8] ss:$16 sps:$4 sm:$0xff]   ;;  %406 = vmatprep.subr.bf16.mxu1 %v630_v2  ;;  %v634_v5 = vld [vmem:[%s1108_s1 + $0xc4] ss:$16 sps:$4 sm:$0xff]   ;;  %v636_v6 = vld [vmem:[%s1108_s1 + $0xcc] ss:$16 sps:$4 sm:$0xff]  }
   0x3   :  { %294 = vmatpush1.bf16.msra.mxu0 %v632_v3  ;;  %407 = vmatpush1.bf16.msra.mxu1 %v633_v4  ;;  %v638_v7 = vld [vmem:[%s1108_s1 + $0xc0] ss:$16 sps:$4 sm:$0xff]   ;;  %v639_v8 = vld [vmem:[%s1108_s1 + $0xc8] ss:$16 sps:$4 sm:$0xff]   ;;  %v640_v9 = vld [vmem:[%s1108_s1 + $0xa4] ss:$16 sps:$4 sm:$0xff]  }
   0x4   :  { %295 = vmatprep.subr.bf16.mxu0 %v634_v5  ;;  %408 = vmatprep.subr.bf16.mxu1 %v636_v6  ;;  %v642_v10 = vld [vmem:[%s1108_s1 + $0xac] ss:$16 sps:$4 sm:$0xff]   ;;  %v644_v11 = vld [vmem:[%s1108_s1 + $0xa0] ss:$16 sps:$4 sm:$0xff]   ;;  %v645_v12 = vld [vmem:[%s1108_s1 + $0xa8] ss:$16 sps:$4 sm:$0xff]  }
   0x5   :  { %v646_v13 = vld [vmem:[%s1108_s1 + $0x84] ss:$16 sps:$4 sm:$0xff]   ;;  %v648_v14 = vld [vmem:[%s1108_s1 + $0x8c] ss:$16 sps:$4 sm:$0xff]   ;;  %v650_v15 = vld [vmem:[%s1108_s1 + $0x80] ss:$16 sps:$4 sm:$0xff]  }
   0x6   :  { %v651_v16 = vld [vmem:[%s1108_s1 + $0x88] ss:$16 sps:$4 sm:$0xff]   ;;  %v652_v17 = vld [vmem:[%s1108_s1 + $0x64] ss:$16 sps:$4 sm:$0xff]   ;;  %v654_v18 = vld [vmem:[%s1108_s1 + $0x6c] ss:$16 sps:$4 sm:$0xff]  }
   0x7   :  { %296 = vmatpush1.bf16.msra.mxu0 %v638_v7  ;;  %409 = vmatpush1.bf16.msra.mxu1 %v639_v8  ;;  %v656_v19 = vld [vmem:[%s1108_s1 + $0x60] ss:$16 sps:$4 sm:$0xff]   ;;  %v657_v20 = vld [vmem:[%s1108_s1 + $0x68] ss:$16 sps:$4 sm:$0xff]   ;;  %v658_v21 = vld [vmem:[%s1108_s1 + $0x44] ss:$16 sps:$4 sm:$0xff]  }
   0x8   :  { %297 = vmatprep.subr.bf16.mxu0 %v640_v9  ;;  %410 = vmatprep.subr.bf16.mxu1 %v642_v10  ;;  %v660_v22 = vld [vmem:[%s1108_s1 + $0x4c] ss:$16 sps:$4 sm:$0xff]   ;;  %v662_v23 = vld [vmem:[%s1108_s1 + $0x40] ss:$16 sps:$4 sm:$0xff]   ;;  %v663_v24 = vld [vmem:[%s1108_s1 + $0x48] ss:$16 sps:$4 sm:$0xff]  }
   0x9   :  { %v664_v25 = vld [vmem:[%s1108_s1 + $0x24] ss:$16 sps:$4 sm:$0xff]   ;;  %v666_v26 = vld [vmem:[%s1108_s1 + $0x2c] ss:$16 sps:$4 sm:$0xff]   ;;  %v668_v27 = vld [vmem:[%s1108_s1 + $0x20] ss:$16 sps:$4 sm:$0xff]  }
   0xa   :  { %v669_v28 = vld [vmem:[%s1108_s1 + $0x28] ss:$16 sps:$4 sm:$0xff]   ;;  %v670_v29 = vld [vmem:[%s1108_s1 + $0x4] ss:$16 sps:$4 sm:$0xff]   ;;  %v672_v30 = vld [vmem:[%s1108_s1 + $0xc] ss:$16 sps:$4 sm:$0xff]  }
   0xb   :  { %298 = vmatpush1.bf16.msra.mxu0 %v644_v11  ;;  %411 = vmatpush1.bf16.msra.mxu1 %v645_v12  ;;  %v674_v31 = vld [vmem:[%s1108_s1] ss:$16 sps:$4 sm:$0xff]   ;;  %v675_v32 = vld [vmem:[%s1108_s1 + $0x8] ss:$16 sps:$4 sm:$0xff]   ;;  %v66_v42 = vshrl.u32 %v65_v41, 7 }
   0xc   :  { %299 = vmatprep.subr.bf16.mxu0 %v646_v13  ;;  %412 = vmatprep.subr.bf16.mxu1 %v648_v14  ;;  %v676_v33 = vld [vmem:[%s1109_s0] sm:$0xff]   ;;  %v677_v34 = vld [vmem:[%s1109_s0 + $0x8] sm:$0xff]   ;;  %v678_v35 = vld [vmem:[%s1109_s0 + $0x10] sm:$0xff]  }
   0xd   :  { %v679_v36 = vld [vmem:[%s1109_s0 + $0x18] sm:$0xff]   ;;  %v680_v37 = vld [vmem:[%s1109_s0 + $0x20] sm:$0xff]   ;;  %v681_v38 = vld [vmem:[%s1109_s0 + $0x28] sm:$0xff]   ;;  %v67_v43 = vsub.s32 0, %v66_v42  ;;  %v75_v44 = vsub.s32 2, %v66_v42  ;;  %v71_v46 = vsub.s32 1, %v66_v42 }
   0xe   :  { %v682_v39 = vld [vmem:[%s1109_s0 + $0x30] sm:$0xff]   ;;  %v683_v40 = vld [vmem:[%s1109_s0 + $0x38] sm:$0xff]   ;;  %v63_v45 = vld [vmem:[%s1110_s2] sm:$0xf]  ;;  %v79_v47 = vsub.s32 3, %v66_v42 }
   0xf   :  { %300 = vmatpush1.bf16.msra.mxu0 %v650_v15  ;;  %413 = vmatpush1.bf16.msra.mxu1 %v651_v16  ;;  %v844_v48 = vrot.slane %v63_v45, %v67_v43  ;;  %v846_v49 = vrot.slane %v63_v45, %v75_v44  ;;  %v848_v50 = vrot.slane %v63_v45, %v71_v46 }
  0x10   :  { %301 = vmatprep.subr.bf16.mxu0 %v652_v17  ;;  %414 = vmatprep.subr.bf16.mxu1 %v654_v18  ;;  %v850_v51 = vrot.slane %v63_v45, %v79_v47 }
  0x13   :  { %302 = vmatpush1.bf16.msra.mxu0 %v656_v19  ;;  %415 = vmatpush1.bf16.msra.mxu1 %v657_v20 }
  0x14   :  { %303 = vmatprep.subr.bf16.mxu0 %v658_v21  ;;  %416 = vmatprep.subr.bf16.mxu1 %v660_v22 }
  0x17   :  { %304 = vmatpush1.bf16.msra.mxu0 %v662_v23  ;;  %417 = vmatpush1.bf16.msra.mxu1 %v663_v24 }
  0x18   :  { %305 = vmatprep.subr.bf16.mxu0 %v664_v25  ;;  %418 = vmatprep.subr.bf16.mxu1 %v666_v26 }
  0x1b   :  { %306 = vmatpush1.bf16.msra.mxu0 %v668_v27  ;;  %419 = vmatpush1.bf16.msra.mxu1 %v669_v28 }
  0x1c   :  { %307 = vmatprep.subr.bf16.mxu0 %v670_v29  ;;  %420 = vmatprep.subr.bf16.mxu1 %v672_v30 }
  0x1f   :  { %308 = vmatpush1.bf16.msra.mxu0 %v674_v31  ;;  %421 = vmatpush1.bf16.msra.mxu1 %v675_v32 }
  0x22   :  { %326 = vmatmul.mubr.bf16.vlgmr.msra.gmra.mxu0 %v676_v33  ;;  %439 = vmatmul.mubr.bf16.vlgmr.msra.gmra.mxu1 %v676_v33 }
  0x23   :  { %335 = vmatprep.mubr.bf16.mxu0 %v684_v1  ;;  %448 = vmatprep.mubr.bf16.mxu1 %v684_v1 }
  0x2a   :  { %336 = vmatmul.mubr.bf16.gmra.mxu0 %v677_v34  ;;  %449 = vmatmul.mubr.bf16.gmra.mxu1 %v677_v34 }
  0x2b   :  { %345 = vmatprep.mubr.bf16.mxu0 %v684_v1  ;;  %458 = vmatprep.mubr.bf16.mxu1 %v684_v1 }
  0x32   :  { %346 = vmatmul.mubr.bf16.gmra.mxu0 %v678_v35  ;;  %459 = vmatmul.mubr.bf16.gmra.mxu1 %v678_v35 }
  0x33   :  { %355 = vmatprep.mubr.bf16.mxu0 %v684_v1  ;;  %468 = vmatprep.mubr.bf16.mxu1 %v684_v1 }
  0x3a   :  { %356 = vmatmul.mubr.bf16.gmra.mxu0 %v679_v36  ;;  %469 = vmatmul.mubr.bf16.gmra.mxu1 %v679_v36 }
  0x3b   :  { %365 = vmatprep.mubr.bf16.mxu0 %v684_v1  ;;  %478 = vmatprep.mubr.bf16.mxu1 %v684_v1 }
  0x42   :  { %366 = vmatmul.mubr.bf16.gmra.mxu0 %v680_v37  ;;  %479 = vmatmul.mubr.bf16.gmra.mxu1 %v680_v37 }
  0x43   :  { %375 = vmatprep.mubr.bf16.mxu0 %v684_v1  ;;  %488 = vmatprep.mubr.bf16.mxu1 %v684_v1 }
  0x4a   :  { %376 = vmatmul.mubr.bf16.gmra.mxu0 %v681_v38  ;;  %489 = vmatmul.mubr.bf16.gmra.mxu1 %v681_v38 }
  0x4b   :  { %385 = vmatprep.mubr.bf16.mxu0 %v684_v1  ;;  %498 = vmatprep.mubr.bf16.mxu1 %v684_v1 }
  0x52   :  { %386 = vmatmul.mubr.bf16.gmra.mxu0 %v682_v39  ;;  %499 = vmatmul.mubr.bf16.gmra.mxu1 %v682_v39 }
  0x53   :  { %395 = vmatprep.mubr.bf16.mxu0 %v684_v1  ;;  %508 = vmatprep.mubr.bf16.mxu1 %v684_v1 }
  0x5a   :  { %396 = vmatmul.mubr.bf16.gmra.mxu0 %v683_v40  ;;  %509 = vmatmul.mubr.bf16.gmra.mxu1 %v683_v40 }
  0xe2   :  { %v327_v52 = vpop.f32.mrf.mxu0  ;;  %v440_v53 = vpop.f32.mrf.mxu1 }
  0xe3   :  { %v328_v54 = vadd.f32 %v327_v52, %v844_v48  ;;  %v441_v55 = vadd.f32 %v440_v53, %v846_v49 }
  0xe4   :  { %v329_v56 = vpop.f32.mrf.mxu0  ;;  %v442_v57 = vpop.f32.mrf.mxu1 }
  0xe5   :  { %519 = vst [vmem:[%s1111_s3] sm:$0xff] %v328_v54  ;;  %521 = vst [vmem:[%s1111_s3 + $0x10] sm:$0xff] %v441_v55  ;;  %v330_v58 = vadd.f32 %v329_v56, %v848_v50  ;;  %v443_v59 = vadd.f32 %v442_v57, %v850_v51 }
  0xe6   :  { %v331_v60 = vpop.f32.mrf.mxu0  ;;  %v444_v61 = vpop.f32.mrf.mxu1 }
  0xe7   :  { %520 = vst [vmem:[%s1111_s3 + $0x8] sm:$0xff] %v330_v58  ;;  %522 = vst [vmem:[%s1111_s3 + $0x18] sm:$0xff] %v443_v59  ;;  %v332_v62 = vadd.f32 %v331_v60, %v844_v48  ;;  %v445_v63 = vadd.f32 %v444_v61, %v846_v49 }
  0xe8   :  { %v333_v0 = vpop.f32.mrf.mxu0  ;;  %v446_v1 = vpop.f32.mrf.mxu1 }
  0xe9   :  { %523 = vst [vmem:[%s1111_s3 + $0x20] sm:$0xff] %v332_v62  ;;  %525 = vst [vmem:[%s1111_s3 + $0x30] sm:$0xff] %v445_v63  ;;  %v334_v2 = vadd.f32 %v333_v0, %v848_v50  ;;  %v447_v3 = vadd.f32 %v446_v1, %v850_v51 }
  0xea   :  { %v337_v4 = vpop.f32.mrf.mxu0  ;;  %v450_v5 = vpop.f32.mrf.mxu1 }
  0xeb   :  { %524 = vst [vmem:[%s1111_s3 + $0x28] sm:$0xff] %v334_v2  ;;  %526 = vst [vmem:[%s1111_s3 + $0x38] sm:$0xff] %v447_v3  ;;  %v338_v6 = vadd.f32 %v337_v4, %v844_v48  ;;  %v451_v7 = vadd.f32 %v450_v5, %v846_v49 }
  0xec   :  { %v339_v8 = vpop.f32.mrf.mxu0  ;;  %v452_v9 = vpop.f32.mrf.mxu1 }
  0xed   :  { %527 = vst [vmem:[%s1111_s3 + $0x40] sm:$0xff] %v338_v6  ;;  %529 = vst [vmem:[%s1111_s3 + $0x50] sm:$0xff] %v451_v7  ;;  %v340_v10 = vadd.f32 %v339_v8, %v848_v50  ;;  %v453_v11 = vadd.f32 %v452_v9, %v850_v51 }
  0xee   :  { %v341_v12 = vpop.f32.mrf.mxu0  ;;  %v454_v13 = vpop.f32.mrf.mxu1 }
  0xef   :  { %528 = vst [vmem:[%s1111_s3 + $0x48] sm:$0xff] %v340_v10  ;;  %530 = vst [vmem:[%s1111_s3 + $0x58] sm:$0xff] %v453_v11  ;;  %v342_v14 = vadd.f32 %v341_v12, %v844_v48  ;;  %v455_v15 = vadd.f32 %v454_v13, %v846_v49 }
  0xf0   :  { %v343_v16 = vpop.f32.mrf.mxu0  ;;  %v456_v17 = vpop.f32.mrf.mxu1 }
  0xf1   :  { %531 = vst [vmem:[%s1111_s3 + $0x60] sm:$0xff] %v342_v14  ;;  %533 = vst [vmem:[%s1111_s3 + $0x70] sm:$0xff] %v455_v15  ;;  %v344_v18 = vadd.f32 %v343_v16, %v848_v50  ;;  %v457_v19 = vadd.f32 %v456_v17, %v850_v51 }
  0xf2   :  { %v347_v20 = vpop.f32.mrf.mxu0  ;;  %v460_v21 = vpop.f32.mrf.mxu1 }
  0xf3   :  { %532 = vst [vmem:[%s1111_s3 + $0x68] sm:$0xff] %v344_v18  ;;  %534 = vst [vmem:[%s1111_s3 + $0x78] sm:$0xff] %v457_v19  ;;  %v348_v22 = vadd.f32 %v347_v20, %v844_v48  ;;  %v461_v23 = vadd.f32 %v460_v21, %v846_v49 }
  0xf4   :  { %v349_v24 = vpop.f32.mrf.mxu0  ;;  %v462_v25 = vpop.f32.mrf.mxu1 }
  0xf5   :  { %535 = vst [vmem:[%s1111_s3 + $0x80] sm:$0xff] %v348_v22  ;;  %537 = vst [vmem:[%s1111_s3 + $0x90] sm:$0xff] %v461_v23  ;;  %v350_v26 = vadd.f32 %v349_v24, %v848_v50  ;;  %v463_v27 = vadd.f32 %v462_v25, %v850_v51 }
  0xf6   :  { %v351_v28 = vpop.f32.mrf.mxu0  ;;  %v464_v29 = vpop.f32.mrf.mxu1 }
  0xf7   :  { %536 = vst [vmem:[%s1111_s3 + $0x88] sm:$0xff] %v350_v26  ;;  %538 = vst [vmem:[%s1111_s3 + $0x98] sm:$0xff] %v463_v27  ;;  %v352_v30 = vadd.f32 %v351_v28, %v844_v48  ;;  %v465_v31 = vadd.f32 %v464_v29, %v846_v49 }
  0xf8   :  { %v353_v32 = vpop.f32.mrf.mxu0  ;;  %v466_v33 = vpop.f32.mrf.mxu1 }
  0xf9   :  { %539 = vst [vmem:[%s1111_s3 + $0xa0] sm:$0xff] %v352_v30  ;;  %541 = vst [vmem:[%s1111_s3 + $0xb0] sm:$0xff] %v465_v31  ;;  %v354_v34 = vadd.f32 %v353_v32, %v848_v50  ;;  %v467_v35 = vadd.f32 %v466_v33, %v850_v51 }
  0xfa   :  { %v357_v36 = vpop.f32.mrf.mxu0  ;;  %v470_v37 = vpop.f32.mrf.mxu1 }
  0xfb   :  { %540 = vst [vmem:[%s1111_s3 + $0xa8] sm:$0xff] %v354_v34  ;;  %542 = vst [vmem:[%s1111_s3 + $0xb8] sm:$0xff] %v467_v35  ;;  %v358_v38 = vadd.f32 %v357_v36, %v844_v48  ;;  %v471_v39 = vadd.f32 %v470_v37, %v846_v49 }
  0xfc   :  { %v359_v40 = vpop.f32.mrf.mxu0  ;;  %v472_v41 = vpop.f32.mrf.mxu1 }
  0xfd   :  { %543 = vst [vmem:[%s1111_s3 + $0xc0] sm:$0xff] %v358_v38  ;;  %545 = vst [vmem:[%s1111_s3 + $0xd0] sm:$0xff] %v471_v39  ;;  %v360_v42 = vadd.f32 %v359_v40, %v848_v50  ;;  %v473_v43 = vadd.f32 %v472_v41, %v850_v51 }
  0xfe   :  { %v361_v44 = vpop.f32.mrf.mxu0  ;;  %v474_v45 = vpop.f32.mrf.mxu1 }
  0xff   :  { %544 = vst [vmem:[%s1111_s3 + $0xc8] sm:$0xff] %v360_v42  ;;  %546 = vst [vmem:[%s1111_s3 + $0xd8] sm:$0xff] %v473_v43  ;;  %v362_v46 = vadd.f32 %v361_v44, %v844_v48  ;;  %v475_v47 = vadd.f32 %v474_v45, %v846_v49 }
 0x100   :  { %v363_v52 = vpop.f32.mrf.mxu0  ;;  %v476_v53 = vpop.f32.mrf.mxu1 }
 0x101   :  { %547 = vst [vmem:[%s1111_s3 + $0xe0] sm:$0xff] %v362_v46  ;;  %549 = vst [vmem:[%s1111_s3 + $0xf0] sm:$0xff] %v475_v47  ;;  %v364_v54 = vadd.f32 %v363_v52, %v848_v50  ;;  %v477_v55 = vadd.f32 %v476_v53, %v850_v51 }
 0x102   :  { %v367_v56 = vpop.f32.mrf.mxu0  ;;  %v480_v57 = vpop.f32.mrf.mxu1 }
 0x103   :  { %548 = vst [vmem:[%s1111_s3 + $0xe8] sm:$0xff] %v364_v54  ;;  %550 = vst [vmem:[%s1111_s3 + $0xf8] sm:$0xff] %v477_v55  ;;  %v368_v58 = vadd.f32 %v367_v56, %v844_v48  ;;  %v481_v59 = vadd.f32 %v480_v57, %v846_v49 }
 0x104   :  { %v369_v60 = vpop.f32.mrf.mxu0  ;;  %v482_v61 = vpop.f32.mrf.mxu1 }
 0x105   :  { %551 = vst [vmem:[%s1111_s3 + $0x100] sm:$0xff] %v368_v58  ;;  %553 = vst [vmem:[%s1111_s3 + $0x110] sm:$0xff] %v481_v59  ;;  %v370_v62 = vadd.f32 %v369_v60, %v848_v50  ;;  %v483_v63 = vadd.f32 %v482_v61, %v850_v51 }
 0x106   :  { %v371_v0 = vpop.f32.mrf.mxu0  ;;  %v484_v1 = vpop.f32.mrf.mxu1 }
 0x107   :  { %552 = vst [vmem:[%s1111_s3 + $0x108] sm:$0xff] %v370_v62  ;;  %554 = vst [vmem:[%s1111_s3 + $0x118] sm:$0xff] %v483_v63  ;;  %v372_v2 = vadd.f32 %v371_v0, %v844_v48  ;;  %v485_v3 = vadd.f32 %v484_v1, %v846_v49 }
 0x108   :  { %v373_v4 = vpop.f32.mrf.mxu0  ;;  %v486_v5 = vpop.f32.mrf.mxu1 }
 0x109   :  { %555 = vst [vmem:[%s1111_s3 + $0x120] sm:$0xff] %v372_v2  ;;  %557 = vst [vmem:[%s1111_s3 + $0x130] sm:$0xff] %v485_v3  ;;  %v374_v6 = vadd.f32 %v373_v4, %v848_v50  ;;  %v487_v7 = vadd.f32 %v486_v5, %v850_v51 }
 0x10a   :  { %v377_v8 = vpop.f32.mrf.mxu0  ;;  %v490_v9 = vpop.f32.mrf.mxu1 }
 0x10b   :  { %556 = vst [vmem:[%s1111_s3 + $0x128] sm:$0xff] %v374_v6  ;;  %558 = vst [vmem:[%s1111_s3 + $0x138] sm:$0xff] %v487_v7  ;;  %v378_v10 = vadd.f32 %v377_v8, %v844_v48  ;;  %v491_v11 = vadd.f32 %v490_v9, %v846_v49 }
 0x10c   :  { %v379_v12 = vpop.f32.mrf.mxu0  ;;  %v492_v13 = vpop.f32.mrf.mxu1 }
 0x10d   :  { %559 = vst [vmem:[%s1111_s3 + $0x140] sm:$0xff] %v378_v10  ;;  %561 = vst [vmem:[%s1111_s3 + $0x150] sm:$0xff] %v491_v11  ;;  %v380_v14 = vadd.f32 %v379_v12, %v848_v50  ;;  %v493_v15 = vadd.f32 %v492_v13, %v850_v51 }
 0x10e   :  { %v381_v16 = vpop.f32.mrf.mxu0  ;;  %v494_v17 = vpop.f32.mrf.mxu1 }
 0x10f   :  { %560 = vst [vmem:[%s1111_s3 + $0x148] sm:$0xff] %v380_v14  ;;  %562 = vst [vmem:[%s1111_s3 + $0x158] sm:$0xff] %v493_v15  ;;  %v382_v18 = vadd.f32 %v381_v16, %v844_v48  ;;  %v495_v19 = vadd.f32 %v494_v17, %v846_v49 }
 0x110   :  { %v383_v20 = vpop.f32.mrf.mxu0  ;;  %v496_v21 = vpop.f32.mrf.mxu1 }
 0x111   :  { %563 = vst [vmem:[%s1111_s3 + $0x160] sm:$0xff] %v382_v18  ;;  %565 = vst [vmem:[%s1111_s3 + $0x170] sm:$0xff] %v495_v19  ;;  %v384_v22 = vadd.f32 %v383_v20, %v848_v50  ;;  %v497_v23 = vadd.f32 %v496_v21, %v850_v51 }
 0x112   :  { %v387_v24 = vpop.f32.mrf.mxu0  ;;  %v500_v25 = vpop.f32.mrf.mxu1 }
 0x113   :  { %564 = vst [vmem:[%s1111_s3 + $0x168] sm:$0xff] %v384_v22  ;;  %566 = vst [vmem:[%s1111_s3 + $0x178] sm:$0xff] %v497_v23  ;;  %v388_v26 = vadd.f32 %v387_v24, %v844_v48  ;;  %v501_v27 = vadd.f32 %v500_v25, %v846_v49 }
 0x114   :  { %v389_v28 = vpop.f32.mrf.mxu0  ;;  %v502_v29 = vpop.f32.mrf.mxu1 }
 0x115   :  { %567 = vst [vmem:[%s1111_s3 + $0x180] sm:$0xff] %v388_v26  ;;  %569 = vst [vmem:[%s1111_s3 + $0x190] sm:$0xff] %v501_v27  ;;  %v390_v30 = vadd.f32 %v389_v28, %v848_v50  ;;  %v503_v31 = vadd.f32 %v502_v29, %v850_v51 }
 0x116   :  { %v391_v32 = vpop.f32.mrf.mxu0  ;;  %v504_v33 = vpop.f32.mrf.mxu1 }
 0x117   :  { %568 = vst [vmem:[%s1111_s3 + $0x188] sm:$0xff] %v390_v30  ;;  %570 = vst [vmem:[%s1111_s3 + $0x198] sm:$0xff] %v503_v31  ;;  %v392_v34 = vadd.f32 %v391_v32, %v844_v48  ;;  %v505_v35 = vadd.f32 %v504_v33, %v846_v49 }
 0x118   :  { %v393_v36 = vpop.f32.mrf.mxu0  ;;  %v506_v37 = vpop.f32.mrf.mxu1 }
 0x119   :  { %571 = vst [vmem:[%s1111_s3 + $0x1a0] sm:$0xff] %v392_v34  ;;  %573 = vst [vmem:[%s1111_s3 + $0x1b0] sm:$0xff] %v505_v35  ;;  %v394_v38 = vadd.f32 %v393_v36, %v848_v50  ;;  %v507_v39 = vadd.f32 %v506_v37, %v850_v51 }
 0x11a   :  { %v397_v40 = vpop.f32.mrf.mxu0  ;;  %v510_v41 = vpop.f32.mrf.mxu1 }
 0x11b   :  { %572 = vst [vmem:[%s1111_s3 + $0x1a8] sm:$0xff] %v394_v38  ;;  %574 = vst [vmem:[%s1111_s3 + $0x1b8] sm:$0xff] %v507_v39  ;;  %v398_v42 = vadd.f32 %v397_v40, %v844_v48  ;;  %v511_v43 = vadd.f32 %v510_v41, %v846_v49 }
 0x11c   :  { %v399_v44 = vpop.f32.mrf.mxu0  ;;  %v512_v45 = vpop.f32.mrf.mxu1 }
 0x11d   :  { %575 = vst [vmem:[%s1111_s3 + $0x1c0] sm:$0xff] %v398_v42  ;;  %577 = vst [vmem:[%s1111_s3 + $0x1d0] sm:$0xff] %v511_v43  ;;  %v400_v46 = vadd.f32 %v399_v44, %v848_v50  ;;  %v513_v47 = vadd.f32 %v512_v45, %v850_v51 }
 0x11e   :  { %v401_v52 = vpop.f32.mrf.mxu0  ;;  %v514_v53 = vpop.f32.mrf.mxu1 }
 0x11f   :  { %576 = vst [vmem:[%s1111_s3 + $0x1c8] sm:$0xff] %v400_v46  ;;  %578 = vst [vmem:[%s1111_s3 + $0x1d8] sm:$0xff] %v513_v47  ;;  %v402_v54 = vadd.f32 %v401_v52, %v844_v48  ;;  %v515_v55 = vadd.f32 %v514_v53, %v846_v49 }
 0x120   :  { %v403_v56 = vpop.f32.mrf.mxu0  ;;  %v516_v57 = vpop.f32.mrf.mxu1 }
 0x121   :  { %579 = vst [vmem:[%s1111_s3 + $0x1e0] sm:$0xff] %v402_v54  ;;  %581 = vst [vmem:[%s1111_s3 + $0x1f0] sm:$0xff] %v515_v55  ;;  %v404_v58 = vadd.f32 %v403_v56, %v848_v50  ;;  %v517_v59 = vadd.f32 %v516_v57, %v850_v51 }
 0x123   :  { %580 = vst [vmem:[%s1111_s3 + $0x1e8] sm:$0xff] %v404_v58  ;;  %582 = vst [vmem:[%s1111_s3 + $0x1f8] sm:$0xff] %v517_v59 }

// kernel: decoder_rnn_forward.5
= control target key start
LH: loop header
LB: loop body
LE: loop exit
PB: predicated region body
PF: predicated region fallthrough
CT: control target
= control target key end

     0   :  { %v1774_v1 = vmov 0   ;;  %v65_v45 = vlaneseq  ;;  %v1775_v55 = vmov 1983009808   ;;  %v1776_v59 = vmov 1934713408   ;;  %s2758_s1 = inlined_call_operand.vmem [shape: bf16[128,512], index: 1, kind: input, shape index: {}]   ;;  %s2759_s0 = inlined_call_operand.vmem [shape: bf16[8,16,128], index: 0, kind: input, shape index: {}]   ;;  %s2760_s2 = inlined_call_operand.vmem [shape: f32[1,512], index: 2, kind: input, shape index: {}]   ;;  %s2761_s3 = inlined_call_operand.vmem [shape: f32[16,8,512], index: 3, kind: output, shape index: {}]  }
   0x1   :  { %v1718_v0 = vld [vmem:[%s2758_s1 + $0xe4] ss:$16 sps:$4 sm:$0xff]   ;;  %325 = vmatprep.mubr.bf16.mxu0 %v1774_v1  ;;  %438 = vmatprep.mubr.bf16.mxu1 %v1774_v1  ;;  %v1720_v2 = vld [vmem:[%s2758_s1 + $0xec] ss:$16 sps:$4 sm:$0xff]   ;;  %v1722_v3 = vld [vmem:[%s2758_s1 + $0xe0] ss:$16 sps:$4 sm:$0xff]   ;;  %v522_v56 = vunpack.c.l.s4 %v1775_v55  ;;  %v586_v60 = vunpack.c.l.s4 %v1776_v59 }
   0x2   :  { %293 = vmatprep.subr.bf16.mxu0 %v1718_v0  ;;  %v1723_v4 = vld [vmem:[%s2758_s1 + $0xe8] ss:$16 sps:$4 sm:$0xff]   ;;  %406 = vmatprep.subr.bf16.mxu1 %v1720_v2  ;;  %v1724_v5 = vld [vmem:[%s2758_s1 + $0xc4] ss:$16 sps:$4 sm:$0xff]   ;;  %v1726_v6 = vld [vmem:[%s2758_s1 + $0xcc] ss:$16 sps:$4 sm:$0xff]  }
   0x3   :  { %294 = vmatpush1.bf16.msra.mxu0 %v1722_v3  ;;  %407 = vmatpush1.bf16.msra.mxu1 %v1723_v4  ;;  %v1728_v7 = vld [vmem:[%s2758_s1 + $0xc0] ss:$16 sps:$4 sm:$0xff]   ;;  %v1729_v8 = vld [vmem:[%s2758_s1 + $0xc8] ss:$16 sps:$4 sm:$0xff]   ;;  %v1730_v9 = vld [vmem:[%s2758_s1 + $0xa4] ss:$16 sps:$4 sm:$0xff]   ;;  %v523_v4 = vunpack.c.0.s8 %v522_v56 }
   0x4   :  { %295 = vmatprep.subr.bf16.mxu0 %v1724_v5  ;;  %408 = vmatprep.subr.bf16.mxu1 %v1726_v6  ;;  %v1732_v10 = vld [vmem:[%s2758_s1 + $0xac] ss:$16 sps:$4 sm:$0xff]   ;;  %v1734_v11 = vld [vmem:[%s2758_s1 + $0xa0] ss:$16 sps:$4 sm:$0xff]   ;;  %v1735_v12 = vld [vmem:[%s2758_s1 + $0xa8] ss:$16 sps:$4 sm:$0xff]  }
   0x5   :  { %v1736_v13 = vld [vmem:[%s2758_s1 + $0x84] ss:$16 sps:$4 sm:$0xff]   ;;  %v1738_v14 = vld [vmem:[%s2758_s1 + $0x8c] ss:$16 sps:$4 sm:$0xff]   ;;  %v1740_v15 = vld [vmem:[%s2758_s1 + $0x80] ss:$16 sps:$4 sm:$0xff]  }
   0x6   :  { %v1741_v16 = vld [vmem:[%s2758_s1 + $0x88] ss:$16 sps:$4 sm:$0xff]   ;;  %v1742_v17 = vld [vmem:[%s2758_s1 + $0x64] ss:$16 sps:$4 sm:$0xff]   ;;  %v1744_v18 = vld [vmem:[%s2758_s1 + $0x6c] ss:$16 sps:$4 sm:$0xff]  }
   0x7   :  { %296 = vmatpush1.bf16.msra.mxu0 %v1728_v7  ;;  %409 = vmatpush1.bf16.msra.mxu1 %v1729_v8  ;;  %v1746_v19 = vld [vmem:[%s2758_s1 + $0x60] ss:$16 sps:$4 sm:$0xff]   ;;  %v1747_v20 = vld [vmem:[%s2758_s1 + $0x68] ss:$16 sps:$4 sm:$0xff]   ;;  %v1748_v21 = vld [vmem:[%s2758_s1 + $0x44] ss:$16 sps:$4 sm:$0xff]   ;;  %v587_v7 = vunpack.c.0.s8 %v586_v60 }
   0x8   :  { %297 = vmatprep.subr.bf16.mxu0 %v1730_v9  ;;  %410 = vmatprep.subr.bf16.mxu1 %v1732_v10  ;;  %v1750_v22 = vld [vmem:[%s2758_s1 + $0x4c] ss:$16 sps:$4 sm:$0xff]   ;;  %v1752_v23 = vld [vmem:[%s2758_s1 + $0x40] ss:$16 sps:$4 sm:$0xff]   ;;  %v1753_v24 = vld [vmem:[%s2758_s1 + $0x48] ss:$16 sps:$4 sm:$0xff]  }
   0x9   :  { %v1754_v25 = vld [vmem:[%s2758_s1 + $0x24] ss:$16 sps:$4 sm:$0xff]   ;;  %v1756_v26 = vld [vmem:[%s2758_s1 + $0x2c] ss:$16 sps:$4 sm:$0xff]   ;;  %v1758_v27 = vld [vmem:[%s2758_s1 + $0x20] ss:$16 sps:$4 sm:$0xff]  }
   0xa   :  { %v1759_v28 = vld [vmem:[%s2758_s1 + $0x28] ss:$16 sps:$4 sm:$0xff]   ;;  %v1760_v29 = vld [vmem:[%s2758_s1 + $0x4] ss:$16 sps:$4 sm:$0xff]   ;;  %v1762_v30 = vld [vmem:[%s2758_s1 + $0xc] ss:$16 sps:$4 sm:$0xff]  }
   0xb   :  { %298 = vmatpush1.bf16.msra.mxu0 %v1734_v11  ;;  %411 = vmatpush1.bf16.msra.mxu1 %v1735_v12  ;;  %v1764_v31 = vld [vmem:[%s2758_s1] ss:$16 sps:$4 sm:$0xff]   ;;  %v1765_v32 = vld [vmem:[%s2758_s1 + $0x8] ss:$16 sps:$4 sm:$0xff]   ;;  %v66_v50 = vshrl.u32 %v65_v45, 7 }
   0xc   :  { %299 = vmatprep.subr.bf16.mxu0 %v1736_v13  ;;  %412 = vmatprep.subr.bf16.mxu1 %v1738_v14  ;;  %v1766_v33 = vld [vmem:[%s2759_s0] sm:$0xff]   ;;  %v1767_v34 = vld [vmem:[%s2759_s0 + $0x8] sm:$0xff]   ;;  %v1768_v35 = vld [vmem:[%s2759_s0 + $0x10] sm:$0xff]  }
   0xd   :  { %v1769_v36 = vld [vmem:[%s2759_s0 + $0x18] sm:$0xff]   ;;  %v1770_v37 = vld [vmem:[%s2759_s0 + $0x20] sm:$0xff]   ;;  %v1771_v38 = vld [vmem:[%s2759_s0 + $0x28] sm:$0xff]   ;;  %v67_v57 = vsub.s32 0, %v66_v50  ;;  %v75_v58 = vsub.s32 2, %v66_v50  ;;  %v71_v62 = vsub.s32 1, %v66_v50  ;;  %v1945_v13 = vsub.s32 %v523_v4, %v66_v50 }
   0xe   :  { %v1772_v39 = vld [vmem:[%s2759_s0 + $0x30] sm:$0xff]   ;;  %v1773_v40 = vld [vmem:[%s2759_s0 + $0x38] sm:$0xff]   ;;  %v63_v61 = vld [vmem:[%s2760_s2] sm:$0xf]  ;;  %v79_v63 = vsub.s32 3, %v66_v50 }
   0xf   :  { %300 = vmatpush1.bf16.msra.mxu0 %v1740_v15  ;;  %413 = vmatpush1.bf16.msra.mxu1 %v1741_v16  ;;  %v1936_v5 = vrot.slane %v63_v61, %v67_v57  ;;  %v1938_v6 = vrot.slane %v63_v61, %v75_v58  ;;  %v1940_v8 = vrot.slane %v63_v61, %v71_v62 }
  0x10   :  { %301 = vmatprep.subr.bf16.mxu0 %v1742_v17  ;;  %414 = vmatprep.subr.bf16.mxu1 %v1744_v18  ;;  %v1942_v9 = vrot.slane %v63_v61, %v79_v63 }
  0x13   :  { %302 = vmatpush1.bf16.msra.mxu0 %v1746_v19  ;;  %415 = vmatpush1.bf16.msra.mxu1 %v1747_v20  ;;  %v1950_v19 = vsub.s32 %v587_v7, %v66_v50 }
  0x14   :  { %303 = vmatprep.subr.bf16.mxu0 %v1748_v21  ;;  %416 = vmatprep.subr.bf16.mxu1 %v1750_v22 }
  0x17   :  { %304 = vmatpush1.bf16.msra.mxu0 %v1752_v23  ;;  %417 = vmatpush1.bf16.msra.mxu1 %v1753_v24 }
  0x18   :  { %305 = vmatprep.subr.bf16.mxu0 %v1754_v25  ;;  %418 = vmatprep.subr.bf16.mxu1 %v1756_v26 }
  0x1b   :  { %306 = vmatpush1.bf16.msra.mxu0 %v1758_v27  ;;  %419 = vmatpush1.bf16.msra.mxu1 %v1759_v28 }
  0x1c   :  { %307 = vmatprep.subr.bf16.mxu0 %v1760_v29  ;;  %420 = vmatprep.subr.bf16.mxu1 %v1762_v30 }
  0x1f   :  { %308 = vmatpush1.bf16.msra.mxu0 %v1764_v31  ;;  %421 = vmatpush1.bf16.msra.mxu1 %v1765_v32 }
  0x22   :  { %326 = vmatmul.mubr.bf16.vlgmr.msra.gmra.mxu0 %v1766_v33  ;;  %439 = vmatmul.mubr.bf16.vlgmr.msra.gmra.mxu1 %v1766_v33 }
  0x23   :  { %335 = vmatprep.mubr.bf16.mxu0 %v1774_v1  ;;  %448 = vmatprep.mubr.bf16.mxu1 %v1774_v1 }
  0x2a   :  { %336 = vmatmul.mubr.bf16.gmra.mxu0 %v1767_v34  ;;  %449 = vmatmul.mubr.bf16.gmra.mxu1 %v1767_v34 }
  0x2b   :  { %345 = vmatprep.mubr.bf16.mxu0 %v1774_v1  ;;  %458 = vmatprep.mubr.bf16.mxu1 %v1774_v1 }
  0x32   :  { %346 = vmatmul.mubr.bf16.gmra.mxu0 %v1768_v35  ;;  %459 = vmatmul.mubr.bf16.gmra.mxu1 %v1768_v35 }
  0x33   :  { %355 = vmatprep.mubr.bf16.mxu0 %v1774_v1  ;;  %468 = vmatprep.mubr.bf16.mxu1 %v1774_v1 }
  0x3a   :  { %356 = vmatmul.mubr.bf16.gmra.mxu0 %v1769_v36  ;;  %469 = vmatmul.mubr.bf16.gmra.mxu1 %v1769_v36 }
  0x3b   :  { %365 = vmatprep.mubr.bf16.mxu0 %v1774_v1  ;;  %478 = vmatprep.mubr.bf16.mxu1 %v1774_v1 }
  0x42   :  { %366 = vmatmul.mubr.bf16.gmra.mxu0 %v1770_v37  ;;  %479 = vmatmul.mubr.bf16.gmra.mxu1 %v1770_v37 }
  0x43   :  { %375 = vmatprep.mubr.bf16.mxu0 %v1774_v1  ;;  %488 = vmatprep.mubr.bf16.mxu1 %v1774_v1 }
  0x4a   :  { %376 = vmatmul.mubr.bf16.gmra.mxu0 %v1771_v38  ;;  %489 = vmatmul.mubr.bf16.gmra.mxu1 %v1771_v38 }
  0x4b   :  { %385 = vmatprep.mubr.bf16.mxu0 %v1774_v1  ;;  %498 = vmatprep.mubr.bf16.mxu1 %v1774_v1 }
  0x52   :  { %386 = vmatmul.mubr.bf16.gmra.mxu0 %v1772_v39  ;;  %499 = vmatmul.mubr.bf16.gmra.mxu1 %v1772_v39 }
  0x53   :  { %395 = vmatprep.mubr.bf16.mxu0 %v1774_v1  ;;  %508 = vmatprep.mubr.bf16.mxu1 %v1774_v1 }
  0x5a   :  { %396 = vmatmul.mubr.bf16.gmra.mxu0 %v1773_v40  ;;  %509 = vmatmul.mubr.bf16.gmra.mxu1 %v1773_v40 }
  0xe2   :  { %v327_v41 = vpop.f32.mrf.mxu0  ;;  %v440_v42 = vpop.f32.mrf.mxu1 }
  0xe3   :  { %v328_v16 = vadd.f32 %v327_v41, %v1936_v5  ;;  %v441_v17 = vadd.f32 %v440_v42, %v1938_v6 }
  0xe4   :  { %v329_v43 = vpop.f32.mrf.mxu0  ;;  %v442_v44 = vpop.f32.mrf.mxu1 }
  0xe5   :  { %v330_v20 = vadd.f32 %v329_v43, %v1940_v8  ;;  %v443_v21 = vadd.f32 %v442_v44, %v1942_v9 }
  0xe6   :  { %v331_v46 = vpop.f32.mrf.mxu0  ;;  %v444_v47 = vpop.f32.mrf.mxu1 }
  0xe7   :  { %v1955_v22 = vadd.f32 %v331_v46, %v1936_v5  ;;  %v1958_v23 = vadd.f32 %v444_v47, %v1938_v6 }
  0xe8   :  { %v333_v48 = vpop.f32.mrf.mxu0  ;;  %v446_v49 = vpop.f32.mrf.mxu1 }
  0xe9   :  { %v1961_v26 = vadd.f32 %v333_v48, %v1940_v8  ;;  %v1964_v27 = vadd.f32 %v446_v49, %v1942_v9 }
  0xea   :  { %v337_v51 = vpop.f32.mrf.mxu0  ;;  %v450_v52 = vpop.f32.mrf.mxu1 }
  0xeb   :  { %v338_v28 = vadd.f32 %v337_v51, %v1936_v5  ;;  %v1969_v30 = vadd.f32 %v450_v52, %v1938_v6 }
  0xec   :  { %v339_v53 = vpop.f32.mrf.mxu0  ;;  %v452_v54 = vpop.f32.mrf.mxu1 }
  0xed   :  { %v1972_v31 = vadd.f32 %v339_v53, %v1940_v8  ;;  %v1975_v32 = vadd.f32 %v452_v54, %v1942_v9 }
  0xee   :  { %v341_v0 = vpop.f32.mrf.mxu0  ;;  %v454_v1 = vpop.f32.mrf.mxu1 }
  0xef   :  { %v1984_v40 = vadd.f32 %v341_v0, %v1936_v5  ;;  %v1987_v41 = vadd.f32 %v454_v1, %v1938_v6 }
  0xf0   :  { %v343_v2 = vpop.f32.mrf.mxu0  ;;  %v456_v3 = vpop.f32.mrf.mxu1 }
  0xf1   :  { %v1991_v46 = vadd.f32 %v343_v2, %v1940_v8  ;;  %v2004_v56 = vadd.f32 %v456_v3, %v1942_v9 }
  0xf2   :  { %v347_v10 = vpop.f32.mrf.mxu0  ;;  %v460_v11 = vpop.f32.mrf.mxu1 }
  0xf3   :  { %v348_v12 = vadd.f32 %v347_v10, %v1936_v5  ;;  %v461_v18 = vadd.f32 %v460_v11, %v1938_v6 }
  0xf4   :  { %v349_v14 = vpop.f32.mrf.mxu0  ;;  %v462_v15 = vpop.f32.mrf.mxu1 }
  0xf5   :  { %v350_v29 = vadd.f32 %v349_v14, %v1940_v8  ;;  %v519_v33 = vcombine.low %v328_v16, %v348_v12  ;;  %v520_v36 = vcombine.high %v328_v16, %v348_v12  ;;  %v1063_v37 = vcombine.low %v441_v17, %v461_v18 }
  0xf6   :  { %v351_v24 = vpop.f32.mrf.mxu0  ;;  %v464_v25 = vpop.f32.mrf.mxu1  ;;  %v1064_v42 = vcombine.high %v441_v17, %v461_v18  ;;  %v463_v43 = vadd.f32 %v462_v15, %v1942_v9 }
  0xf7   :  { %v791_v47 = vcombine.low %v330_v20, %v350_v29  ;;  %v352_v48 = vadd.f32 %v351_v24, %v1936_v5  ;;  %v465_v49 = vadd.f32 %v464_v25, %v1938_v6  ;;  %v2007_v57 = vrot.slane %v519_v33, %v1945_v13 }
  0xf8   :  { %v353_v34 = vpop.f32.mrf.mxu0  ;;  %v466_v35 = vpop.f32.mrf.mxu1  ;;  %v2010_v58 = vrot.slane %v520_v36, %v1945_v13  ;;  %v2013_v59 = vrot.slane %v1063_v37, %v1945_v13  ;;  %v2016_v60 = vrot.slane %v1064_v42, %v1945_v13  ;;  %v792_v61 = vcombine.high %v330_v20, %v350_v29 }
  0xf9   :  { %v1978_v38 = vadd.f32 %v353_v34, %v1940_v8  ;;  %v1981_v39 = vadd.f32 %v466_v35, %v1942_v9  ;;  %v1335_v62 = vcombine.low %v443_v21, %v463_v43  ;;  %v1336_v63 = vcombine.high %v443_v21, %v463_v43 }
  0xfa   :  { %v357_v44 = vpop.f32.mrf.mxu0  ;;  %v470_v45 = vpop.f32.mrf.mxu1  ;;  %v655_v2 = vcombine.low %v1955_v22, %v352_v48  ;;  %v2023_v10 = vrot.slane %v791_v47, %v1945_v13  ;;  %v656_v11 = vcombine.high %v1955_v22, %v352_v48  ;;  %v1199_v12 = vcombine.low %v1958_v23, %v465_v49 }
  0xfb   :  { %v927_v50 = vcombine.low %v1961_v26, %v1978_v38  ;;  %v928_v51 = vcombine.high %v1961_v26, %v1978_v38  ;;  %v1471_v52 = vcombine.low %v1964_v27, %v1981_v39  ;;  %v1472_v53 = vcombine.high %v1964_v27, %v1981_v39 }
  0xfc   :  { %v359_v54 = vpop.f32.mrf.mxu0  ;;  %v472_v55 = vpop.f32.mrf.mxu1  ;;  %v358_v3 = vadd.f32 %v357_v44, %v1936_v5  ;;  %v471_v4 = vadd.f32 %v470_v45, %v1938_v6  ;;  %v1200_v17 = vcombine.high %v1958_v23, %v465_v49  ;;  %v2035_v24 = vrot.slane %v792_v61, %v1945_v13 }
  0xfd   :  { %v360_v7 = vadd.f32 %v359_v54, %v1940_v8  ;;  %v473_v14 = vadd.f32 %v472_v55, %v1942_v9  ;;  %v2038_v25 = vrot.slane %v1335_v62, %v1945_v13  ;;  %v2041_v22 = vrot.slane %v1336_v63, %v1945_v13 }
  0xfe   :  { %v361_v0 = vpop.f32.mrf.mxu0  ;;  %v474_v1 = vpop.f32.mrf.mxu1  ;;  %v535_v18 = vcombine.low %v338_v28, %v358_v3  ;;  %v536_v20 = vcombine.high %v338_v28, %v358_v3  ;;  %v1079_v21 = vcombine.low %v1969_v30, %v471_v4  ;;  %v1080_v26 = vcombine.high %v1969_v30, %v471_v4 }
  0xff   :  { %v2049_v23 = vrot.slane %v655_v2, %v1945_v13  ;;  %v807_v34 = vcombine.low %v1972_v31, %v360_v7  ;;  %v2055_v35 = vrot.slane %v656_v11, %v1945_v13  ;;  %v2058_v36 = vrot.slane %v1199_v12, %v1945_v13 }
 0x100   :  { %v2028_v15 = vpop.f32.mrf.mxu0  ;;  %v2030_v16 = vpop.f32.mrf.mxu1  ;;  %v543_v28 = vrot.slane %v535_v18, %v1945_v13  ;;  %v550_v33 = vrot.slane %v536_v20, %v1945_v13  ;;  %v808_v30 = vcombine.high %v1972_v31, %v360_v7  ;;  %v1351_v37 = vcombine.low %v1975_v32, %v473_v14 }
 0x101   :  { %v2067_v42 = vrot.slane %v1200_v17, %v1945_v13  ;;  %v2070_v43 = vrot.slane %v927_v50, %v1945_v13  ;;  %v2073_v44 = vrot.slane %v1079_v21, %v1945_v13  ;;  %v1352_v45 = vcombine.high %v1975_v32, %v473_v14 }
 0x102   :  { %v2044_v27 = vpop.f32.mrf.mxu0  ;;  %v2046_v29 = vpop.f32.mrf.mxu1  ;;  %v2077_v47 = vrot.slane %v928_v51, %v1945_v13  ;;  %v583_v31 = vcombine.low %v2007_v57, %v543_v28  ;;  %v584_v48 = vcombine.high %v2007_v57, %v543_v28  ;;  %v2082_v49 = vrot.slane %v1080_v26, %v1945_v13 }
 0x103   :  { %v2089_v50 = vrot.slane %v1471_v52, %v1945_v13  ;;  %v599_v61 = vcombine.low %v2010_v58, %v550_v33  ;;  %v600_v32 = vcombine.high %v2010_v58, %v550_v33  ;;  %v2094_v51 = vrot.slane %v807_v34, %v1945_v13 }
 0x104   :  { %v2062_v38 = vpop.f32.mrf.mxu0  ;;  %v2064_v39 = vpop.f32.mrf.mxu1  ;;  %2785 = vst [vmem:[#allocation2_spill] sm:$0xff] %v2077_v47  ;;  %v2097_v62 = vrot.slane %v1472_v53, %v1945_v13  ;;  %v2100_v57 = vrot.slane %v808_v30, %v1945_v13  ;;  %v2103_v63 = vrot.slane %v1351_v37, %v1945_v13  ;;  %v362_v2 = vadd.f32 %v361_v0, %v1936_v5 }
 0x105   :  { %2786 = vst [vmem:[#allocation3_spill] sm:$0xff] %v2089_v50  ;;  %v1127_v58 = vcombine.low %v2013_v59, %v2073_v44  ;;  %v1128_v4 = vcombine.high %v2013_v59, %v2073_v44  ;;  %v2115_v53 = vrot.slane %v1352_v45, %v1945_v13  ;;  %v475_v7 = vadd.f32 %v474_v1, %v1938_v6 }
 0x106   :  { %v2084_v54 = vpop.f32.mrf.mxu0  ;;  %v2086_v55 = vpop.f32.mrf.mxu1  ;;  %2787 = vst [vmem:[#allocation4_spill] sm:$0xff] %v2097_v62  ;;  %v2119_v11 = vrot.slane %v583_v31, %v1950_v19  ;;  %v2122_v0 = vrot.slane %v584_v48, %v1950_v19  ;;  %v1143_v12 = vcombine.low %v2016_v60, %v2082_v49  ;;  %v1144_v14 = vcombine.high %v2016_v60, %v2082_v49 }
 0x107   :  { %v2133_v18 = vrot.slane %v599_v61, %v1950_v19  ;;  %v2136_v1 = vrot.slane %v600_v32, %v1950_v19  ;;  %v855_v20 = vcombine.low %v2023_v10, %v2094_v51  ;;  %v856_v21 = vcombine.high %v2023_v10, %v2094_v51 }
 0x108   :  { %v2106_v52 = vpop.f32.mrf.mxu0  ;;  %v2108_v3 = vpop.f32.mrf.mxu1  ;;  %v871_v26 = vcombine.low %v2035_v24, %v2100_v57  ;;  %v872_v60 = vcombine.high %v2035_v24, %v2100_v57  ;;  %v1399_v28 = vcombine.low %v2038_v25, %v2103_v63  ;;  %v1400_v33 = vcombine.high %v2038_v25, %v2103_v63 }
 0x109   :  { %v671_v37 = vcombine.low %v1984_v40, %v362_v2  ;;  %v672_v10 = vcombine.high %v1984_v40, %v362_v2  ;;  %v1215_v44 = vcombine.low %v1987_v41, %v475_v7  ;;  %v1216_v45 = vcombine.high %v1987_v41, %v475_v7 }
 0x10a   :  { %v2128_v17 = vpop.f32.mrf.mxu0  ;;  %v2130_v59 = vpop.f32.mrf.mxu1  ;;  %v1415_v24 = vcombine.low %v2041_v22, %v2115_v53  ;;  %v1416_v31 = vcombine.high %v2041_v22, %v2115_v53  ;;  %v364_v25 = vadd.f32 %v2028_v15, %v1940_v8  ;;  %v477_v48 = vadd.f32 %v2030_v16, %v1942_v9 }
 0x10b   :  { %v679_v40 = vrot.slane %v671_v37, %v1945_v13  ;;  %v686_v41 = vrot.slane %v672_v10, %v1945_v13  ;;  %v1223_v32 = vrot.slane %v1215_v44, %v1945_v13  ;;  %v1230_v51 = vrot.slane %v1216_v45, %v1945_v13 }
 0x10c   :  { %v2150_v34 = vpop.f32.mrf.mxu0  ;;  %v2152_v30 = vpop.f32.mrf.mxu1  ;;  %v943_v22 = vcombine.low %v1991_v46, %v364_v25  ;;  %v944_v57 = vcombine.high %v1991_v46, %v364_v25  ;;  %v1487_v15 = vcombine.low %v2004_v56, %v477_v48  ;;  %v1488_v16 = vcombine.high %v2004_v56, %v477_v48 }
 0x10d   :  { %v719_v53 = vcombine.low %v2049_v23, %v679_v40  ;;  %v720_v7 = vcombine.high %v2049_v23, %v679_v40  ;;  %v735_v37 = vcombine.low %v2055_v35, %v686_v41  ;;  %v736_v10 = vcombine.high %v2055_v35, %v686_v41 }
 0x10e   :  { %v2166_v49 = vpop.f32.mrf.mxu0  ;;  %v2168_v61 = vpop.f32.mrf.mxu1  ;;  %v1263_v44 = vcombine.low %v2058_v36, %v1223_v32  ;;  %v1264_v46 = vcombine.high %v2058_v36, %v1223_v32  ;;  %v1279_v45 = vcombine.low %v2067_v42, %v1230_v51  ;;  %v1280_v56 = vcombine.high %v2067_v42, %v1230_v51 }
 0x10f   :  { %v2197_v23 = vrot.slane %v1143_v12, %v1950_v19  ;;  %v2200_v35 = vrot.slane %v1144_v14, %v1950_v19  ;;  %v2203_v36 = vrot.slane %v855_v20, %v1950_v19  ;;  %v2206_v40 = vrot.slane %v856_v21, %v1950_v19 }
 0x110   :  { %v2178_v63 = vpop.f32.mrf.mxu0  ;;  %v2180_v2 = vpop.f32.mrf.mxu1  ;;  %v2209_v42 = vrot.slane %v871_v26, %v1950_v19  ;;  %v951_v12 = vrot.slane %v943_v22, %v1945_v13  ;;  %v2216_v32 = vrot.slane %v944_v57, %v1945_v13  ;;  %v2219_v14 = vrot.slane %v1487_v15, %v1945_v13 }
 0x111   :  { %2788 = vst [vmem:[#allocation5_spill] sm:$0xff] %v2178_v63  ;;  %2789 = vst [vmem:[#allocation6_spill] sm:$0xff] %v2180_v2  ;;  %v2191_v2 = vrot.slane %v1127_v58, %v1950_v19  ;;  %v2194_v63 = vrot.slane %v1128_v4, %v1950_v19  ;;  %v2212_v58 = vrot.slane %v872_v60, %v1950_v19 }
 0x112   :  { %v387_v25 = vpop.f32.mrf.mxu0  ;;  %v500_v48 = vpop.f32.mrf.mxu1  ;;  %2790 = vst [vmem:[#allocation7_spill] sm:$0xff] %v2216_v32  ;;  %2791 = vst [vmem:[#allocation8_spill] sm:$0xff] %v2219_v14  ;;  %v2222_v20 = vrot.slane %v1488_v16, %v1945_v13  ;;  %v2225_v21 = vrot.slane %v1399_v28, %v1950_v19  ;;  %v2228_v26 = vrot.slane %v1400_v33, %v1950_v19 }
 0x113   :  { %v2231_v60 = vrot.slane %v1415_v24, %v1950_v19  ;;  %v2234_v51 = vrot.slane %v1416_v31, %v1950_v19  ;;  %v991_v22 = vcombine.low %v2070_v43, %v951_v12  ;;  %v992_v57 = vcombine.high %v2070_v43, %v951_v12 }
 0x114   :  { %v389_v4 = vpop.f32.mrf.mxu0  ;;  %v502_v41 = vpop.f32.mrf.mxu1  ;;  %2792 = vst [vmem:[#allocation9_spill] sm:$0xff] %v2222_v20  ;;  %2793 = vst [vmem:[#allocation10_spill] sm:$0xff] %v2225_v21  ;;  %v2251_v12 = vrot.slane %v719_v53, %v1950_v19  ;;  %v2254_v15 = vrot.slane %v720_v7, %v1950_v19  ;;  %v368_v28 = vadd.f32 %v2044_v27, %v1936_v5 }
 0x115   :  { %v481_v33 = vadd.f32 %v2046_v29, %v1938_v6  ;;  %v2261_v24 = vrot.slane %v735_v37, %v1950_v19  ;;  %v2264_v31 = vrot.slane %v736_v10, %v1950_v19  ;;  %v2267_v43 = vrot.slane %v1263_v44, %v1950_v19 }
 0x116   :  { %v391_v16 = vpop.f32.mrf.mxu0  ;;  %v504_v21 = vpop.f32.mrf.mxu1  ;;  %v2270_v53 = vrot.slane %v1264_v46, %v1950_v19  ;;  %v2273_v7 = vrot.slane %v1279_v45, %v1950_v19  ;;  %v2276_v27 = vrot.slane %v1280_v56, %v1950_v19  ;;  %v370_v29 = vadd.f32 %v2062_v38, %v1940_v8 }
 0x117   :  { %v483_v37 = vadd.f32 %v2064_v39, %v1942_v9  ;;  %v2283_v44 = vrot.slane %v991_v22, %v1950_v19  ;;  %v2286_v46 = vrot.slane %v992_v57, %v1950_v19  ;;  %v372_v45 = vadd.f32 %v2084_v54, %v1936_v5 }
 0x118   :  { %2794 = vst [vmem:[#allocation11_spill] sm:$0xff] %v2270_v53  ;;  %2795 = vst [vmem:[#allocation12_spill] sm:$0xff] %v2273_v7  ;;  %v393_v10 = vpop.f32.mrf.mxu0  ;;  %v506_v20 = vpop.f32.mrf.mxu1  ;;  %v485_v56 = vadd.f32 %v2086_v55, %v1938_v6  ;;  %v2294_v38 = vadd.f32 %v2106_v52, %v1940_v8  ;;  %v2298_v39 = vadd.f32 %v2108_v3, %v1942_v9 }
 0x119   :  { %2796 = vst [vmem:[#allocation13_spill] sm:$0xff] %v2276_v27  ;;  %2797 = vst [vmem:[#allocation14_spill] sm:$0xff] %v2283_v44  ;;  %v388_v22 = vadd.f32 %v387_v25, %v1936_v5  ;;  %v501_v44 = vadd.f32 %v500_v48, %v1938_v6  ;;  %v378_v57 = vadd.f32 %v2128_v17, %v1936_v5 }
 0x11a   :  { %2798 = vst [vmem:[#allocation15_spill] sm:$0xff] %v2286_v46  ;;  %2799 = vst [vmem:[#allocation16_spill] sm:$0xff] %v2294_v38  ;;  %v390_v54 = vadd.f32 %v389_v4, %v1940_v8  ;;  %v503_v46 = vadd.f32 %v502_v41, %v1942_v9  ;;  %v392_v55 = vadd.f32 %v391_v16, %v1936_v5  ;;  %v397_v3 = vpop.f32.mrf.mxu0 }
 0x11b   :  { %2800 = vst [vmem:[#allocation17_spill] sm:$0xff] %v2298_v39  ;;  %v551_v62 = vcombine.low %v368_v28, %v388_v22  ;;  %v552_v52 = vcombine.high %v368_v28, %v388_v22  ;;  %v1095_v14 = vcombine.low %v481_v33, %v501_v44  ;;  %v505_v50 = vadd.f32 %v504_v21, %v1938_v6  ;;  %v510_v39 = vpop.f32.mrf.mxu1 }
 0x11c   :  { %v491_v25 = vadd.f32 %v2130_v59, %v1938_v6  ;;  %v2312_v48 = vadd.f32 %v2150_v34, %v1940_v8  ;;  %v2316_v17 = vadd.f32 %v2152_v30, %v1942_v9  ;;  %v2320_v4 = vadd.f32 %v2166_v49, %v1936_v5  ;;  %v399_v49 = vpop.f32.mrf.mxu0 }
 0x11d   :  { %v1096_v41 = vcombine.high %v481_v33, %v501_v44  ;;  %v823_v28 = vcombine.low %v370_v29, %v390_v54  ;;  %v824_v21 = vcombine.high %v370_v29, %v390_v54  ;;  %v1367_v16 = vcombine.low %v483_v37, %v503_v46  ;;  %v512_v53 = vpop.f32.mrf.mxu1 }
 0x11e   :  { %v2324_v22 = vadd.f32 %v2168_v61, %v1938_v6  ;;  %v559_v59 = vrot.slane %v551_v62, %v1945_v13  ;;  %v566_v34 = vrot.slane %v552_v52, %v1945_v13  ;;  %v1368_v32 = vcombine.high %v483_v37, %v503_v46 }
 0x11f   :  { %v1103_v30 = vrot.slane %v1095_v14, %v1945_v13  ;;  %v687_v47 = vcombine.low %v372_v45, %v392_v55  ;;  %v688_v27 = vcombine.high %v372_v45, %v392_v55  ;;  %v1231_v7 = vcombine.low %v485_v56, %v505_v50 }
 0x120   :  { %v1232_v33 = vcombine.high %v485_v56, %v505_v50  ;;  %v2330_v29 = vadd.f32 %v393_v10, %v1940_v8  ;;  %v398_v44 = vadd.f32 %v397_v3, %v1936_v5  ;;  %v511_v61 = vadd.f32 %v510_v39, %v1938_v6  ;;  %v401_v3 = vpop.f32.mrf.mxu0 }
 0x121   :  { %v1110_v62 = vrot.slane %v1096_v41, %v1945_v13  ;;  %v2336_v54 = vrot.slane %v823_v28, %v1945_v13  ;;  %v2339_v14 = vrot.slane %v824_v21, %v1945_v13  ;;  %v2342_v37 = vrot.slane %v1367_v16, %v1945_v13  ;;  %v514_v41 = vpop.f32.mrf.mxu1 }
 0x122   :  { %2801 = vst [vmem:[#allocation18_spill] sm:$0xff] %v2330_v29  ;;  %v2345_v50 = vrot.slane %v1368_v32, %v1945_v13  ;;  %v2348_v10 = vrot.slane %v687_v47, %v1945_v13  ;;  %v2351_v46 = vrot.slane %v688_v27, %v1945_v13  ;;  %v2354_v45 = vadd.f32 %v506_v20, %v1942_v9 }
 0x123   :  { %v567_v56 = vcombine.low %v378_v57, %v398_v44  ;;  %v568_v39 = vcombine.high %v378_v57, %v398_v44  ;;  %v1111_v55 = vcombine.low %v491_v25, %v511_v61  ;;  %v1112_v52 = vcombine.high %v491_v25, %v511_v61 }
 0x124   :  { %v2357_v28 = vrot.slane %v1231_v7, %v1945_v13  ;;  %v2360_v32 = vrot.slane %v1232_v33, %v1945_v13  ;;  %v2371_v7 = vadd.f32 %v399_v49, %v1940_v8  ;;  %v2374_v16 = vadd.f32 %v512_v53, %v1942_v9 }
 0x125   :  { %v575_v20 = vrot.slane %v567_v56, %v1945_v13  ;;  %v582_v57 = vrot.slane %v568_v39, %v1945_v13  ;;  %v1119_v25 = vrot.slane %v1111_v55, %v1945_v13  ;;  %v1126_v21 = vrot.slane %v1112_v52, %v1945_v13 }
 0x126   :  { %v2377_v33 = vadd.f32 %v401_v3, %v1936_v5  ;;  %v2380_v44 = vadd.f32 %v514_v41, %v1938_v6 }
 0x127   :  { %v615_v61 = vcombine.low %v559_v59, %v575_v20  ;;  %v616_v56 = vcombine.high %v559_v59, %v575_v20  ;;  %v631_v27 = vcombine.low %v566_v34, %v582_v57  ;;  %v632_v39 = vcombine.high %v566_v34, %v582_v57 }
 0x128   :  { %v1159_v47 = vcombine.low %v1103_v30, %v1119_v25  ;;  %v1160_v55 = vcombine.high %v1103_v30, %v1119_v25  ;;  %v1175_v29 = vcombine.low %v1110_v62, %v1126_v21  ;;  %v1176_v52 = vcombine.high %v1110_v62, %v1126_v21 }
 0x129   :  { %v623_v49 = vrot.slane %v615_v61, %v1950_v19  ;;  %v630_v38 = vrot.slane %v616_v56, %v1950_v19  ;;  %v639_v53 = vrot.slane %v631_v27, %v1950_v19  ;;  %v646_v5 = vrot.slane %v632_v39, %v1950_v19 }
 0x12a   :  { %v1167_v3 = vrot.slane %v1159_v47, %v1950_v19  ;;  %v1174_v6 = vrot.slane %v1160_v55, %v1950_v19  ;;  %v1183_v59 = vrot.slane %v1175_v29, %v1950_v19  ;;  %v1190_v34 = vrot.slane %v1176_v52, %v1950_v19 }
 0x12b   :  { %v647_v30 = vcombine.low %v2119_v11, %v623_v49  ;;  %v648_v62 = vcombine.high %v2119_v11, %v623_v49  ;;  %v649_v41 = vcombine.low %v2122_v0, %v630_v38  ;;  %v650_v20 = vcombine.high %v2122_v0, %v630_v38 }
 0x12c   :  { %v651_v27 = vcombine.low %v2133_v18, %v639_v53  ;;  %v652_v57 = vcombine.high %v2133_v18, %v639_v53  ;;  %v653_v47 = vcombine.low %v2136_v1, %v646_v5  ;;  %v654_v25 = vcombine.high %v2136_v1, %v646_v5 }
 0x12d   :  { %1607 = vst [vmem:[%s2761_s3] sm:$0xff] %v647_v30  ;;  %1611 = vst [vmem:[%s2761_s3 + $0x20] sm:$0xff] %v648_v62  ;;  %v1191_v11 = vcombine.low %v2191_v2, %v1167_v3  ;;  %v1192_v0 = vcombine.high %v2191_v2, %v1167_v3  ;;  %v1193_v18 = vcombine.low %v2194_v63, %v1174_v6 }
 0x12e   :  { %1615 = vst [vmem:[%s2761_s3 + $0x40] sm:$0xff] %v649_v41  ;;  %1619 = vst [vmem:[%s2761_s3 + $0x60] sm:$0xff] %v650_v20  ;;  %v1194_v1 = vcombine.high %v2194_v63, %v1174_v6  ;;  %v1195_v2 = vcombine.low %v2197_v23, %v1183_v59  ;;  %v1196_v63 = vcombine.high %v2197_v23, %v1183_v59 }
 0x12f   :  { %1623 = vst [vmem:[%s2761_s3 + $0x80] sm:$0xff] %v651_v27  ;;  %1627 = vst [vmem:[%s2761_s3 + $0xa0] sm:$0xff] %v652_v57  ;;  %v1197_v38 = vcombine.low %v2200_v35, %v1190_v34  ;;  %v1198_v29 = vcombine.high %v2200_v35, %v1190_v34  ;;  %v839_v23 = vcombine.low %v2312_v48, %v2371_v7 }
 0x130   :  { %1631 = vst [vmem:[%s2761_s3 + $0xc0] sm:$0xff] %v653_v47  ;;  %1635 = vst [vmem:[%s2761_s3 + $0xe0] sm:$0xff] %v654_v25  ;;  %v840_v35 = vcombine.high %v2312_v48, %v2371_v7  ;;  %v1383_v21 = vcombine.low %v2316_v17, %v2374_v16  ;;  %v1384_v61 = vcombine.high %v2316_v17, %v2374_v16 }
 0x131   :  { %1609 = vst [vmem:[%s2761_s3 + $0x10] sm:$0xff] %v1191_v11  ;;  %1613 = vst [vmem:[%s2761_s3 + $0x30] sm:$0xff] %v1192_v0  ;;  %v703_v48 = vcombine.low %v2320_v4, %v2377_v33  ;;  %v704_v17 = vcombine.high %v2320_v4, %v2377_v33  ;;  %v1247_v7 = vcombine.low %v2324_v22, %v2380_v44 }
 0x132   :  { %1617 = vst [vmem:[%s2761_s3 + $0x50] sm:$0xff] %v1193_v18  ;;  %1621 = vst [vmem:[%s2761_s3 + $0x70] sm:$0xff] %v1194_v1  ;;  %v1248_v16 = vcombine.high %v2324_v22, %v2380_v44  ;;  %v847_v56 = vrot.slane %v839_v23, %v1945_v13  ;;  %v854_v39 = vrot.slane %v840_v35, %v1945_v13 }
 0x133   :  { %1625 = vst [vmem:[%s2761_s3 + $0x90] sm:$0xff] %v1195_v2  ;;  %1629 = vst [vmem:[%s2761_s3 + $0xb0] sm:$0xff] %v1196_v63  ;;  %v1391_v55 = vrot.slane %v1383_v21, %v1945_v13  ;;  %v1398_v52 = vrot.slane %v1384_v61, %v1945_v13  ;;  %v711_v49 = vrot.slane %v703_v48, %v1945_v13 }
 0x134   :  { %1633 = vst [vmem:[%s2761_s3 + $0xd0] sm:$0xff] %v1197_v38  ;;  %1637 = vst [vmem:[%s2761_s3 + $0xf0] sm:$0xff] %v1198_v29  ;;  %v2476_v53 = vrot.slane %v704_v17, %v1945_v13  ;;  %v2479_v4 = vrot.slane %v1247_v7, %v1945_v13  ;;  %v2482_v33 = vrot.slane %v1248_v16, %v1945_v13 }
 0x135   :  { %v887_v22 = vcombine.low %v2336_v54, %v847_v56  ;;  %v888_v44 = vcombine.high %v2336_v54, %v847_v56  ;;  %v903_v5 = vcombine.low %v2339_v14, %v854_v39  ;;  %v904_v3 = vcombine.high %v2339_v14, %v854_v39 }
 0x136   :  { %v1431_v6 = vcombine.low %v2342_v37, %v1391_v55  ;;  %v1432_v59 = vcombine.high %v2342_v37, %v1391_v55  ;;  %v1447_v34 = vcombine.low %v2345_v50, %v1398_v52  ;;  %v1448_v30 = vcombine.high %v2345_v50, %v1398_v52 }
 0x137   :  { %v895_v62 = vrot.slane %v887_v22, %v1950_v19  ;;  %v902_v41 = vrot.slane %v888_v44, %v1950_v19  ;;  %v911_v20 = vrot.slane %v903_v5, %v1950_v19  ;;  %v918_v54 = vrot.slane %v904_v3, %v1950_v19  ;;  %v403_v3 = vpop.f32.mrf.mxu0 }
 0x138   :  { %v1439_v27 = vrot.slane %v1431_v6, %v1950_v19  ;;  %v1446_v14 = vrot.slane %v1432_v59, %v1950_v19  ;;  %v1455_v57 = vrot.slane %v1447_v34, %v1950_v19  ;;  %v1462_v37 = vrot.slane %v1448_v30, %v1950_v19  ;;  %v516_v6 = vpop.f32.mrf.mxu1 }
 0x139   :  { %v919_v47 = vcombine.low %v2203_v36, %v895_v62  ;;  %v920_v50 = vcombine.high %v2203_v36, %v895_v62  ;;  %v921_v25 = vcombine.low %v2206_v40, %v902_v41  ;;  %v922_v11 = vcombine.high %v2206_v40, %v902_v41  ;;  %v2802_v36 = vld [vmem:[#allocation10_spill] sm:$0xff]  ;;  %v2805_v62 = vld [vmem:[#allocation13_spill] sm:$0xff] }
 0x13a   :  { %v923_v0 = vcombine.low %v2209_v42, %v911_v20  ;;  %v924_v18 = vcombine.high %v2209_v42, %v911_v20  ;;  %v925_v1 = vcombine.low %v2212_v58, %v918_v54  ;;  %v926_v2 = vcombine.high %v2212_v58, %v918_v54  ;;  %v2806_v54 = vld [vmem:[#allocation5_spill] sm:$0xff] }
 0x13b   :  { %1608 = vst [vmem:[%s2761_s3 + $0x8] sm:$0xff] %v919_v47  ;;  %1612 = vst [vmem:[%s2761_s3 + $0x28] sm:$0xff] %v920_v50  ;;  %v1463_v40 = vcombine.low %v2802_v36, %v1439_v27  ;;  %v1464_v42 = vcombine.high %v2802_v36, %v1439_v27  ;;  %v1465_v58 = vcombine.low %v2228_v26, %v1446_v14  ;;  %v2808_v50 = vld [vmem:[#allocation2_spill] sm:$0xff] }
 0x13c   :  { %1616 = vst [vmem:[%s2761_s3 + $0x48] sm:$0xff] %v921_v25  ;;  %1620 = vst [vmem:[%s2761_s3 + $0x68] sm:$0xff] %v922_v11  ;;  %v1466_v63 = vcombine.high %v2228_v26, %v1446_v14  ;;  %v1467_v38 = vcombine.low %v2231_v60, %v1455_v57  ;;  %v1468_v26 = vcombine.high %v2231_v60, %v1455_v57  ;;  %v2807_v14 = vld [vmem:[#allocation6_spill] sm:$0xff]  ;;  %v2809_v25 = vld [vmem:[#allocation7_spill] sm:$0xff] }
 0x13d   :  { %1624 = vst [vmem:[%s2761_s3 + $0x88] sm:$0xff] %v923_v0  ;;  %1628 = vst [vmem:[%s2761_s3 + $0xa8] sm:$0xff] %v924_v18  ;;  %v1469_v29 = vcombine.low %v2234_v51, %v1462_v37  ;;  %v1470_v23 = vcombine.high %v2234_v51, %v1462_v37  ;;  %v751_v60 = vcombine.low %v2348_v10, %v711_v49 }
 0x13e   :  { %1632 = vst [vmem:[%s2761_s3 + $0xc8] sm:$0xff] %v925_v1  ;;  %1636 = vst [vmem:[%s2761_s3 + $0xe8] sm:$0xff] %v926_v2  ;;  %v752_v51 = vcombine.high %v2348_v10, %v711_v49  ;;  %v767_v35 = vcombine.low %v2351_v46, %v2476_v53  ;;  %v768_v21 = vcombine.high %v2351_v46, %v2476_v53  ;;  %v2812_v2 = vld [vmem:[#allocation17_spill] sm:$0xff] }
 0x13f   :  { %1610 = vst [vmem:[%s2761_s3 + $0x18] sm:$0xff] %v1463_v40  ;;  %1614 = vst [vmem:[%s2761_s3 + $0x38] sm:$0xff] %v1464_v42  ;;  %v1295_v10 = vcombine.low %v2357_v28, %v2479_v4  ;;  %v1296_v46 = vcombine.high %v2357_v28, %v2479_v4  ;;  %v1311_v61 = vcombine.low %v2360_v32, %v2482_v33 }
 0x140   :  { %1618 = vst [vmem:[%s2761_s3 + $0x58] sm:$0xff] %v1465_v58  ;;  %1622 = vst [vmem:[%s2761_s3 + $0x78] sm:$0xff] %v1466_v63  ;;  %v1312_v48 = vcombine.high %v2360_v32, %v2482_v33  ;;  %v759_v17 = vrot.slane %v751_v60, %v1950_v19  ;;  %v766_v7 = vrot.slane %v752_v51, %v1950_v19  ;;  %v2813_v58 = vld [vmem:[#allocation3_spill] sm:$0xff]  ;;  %v2814_v63 = vld [vmem:[#allocation8_spill] sm:$0xff] }
 0x141   :  { %1626 = vst [vmem:[%s2761_s3 + $0x98] sm:$0xff] %v1467_v38  ;;  %1630 = vst [vmem:[%s2761_s3 + $0xb8] sm:$0xff] %v1468_v26  ;;  %v775_v16 = vrot.slane %v767_v35, %v1950_v19  ;;  %v782_v56 = vrot.slane %v768_v21, %v1950_v19  ;;  %v1303_v39 = vrot.slane %v1295_v10, %v1950_v19  ;;  %v2817_v60 = vld [vmem:[#allocation16_spill] sm:$0xff]  ;;  %v2818_v51 = vld [vmem:[#allocation18_spill] sm:$0xff] }
 0x142   :  { %1634 = vst [vmem:[%s2761_s3 + $0xd8] sm:$0xff] %v1469_v29  ;;  %1638 = vst [vmem:[%s2761_s3 + $0xf8] sm:$0xff] %v1470_v23  ;;  %v1310_v55 = vrot.slane %v1296_v46, %v1950_v19  ;;  %v1319_v28 = vrot.slane %v1311_v61, %v1950_v19  ;;  %v1326_v52 = vrot.slane %v1312_v48, %v1950_v19 }
 0x143   :  { %v783_v49 = vcombine.low %v2251_v12, %v759_v17  ;;  %v784_v32 = vcombine.high %v2251_v12, %v759_v17  ;;  %v785_v53 = vcombine.low %v2254_v15, %v766_v7  ;;  %v786_v4 = vcombine.high %v2254_v15, %v766_v7 }
 0x144   :  { %v787_v33 = vcombine.low %v2261_v24, %v775_v16  ;;  %v788_v22 = vcombine.high %v2261_v24, %v775_v16  ;;  %v789_v44 = vcombine.low %v2264_v31, %v782_v56  ;;  %v790_v5 = vcombine.high %v2264_v31, %v782_v56  ;;  %v2803_v31 = vld [vmem:[#allocation11_spill] sm:$0xff]  ;;  %v2821_v16 = vld [vmem:[#allocation4_spill] sm:$0xff]  ;;  %v2822_v56 = vld [vmem:[#allocation9_spill] sm:$0xff] }
 0x145   :  { %1639 = vst [vmem:[%s2761_s3 + $0x100] sm:$0xff] %v783_v49  ;;  %1643 = vst [vmem:[%s2761_s3 + $0x120] sm:$0xff] %v784_v32  ;;  %v1327_v15 = vcombine.low %v2267_v43, %v1303_v39  ;;  %v1328_v24 = vcombine.high %v2267_v43, %v1303_v39  ;;  %v1329_v12 = vcombine.low %v2803_v31, %v1310_v55  ;;  %v2804_v43 = vld [vmem:[#allocation12_spill] sm:$0xff] }
 0x146   :  { %1647 = vst [vmem:[%s2761_s3 + $0x140] sm:$0xff] %v785_v53  ;;  %1651 = vst [vmem:[%s2761_s3 + $0x160] sm:$0xff] %v786_v4  ;;  %v1330_v59 = vcombine.high %v2803_v31, %v1310_v55  ;;  %v1331_v34 = vcombine.low %v2804_v43, %v1319_v28  ;;  %v1332_v30 = vcombine.high %v2804_v43, %v1319_v28 }
 0x147   :  { %1655 = vst [vmem:[%s2761_s3 + $0x180] sm:$0xff] %v787_v33  ;;  %1659 = vst [vmem:[%s2761_s3 + $0x1a0] sm:$0xff] %v788_v22  ;;  %v1333_v41 = vcombine.low %v2805_v62, %v1326_v52  ;;  %v1334_v20 = vcombine.high %v2805_v62, %v1326_v52  ;;  %v384_v27 = vadd.f32 %v2806_v54, %v1940_v8 }
 0x148   :  { %1663 = vst [vmem:[%s2761_s3 + $0x1c0] sm:$0xff] %v789_v44  ;;  %1667 = vst [vmem:[%s2761_s3 + $0x1e0] sm:$0xff] %v790_v5  ;;  %v497_v57 = vadd.f32 %v2807_v14, %v1942_v9  ;;  %v404_v37 = vadd.f32 %v403_v3, %v1940_v8  ;;  %v517_v47 = vadd.f32 %v516_v6, %v1942_v9 }
 0x149   :  { %1641 = vst [vmem:[%s2761_s3 + $0x110] sm:$0xff] %v1327_v15  ;;  %1645 = vst [vmem:[%s2761_s3 + $0x130] sm:$0xff] %v1328_v24  ;;  %v2810_v11 = vcombine.low %v2808_v50, %v2809_v25  ;;  %v2811_v18 = vcombine.high %v2808_v50, %v2809_v25  ;;  %v1503_v36 = vcombine.low %v2812_v2, %v2354_v45 }
 0x14a   :  { %1649 = vst [vmem:[%s2761_s3 + $0x150] sm:$0xff] %v1329_v12  ;;  %1653 = vst [vmem:[%s2761_s3 + $0x170] sm:$0xff] %v1330_v59  ;;  %v1504_v40 = vcombine.high %v2812_v2, %v2354_v45  ;;  %v975_v8 = vcombine.low %v384_v27, %v404_v37  ;;  %v976_v9 = vcombine.high %v384_v27, %v404_v37 }
 0x14b   :  { %v1015_v0 = vrot.slane %v2810_v11, %v1950_v19  ;;  %v1022_v1 = vrot.slane %v2811_v18, %v1950_v19  ;;  %1657 = vst [vmem:[%s2761_s3 + $0x190] sm:$0xff] %v1331_v34  ;;  %1661 = vst [vmem:[%s2761_s3 + $0x1b0] sm:$0xff] %v1332_v30  ;;  %v1519_v42 = vcombine.low %v497_v57, %v517_v47  ;;  %v2825_v30 = vld [vmem:[#allocation14_spill] sm:$0xff] }
 0x14c   :  { %1665 = vst [vmem:[%s2761_s3 + $0x1d0] sm:$0xff] %v1333_v41  ;;  %1669 = vst [vmem:[%s2761_s3 + $0x1f0] sm:$0xff] %v1334_v20  ;;  %v1520_v45 = vcombine.high %v497_v57, %v517_v47  ;;  %v2815_v38 = vcombine.low %v2813_v58, %v2814_v63  ;;  %v2816_v29 = vcombine.high %v2813_v58, %v2814_v63  ;;  %v2826_v20 = vld [vmem:[#allocation15_spill] sm:$0xff] }
 0x14d   :  { %v2819_v35 = vcombine.low %v2817_v60, %v2818_v51  ;;  %v2820_v10 = vcombine.high %v2817_v60, %v2818_v51  ;;  %v983_v61 = vrot.slane %v975_v8, %v1945_v13  ;;  %v990_v48 = vrot.slane %v976_v9, %v1945_v13 }
 0x14e   :  { %v1543_v26 = vrot.slane %v2815_v38, %v1950_v19  ;;  %v1550_v23 = vrot.slane %v2816_v29, %v1950_v19  ;;  %v1527_v17 = vrot.slane %v1519_v42, %v1945_v13  ;;  %v1534_v7 = vrot.slane %v1520_v45, %v1945_v13 }
 0x14f   :  { %v967_v21 = vrot.slane %v2819_v35, %v1945_v13  ;;  %v974_v46 = vrot.slane %v2820_v10, %v1945_v13  ;;  %v2823_v39 = vcombine.low %v2821_v16, %v2822_v56  ;;  %v2824_v28 = vcombine.high %v2821_v16, %v2822_v56 }
 0x150   :  { %v1511_v49 = vrot.slane %v1503_v36, %v1945_v13  ;;  %v1518_v32 = vrot.slane %v1504_v40, %v1945_v13 }
 0x151   :  { %v1559_v55 = vrot.slane %v2823_v39, %v1950_v19  ;;  %v1566_v52 = vrot.slane %v2824_v28, %v1950_v19  ;;  %v1023_v53 = vcombine.low %v967_v21, %v983_v61  ;;  %v1024_v4 = vcombine.high %v967_v21, %v983_v61 }
 0x152   :  { %v1039_v33 = vcombine.low %v974_v46, %v990_v48  ;;  %v1040_v22 = vcombine.high %v974_v46, %v990_v48  ;;  %v1567_v44 = vcombine.low %v1511_v49, %v1527_v17  ;;  %v1568_v5 = vcombine.high %v1511_v49, %v1527_v17 }
 0x153   :  { %v1583_v3 = vcombine.low %v1518_v32, %v1534_v7  ;;  %v1584_v6 = vcombine.high %v1518_v32, %v1534_v7  ;;  %v1031_v15 = vrot.slane %v1023_v53, %v1950_v19  ;;  %v1038_v24 = vrot.slane %v1024_v4, %v1950_v19 }
 0x154   :  { %v1047_v31 = vrot.slane %v1039_v33, %v1950_v19  ;;  %v1054_v12 = vrot.slane %v1040_v22, %v1950_v19  ;;  %v1575_v59 = vrot.slane %v1567_v44, %v1950_v19  ;;  %v1582_v13 = vrot.slane %v1568_v5, %v1950_v19 }
 0x155   :  { %v1591_v43 = vrot.slane %v1583_v3, %v1950_v19  ;;  %v1598_v34 = vrot.slane %v1584_v6, %v1950_v19  ;;  %v1055_v62 = vcombine.low %v2825_v30, %v1031_v15  ;;  %v1056_v41 = vcombine.high %v2825_v30, %v1031_v15 }
 0x156   :  { %v1057_v54 = vcombine.low %v2826_v20, %v1038_v24  ;;  %v1058_v27 = vcombine.high %v2826_v20, %v1038_v24  ;;  %v1059_v14 = vcombine.low %v1015_v0, %v1047_v31  ;;  %v1060_v57 = vcombine.high %v1015_v0, %v1047_v31 }
 0x157   :  { %v1061_v37 = vcombine.low %v1022_v1, %v1054_v12  ;;  %v1062_v47 = vcombine.high %v1022_v1, %v1054_v12  ;;  %1640 = vst [vmem:[%s2761_s3 + $0x108] sm:$0xff] %v1055_v62  ;;  %1644 = vst [vmem:[%s2761_s3 + $0x128] sm:$0xff] %v1056_v41  ;;  %v1599_v19 = vcombine.low %v1543_v26, %v1575_v59 }
 0x158   :  { %1648 = vst [vmem:[%s2761_s3 + $0x148] sm:$0xff] %v1057_v54  ;;  %1652 = vst [vmem:[%s2761_s3 + $0x168] sm:$0xff] %v1058_v27  ;;  %v1600_v50 = vcombine.high %v1543_v26, %v1575_v59  ;;  %v1601_v25 = vcombine.low %v1550_v23, %v1582_v13  ;;  %v1602_v11 = vcombine.high %v1550_v23, %v1582_v13 }
 0x159   :  { %1656 = vst [vmem:[%s2761_s3 + $0x188] sm:$0xff] %v1059_v14  ;;  %1660 = vst [vmem:[%s2761_s3 + $0x1a8] sm:$0xff] %v1060_v57  ;;  %v1603_v0 = vcombine.low %v1559_v55, %v1591_v43  ;;  %v1604_v18 = vcombine.high %v1559_v55, %v1591_v43  ;;  %v1605_v1 = vcombine.low %v1566_v52, %v1598_v34 }
 0x15a   :  { %1664 = vst [vmem:[%s2761_s3 + $0x1c8] sm:$0xff] %v1061_v37  ;;  %1668 = vst [vmem:[%s2761_s3 + $0x1e8] sm:$0xff] %v1062_v47  ;;  %v1606_v2 = vcombine.high %v1566_v52, %v1598_v34 }
 0x15b   :  { %1642 = vst [vmem:[%s2761_s3 + $0x118] sm:$0xff] %v1599_v19  ;;  %1646 = vst [vmem:[%s2761_s3 + $0x138] sm:$0xff] %v1600_v50 }
 0x15c   :  { %1650 = vst [vmem:[%s2761_s3 + $0x158] sm:$0xff] %v1601_v25  ;;  %1654 = vst [vmem:[%s2761_s3 + $0x178] sm:$0xff] %v1602_v11 }
 0x15d   :  { %1658 = vst [vmem:[%s2761_s3 + $0x198] sm:$0xff] %v1603_v0  ;;  %1662 = vst [vmem:[%s2761_s3 + $0x1b8] sm:$0xff] %v1604_v18 }
 0x15e   :  { %1666 = vst [vmem:[%s2761_s3 + $0x1d8] sm:$0xff] %v1605_v1  ;;  %1670 = vst [vmem:[%s2761_s3 + $0x1f8] sm:$0xff] %v1606_v2 }

// kernel: decoder_rnn_forward.4
= control target key start
LH: loop header
LB: loop body
LE: loop exit
PB: predicated region body
PF: predicated region fallthrough
CT: control target
= control target key end

     0   :  { %v2149_v1 = vmov 0   ;;  %v2150_v33 = vmov 0.0|0.0   ;;  %s3030_s1 = inlined_call_operand.vmem [shape: bf16[128,512], index: 1, kind: input, shape index: {}]   ;;  %s3031_s0 = inlined_call_operand.vmem [shape: f32[8,16,512], index: 0, kind: input, shape index: {}]   ;;  %s3032_s2 = inlined_call_operand.vmem [shape: bf16[8,16,128], index: 2, kind: output, shape index: {}]  }
   0x1   :  { %v2169_v0 = vld [vmem:[%s3030_s1 + $0xe4] ss:$16 sps:$4 sm:$0xff]   ;;  %257 = vmatprep.mubr.bf16.mxu0 %v2149_v1  ;;  %300 = vmatprep.mubr.bf16.mxu1 %v2149_v1  ;;  %v2176_v2 = vld [vmem:[%s3030_s1 + $0xe0] ss:$16 sps:$4 sm:$0xff]   ;;  %v2199_v6 = vld [vmem:[%s3030_s1 + $0xec] ss:$16 sps:$4 sm:$0xff]  }
   0x2   :  { %225 = vmatprep.subr.bf16.mxu0 %v2169_v0  ;;  %v2182_v3 = vld [vmem:[%s3030_s1 + $0xc4] ss:$16 sps:$4 sm:$0xff]   ;;  %v2188_v4 = vld [vmem:[%s3030_s1 + $0xc0] ss:$16 sps:$4 sm:$0xff]   ;;  %v2204_v7 = vld [vmem:[%s3030_s1 + $0xe8] ss:$16 sps:$4 sm:$0xff]   ;;  %268 = vmatprep.subr.bf16.mxu1 %v2199_v6 }
   0x3   :  { %226 = vmatpush1.bf16.msra.mxu0 %v2176_v2  ;;  %v2194_v5 = vld [vmem:[%s3030_s1 + $0xa4] ss:$16 sps:$4 sm:$0xff]   ;;  %v2210_v8 = vld [vmem:[%s3030_s1 + $0xa0] ss:$16 sps:$4 sm:$0xff]   ;;  %269 = vmatpush1.bf16.msra.mxu1 %v2204_v7  ;;  %v2223_v10 = vld [vmem:[%s3030_s1 + $0xcc] ss:$16 sps:$4 sm:$0xff]  }
   0x4   :  { %227 = vmatprep.subr.bf16.mxu0 %v2182_v3  ;;  %v2217_v9 = vld [vmem:[%s3030_s1 + $0x84] ss:$16 sps:$4 sm:$0xff]   ;;  %v2228_v11 = vld [vmem:[%s3030_s1 + $0xc8] ss:$16 sps:$4 sm:$0xff]   ;;  %270 = vmatprep.subr.bf16.mxu1 %v2223_v10  ;;  %v2235_v12 = vld [vmem:[%s3030_s1 + $0x80] ss:$16 sps:$4 sm:$0xff]  }
   0x5   :  { %v2240_v13 = vld [vmem:[%s3030_s1 + $0x64] ss:$16 sps:$4 sm:$0xff]   ;;  %v2245_v14 = vld [vmem:[%s3030_s1 + $0xac] ss:$16 sps:$4 sm:$0xff]   ;;  %v2252_v15 = vld [vmem:[%s3030_s1 + $0xa8] ss:$16 sps:$4 sm:$0xff]  }
   0x6   :  { %v2258_v16 = vld [vmem:[%s3030_s1 + $0x8c] ss:$16 sps:$4 sm:$0xff]   ;;  %v2264_v17 = vld [vmem:[%s3030_s1 + $0x60] ss:$16 sps:$4 sm:$0xff]   ;;  %v2270_v18 = vld [vmem:[%s3030_s1 + $0x44] ss:$16 sps:$4 sm:$0xff]  }
   0x7   :  { %228 = vmatpush1.bf16.msra.mxu0 %v2188_v4  ;;  %271 = vmatpush1.bf16.msra.mxu1 %v2228_v11  ;;  %v2276_v19 = vld [vmem:[%s3030_s1 + $0x88] ss:$16 sps:$4 sm:$0xff]   ;;  %v2282_v20 = vld [vmem:[%s3030_s1 + $0x6c] ss:$16 sps:$4 sm:$0xff]   ;;  %v2288_v21 = vld [vmem:[%s3030_s1 + $0x40] ss:$16 sps:$4 sm:$0xff]  }
   0x8   :  { %229 = vmatprep.subr.bf16.mxu0 %v2194_v5  ;;  %272 = vmatprep.subr.bf16.mxu1 %v2245_v14  ;;  %v2293_v22 = vld [vmem:[%s3030_s1 + $0x24] ss:$16 sps:$4 sm:$0xff]   ;;  %v2300_v23 = vld [vmem:[%s3030_s1 + $0x68] ss:$16 sps:$4 sm:$0xff]   ;;  %v2306_v24 = vld [vmem:[%s3030_s1 + $0x4c] ss:$16 sps:$4 sm:$0xff]  }
   0x9   :  { %v2312_v25 = vld [vmem:[%s3030_s1 + $0x20] ss:$16 sps:$4 sm:$0xff]   ;;  %v2318_v26 = vld [vmem:[%s3030_s1 + $0x4] ss:$16 sps:$4 sm:$0xff]   ;;  %v2324_v27 = vld [vmem:[%s3030_s1 + $0x48] ss:$16 sps:$4 sm:$0xff]  }
   0xa   :  { %v2330_v28 = vld [vmem:[%s3030_s1 + $0x2c] ss:$16 sps:$4 sm:$0xff]   ;;  %v2336_v29 = vld [vmem:[%s3030_s1] ss:$16 sps:$4 sm:$0xff]   ;;  %v2343_v30 = vld [vmem:[%s3030_s1 + $0x28] ss:$16 sps:$4 sm:$0xff]  }
   0xb   :  { %230 = vmatpush1.bf16.msra.mxu0 %v2210_v8  ;;  %273 = vmatpush1.bf16.msra.mxu1 %v2252_v15  ;;  %v2349_v31 = vld [vmem:[%s3030_s1 + $0xc] ss:$16 sps:$4 sm:$0xff]   ;;  %v2356_v32 = vld [vmem:[%s3030_s1 + $0x8] ss:$16 sps:$4 sm:$0xff]   ;;  %v56_v34 = vld [vmem:[%s3031_s0] sm:$0xff] }
   0xc   :  { %231 = vmatprep.subr.bf16.mxu0 %v2217_v9  ;;  %274 = vmatprep.subr.bf16.mxu1 %v2258_v16  ;;  %v57_v36 = vld [vmem:[%s3031_s0 + $0x8] sm:$0xff]  ;;  %v60_v39 = vld [vmem:[%s3031_s0 + $0x20] sm:$0xff]  ;;  %v59_v53 = vld [vmem:[%s3031_s0 + $0x18] sm:$0xff] }
   0xd   :  { %v61_v43 = vld [vmem:[%s3031_s0 + $0x28] sm:$0xff]  ;;  %v58_v54 = vld [vmem:[%s3031_s0 + $0x10] sm:$0xff]  ;;  %v63_v55 = vld [vmem:[%s3031_s0 + $0x38] sm:$0xff] }
   0xe   :  { %v62_v63 = vld [vmem:[%s3031_s0 + $0x30] sm:$0xff] }
   0xf   :  { %232 = vmatpush1.bf16.msra.mxu0 %v2235_v12  ;;  %275 = vmatpush1.bf16.msra.mxu1 %v2276_v19 }
  0x10   :  { %233 = vmatprep.subr.bf16.mxu0 %v2240_v13  ;;  %276 = vmatprep.subr.bf16.mxu1 %v2282_v20 }
  0x13   :  { %234 = vmatpush1.bf16.msra.mxu0 %v2264_v17  ;;  %277 = vmatpush1.bf16.msra.mxu1 %v2300_v23 }
  0x14   :  { %235 = vmatprep.subr.bf16.mxu0 %v2270_v18  ;;  %278 = vmatprep.subr.bf16.mxu1 %v2306_v24 }
  0x17   :  { %236 = vmatpush1.bf16.msra.mxu0 %v2288_v21  ;;  %279 = vmatpush1.bf16.msra.mxu1 %v2324_v27 }
  0x18   :  { %237 = vmatprep.subr.bf16.mxu0 %v2293_v22  ;;  %280 = vmatprep.subr.bf16.mxu1 %v2330_v28 }
  0x1b   :  { %238 = vmatpush1.bf16.msra.mxu0 %v2312_v25  ;;  %281 = vmatpush1.bf16.msra.mxu1 %v2343_v30 }
  0x1c   :  { %239 = vmatprep.subr.bf16.mxu0 %v2318_v26  ;;  %282 = vmatprep.subr.bf16.mxu1 %v2349_v31 }
  0x1f   :  { %240 = vmatpush1.bf16.msra.mxu0 %v2336_v29  ;;  %283 = vmatpush1.bf16.msra.mxu1 %v2356_v32 }
  0x20   :  { %395 = vmatprep.subr.bf16.mxu0 %v2169_v0  ;;  %438 = vmatprep.subr.bf16.mxu1 %v2199_v6 }
  0x22   :  { %258 = vmatmul.mubr.bf16.vlgmr.msra.gmra.mxu0 %v2150_v33  ;;  %301 = vmatmul.mubr.bf16.vlgmr.msra.gmra.mxu1 %v2150_v33 }
  0x23   :  { %396 = vmatpush1.bf16.msra.mxu0 %v2176_v2  ;;  %427 = vmatprep.mubr.bf16.mxu0 %v2149_v1 }
  0x24   :  { %397 = vmatprep.subr.bf16.mxu0 %v2182_v3  ;;  %439 = vmatpush1.bf16.msra.mxu1 %v2204_v7 }
  0x25   :  { %440 = vmatprep.subr.bf16.mxu1 %v2223_v10  ;;  %470 = vmatprep.mubr.bf16.mxu1 %v2149_v1 }
  0x27   :  { %398 = vmatpush1.bf16.msra.mxu0 %v2188_v4 }
  0x28   :  { %399 = vmatprep.subr.bf16.mxu0 %v2194_v5  ;;  %441 = vmatpush1.bf16.msra.mxu1 %v2228_v11 }
  0x29   :  { %442 = vmatprep.subr.bf16.mxu1 %v2245_v14 }
  0x2b   :  { %400 = vmatpush1.bf16.msra.mxu0 %v2210_v8 }
  0x2c   :  { %401 = vmatprep.subr.bf16.mxu0 %v2217_v9  ;;  %443 = vmatpush1.bf16.msra.mxu1 %v2252_v15 }
  0x2d   :  { %444 = vmatprep.subr.bf16.mxu1 %v2258_v16 }
  0x2f   :  { %402 = vmatpush1.bf16.msra.mxu0 %v2235_v12 }
  0x30   :  { %403 = vmatprep.subr.bf16.mxu0 %v2240_v13  ;;  %445 = vmatpush1.bf16.msra.mxu1 %v2276_v19 }
  0x31   :  { %446 = vmatprep.subr.bf16.mxu1 %v2282_v20 }
  0x33   :  { %404 = vmatpush1.bf16.msra.mxu0 %v2264_v17 }
  0x34   :  { %405 = vmatprep.subr.bf16.mxu0 %v2270_v18  ;;  %447 = vmatpush1.bf16.msra.mxu1 %v2300_v23 }
  0x35   :  { %448 = vmatprep.subr.bf16.mxu1 %v2306_v24 }
  0x37   :  { %406 = vmatpush1.bf16.msra.mxu0 %v2288_v21 }
  0x38   :  { %407 = vmatprep.subr.bf16.mxu0 %v2293_v22  ;;  %449 = vmatpush1.bf16.msra.mxu1 %v2324_v27 }
  0x39   :  { %450 = vmatprep.subr.bf16.mxu1 %v2330_v28 }
  0x3b   :  { %408 = vmatpush1.bf16.msra.mxu0 %v2312_v25 }
  0x3c   :  { %409 = vmatprep.subr.bf16.mxu0 %v2318_v26  ;;  %451 = vmatpush1.bf16.msra.mxu1 %v2343_v30 }
  0x3d   :  { %452 = vmatprep.subr.bf16.mxu1 %v2349_v31 }
  0x3f   :  { %410 = vmatpush1.bf16.msra.mxu0 %v2336_v29 }
  0x40   :  { %566 = vmatprep.subr.bf16.mxu0 %v2169_v0  ;;  %453 = vmatpush1.bf16.msra.mxu1 %v2356_v32 }
  0x41   :  { %609 = vmatprep.subr.bf16.mxu1 %v2199_v6 }
  0xe2   :  { %v259_v35 = vpop.f32.mrf.mxu0  ;;  %v302_v46 = vpop.f32.mrf.mxu1 }
  0xe3   :  { %v311_v37 = vadd.f32 %v259_v35, %v56_v34  ;;  %v313_v58 = vadd.f32 %v302_v46, %v58_v54 }
  0xe4   :  { %v261_v38 = vpop.f32.mrf.mxu0  ;;  %v304_v50 = vpop.f32.mrf.mxu1 }
  0xe5   :  { %v1614_v40 = vmul.f32 -1.442695, %v311_v37  ;;  %v312_v41 = vadd.f32 %v261_v38, %v57_v36  ;;  %v314_v57 = vadd.f32 %v304_v50, %v59_v53 }
  0xe6   :  { %v263_v42 = vpop.f32.mrf.mxu0  ;;  %v306_v52 = vpop.f32.mrf.mxu1 }
  0xe7   :  { %1861 = vpow2.f32 %v1614_v40  ;;  %v1616_v44 = vmul.f32 -1.442695, %v312_v41  ;;  %v315_v45 = vadd.f32 %v263_v42, %v60_v39  ;;  %v1618_v61 = vmul.f32 -1.442695, %v314_v57 }
  0xe8   :  { %v265_v47 = vpop.f32.mrf.mxu0  ;;  %v308_v56 = vpop.f32.mrf.mxu1  ;;  %v317_v37 = vadd.f32 %v306_v52, %v62_v63 }
  0xe9   :  { %1863 = vpow2.f32 %v1616_v44  ;;  %v1615_v48 = vmul.f32 -1.442695, %v315_v45  ;;  %v316_v49 = vadd.f32 %v265_v47, %v61_v43  ;;  %v318_v59 = vadd.f32 %v308_v56, %v63_v55 }
  0xeb   :  { %1865 = vpow2.f32 %v1615_v48  ;;  %v1617_v51 = vmul.f32 -1.442695, %v316_v49  ;;  %v1619_v34 = vmul.f32 -1.442695, %v318_v59 }
  0xed   :  { %1867 = vpow2.f32 %v1617_v51 }
  0xee   :  { %1869 = vtanh.f32 %v313_v58 }
  0xf4   :  { %v1862_v60 = vpop.eup %1861 }
  0xf5   :  { %v325_v62 = vadd.f32 1.0, %v1862_v60 }
  0xf6   :  { %v1864_v33 = vpop.eup %1863 }
  0xf7   :  { %1871 = vrcp.f32 %v325_v62  ;;  %v337_v35 = vadd.f32 1.0, %v1864_v33  ;;  %v1622_v33 = vld [vmem:[%s3031_s0 + $0x40] sm:$0xff] }
  0xf8   :  { %v1866_v36 = vpop.eup %1865  ;;  %1873 = vpow2.f32 %v1618_v61 }
  0xf9   :  { %1875 = vrcp.f32 %v337_v35  ;;  %v326_v38 = vadd.f32 1.0, %v1866_v36  ;;  %v1623_v35 = vld [vmem:[%s3031_s0 + $0x48] sm:$0xff] }
  0xfa   :  { %v1868_v39 = vpop.eup %1867  ;;  %1877 = vpow2.f32 %v1619_v34 }
  0xfb   :  { %1879 = vrcp.f32 %v326_v38  ;;  %v338_v40 = vadd.f32 1.0, %v1868_v39  ;;  %v1870_v41 = vpop.eup %1869  ;;  %v1626_v39 = vld [vmem:[%s3031_s0 + $0x60] sm:$0xff] }
  0xfc   :  { %1881 = vtanh.f32 %v317_v37 }
  0xfd   :  { %1883 = vrcp.f32 %v338_v40 }
 0x104   :  { %v1872_v42 = vpop.eup %1871 }
 0x105   :  { %v1874_v43 = vpop.eup %1873  ;;  %v359_v47 = vmul.f32 %v1872_v42, %v1870_v41 }
 0x106   :  { %v1876_v44 = vpop.eup %1875  ;;  %v351_v49 = vadd.f32 1.0, %v1874_v43  ;;  %v1627_v43 = vld [vmem:[%s3031_s0 + $0x68] sm:$0xff] }
 0x107   :  { %v1878_v45 = vpop.eup %1877  ;;  %v357_v46 = vmul.f32 0.0, %v1876_v44 }
 0x108   :  { %v1880_v48 = vpop.eup %1879  ;;  %v352_v53 = vadd.f32 1.0, %v1878_v45  ;;  %1885 = vrcp.f32 %v351_v49 }
 0x109   :  { %v1882_v50 = vpop.eup %1881  ;;  %v2420_v51 = vadd.f32 %v359_v47, %v357_v46 }
 0x10a   :  { %v1884_v52 = vpop.eup %1883  ;;  %v360_v55 = vmul.f32 %v1882_v50, %v1880_v48 }
 0x10b   :  { %v358_v54 = vmul.f32 0.0, %v1884_v52  ;;  %1887 = vtanh.f32 %v2420_v51 }
 0x10c   :  { %1889 = vrcp.f32 %v352_v53  ;;  %v1625_v53 = vld [vmem:[%s3031_s0 + $0x58] sm:$0xff] }
 0x10d   :  { %v2423_v56 = vadd.f32 %v360_v55, %v358_v54  ;;  %v1624_v54 = vld [vmem:[%s3031_s0 + $0x50] sm:$0xff]  ;;  %v1629_v55 = vld [vmem:[%s3031_s0 + $0x78] sm:$0xff] }
 0x10f   :  { %1891 = vtanh.f32 %v2423_v56 }
 0x115   :  { %v1886_v57 = vpop.eup %1885 }
 0x118   :  { %v1888_v58 = vpop.eup %1887 }
 0x119   :  { %v1890_v59 = vpop.eup %1889  ;;  %v365_v61 = vmul.f32 %v1888_v58, %v1886_v57 }
 0x11c   :  { %v1892_v60 = vpop.eup %1891 }
 0x11d   :  { %v366_v62 = vmul.f32 %v1892_v60, %v1890_v59 }
 0x11f   :  { %v1767_v63 = vpack.c.bf16 %v366_v62, %v365_v61 }
 0x121   :  { %1768 = vst [vmem:[%s3032_s2] sm:$0xff] %v1767_v63   ;;  %428 = vmatmul.mubr.bf16.vlgmr.msra.gmra.mxu0 %v1767_v63  ;;  %471 = vmatmul.mubr.bf16.vlgmr.msra.gmra.mxu1 %v1767_v63 }
 0x122   :  { %567 = vmatpush1.bf16.msra.mxu0 %v2176_v2  ;;  %610 = vmatpush1.bf16.msra.mxu1 %v2204_v7 }
 0x123   :  { %568 = vmatprep.subr.bf16.mxu0 %v2182_v3  ;;  %611 = vmatprep.subr.bf16.mxu1 %v2223_v10 }
 0x124   :  { %598 = vmatprep.mubr.bf16.mxu0 %v2149_v1  ;;  %641 = vmatprep.mubr.bf16.mxu1 %v2149_v1 }
 0x126   :  { %569 = vmatpush1.bf16.msra.mxu0 %v2188_v4  ;;  %612 = vmatpush1.bf16.msra.mxu1 %v2228_v11 }
 0x127   :  { %570 = vmatprep.subr.bf16.mxu0 %v2194_v5  ;;  %613 = vmatprep.subr.bf16.mxu1 %v2245_v14 }
 0x12a   :  { %571 = vmatpush1.bf16.msra.mxu0 %v2210_v8  ;;  %614 = vmatpush1.bf16.msra.mxu1 %v2252_v15 }
 0x12b   :  { %572 = vmatprep.subr.bf16.mxu0 %v2217_v9  ;;  %615 = vmatprep.subr.bf16.mxu1 %v2258_v16 }
 0x12e   :  { %573 = vmatpush1.bf16.msra.mxu0 %v2235_v12  ;;  %616 = vmatpush1.bf16.msra.mxu1 %v2276_v19 }
 0x12f   :  { %574 = vmatprep.subr.bf16.mxu0 %v2240_v13  ;;  %617 = vmatprep.subr.bf16.mxu1 %v2282_v20 }
 0x132   :  { %575 = vmatpush1.bf16.msra.mxu0 %v2264_v17  ;;  %618 = vmatpush1.bf16.msra.mxu1 %v2300_v23 }
 0x133   :  { %576 = vmatprep.subr.bf16.mxu0 %v2270_v18  ;;  %619 = vmatprep.subr.bf16.mxu1 %v2306_v24 }
 0x136   :  { %577 = vmatpush1.bf16.msra.mxu0 %v2288_v21  ;;  %620 = vmatpush1.bf16.msra.mxu1 %v2324_v27 }
 0x137   :  { %578 = vmatprep.subr.bf16.mxu0 %v2293_v22  ;;  %621 = vmatprep.subr.bf16.mxu1 %v2330_v28 }
 0x13a   :  { %579 = vmatpush1.bf16.msra.mxu0 %v2312_v25  ;;  %622 = vmatpush1.bf16.msra.mxu1 %v2343_v30 }
 0x13b   :  { %580 = vmatprep.subr.bf16.mxu0 %v2318_v26  ;;  %623 = vmatprep.subr.bf16.mxu1 %v2349_v31 }
 0x13e   :  { %581 = vmatpush1.bf16.msra.mxu0 %v2336_v29  ;;  %624 = vmatpush1.bf16.msra.mxu1 %v2356_v32 }
 0x13f   :  { %737 = vmatprep.subr.bf16.mxu0 %v2169_v0  ;;  %780 = vmatprep.subr.bf16.mxu1 %v2199_v6 }
 0x1e1   :  { %v429_v34 = vpop.f32.mrf.mxu0  ;;  %v472_v37 = vpop.f32.mrf.mxu1 }
 0x1e2   :  { %v481_v36 = vadd.f32 %v1622_v33, %v429_v34  ;;  %v483_v59 = vadd.f32 %v1624_v54, %v472_v37  ;;  %v1628_v33 = vld [vmem:[%s3031_s0 + $0x70] sm:$0xff] }
 0x1e3   :  { %v431_v38 = vpop.f32.mrf.mxu0  ;;  %v474_v45 = vpop.f32.mrf.mxu1 }
 0x1e4   :  { %v1630_v40 = vmul.f32 -1.442695, %v481_v36  ;;  %v482_v41 = vadd.f32 %v1623_v35, %v431_v38  ;;  %v484_v58 = vadd.f32 %v1625_v53, %v474_v45 }
 0x1e5   :  { %v433_v42 = vpop.f32.mrf.mxu0  ;;  %v476_v50 = vpop.f32.mrf.mxu1 }
 0x1e6   :  { %1893 = vpow2.f32 %v1630_v40  ;;  %v1632_v44 = vmul.f32 -1.442695, %v482_v41  ;;  %v485_v46 = vadd.f32 %v1626_v39, %v433_v42  ;;  %v1634_v62 = vmul.f32 -1.442695, %v484_v58 }
 0x1e7   :  { %v435_v47 = vpop.f32.mrf.mxu0  ;;  %v478_v57 = vpop.f32.mrf.mxu1  ;;  %v487_v39 = vadd.f32 %v1628_v33, %v476_v50 }
 0x1e8   :  { %1895 = vpow2.f32 %v1632_v44  ;;  %v1631_v48 = vmul.f32 -1.442695, %v485_v46  ;;  %v486_v49 = vadd.f32 %v1627_v43, %v435_v47  ;;  %v488_v60 = vadd.f32 %v1629_v55, %v478_v57 }
 0x1ea   :  { %1897 = vpow2.f32 %v1631_v48  ;;  %v1633_v52 = vmul.f32 -1.442695, %v486_v49  ;;  %v1635_v35 = vmul.f32 -1.442695, %v488_v60 }
 0x1ec   :  { %1899 = vpow2.f32 %v1633_v52 }
 0x1ed   :  { %1901 = vtanh.f32 %v483_v59 }
 0x1f3   :  { %v1894_v61 = vpop.eup %1893 }
 0x1f4   :  { %v495_v63 = vadd.f32 1.0, %v1894_v61 }
 0x1f5   :  { %v1896_v34 = vpop.eup %1895 }
 0x1f6   :  { %1903 = vrcp.f32 %v495_v63  ;;  %v507_v36 = vadd.f32 1.0, %v1896_v34 }
 0x1f7   :  { %v1898_v38 = vpop.eup %1897  ;;  %1905 = vpow2.f32 %v1634_v62 }
 0x1f8   :  { %1907 = vrcp.f32 %v507_v36  ;;  %v496_v40 = vadd.f32 1.0, %v1898_v38  ;;  %v1641_v36 = vld [vmem:[%s3031_s0 + $0x88] sm:$0xff] }
 0x1f9   :  { %v1900_v41 = vpop.eup %1899  ;;  %1909 = vpow2.f32 %v1635_v35 }
 0x1fa   :  { %1911 = vrcp.f32 %v496_v40  ;;  %v508_v37 = vadd.f32 1.0, %v1900_v41  ;;  %v1902_v42 = vpop.eup %1901  ;;  %v1644_v41 = vld [vmem:[%s3031_s0 + $0xa0] sm:$0xff] }
 0x1fb   :  { %1913 = vtanh.f32 %v487_v39 }
 0x1fc   :  { %1915 = vrcp.f32 %v508_v37 }
 0x203   :  { %v1904_v43 = vpop.eup %1903 }
 0x204   :  { %v1906_v44 = vpop.eup %1905  ;;  %v529_v47 = vmul.f32 %v1904_v43, %v1902_v42 }
 0x205   :  { %v1908_v45 = vpop.eup %1907  ;;  %v521_v52 = vadd.f32 1.0, %v1906_v44  ;;  %v1645_v44 = vld [vmem:[%s3031_s0 + $0xa8] sm:$0xff] }
 0x206   :  { %v1910_v46 = vpop.eup %1909  ;;  %v527_v48 = vmul.f32 %v1908_v45, %v2420_v51 }
 0x207   :  { %v1912_v49 = vpop.eup %1911  ;;  %v522_v55 = vadd.f32 1.0, %v1910_v46  ;;  %1917 = vrcp.f32 %v521_v52 }
 0x208   :  { %v1914_v53 = vpop.eup %1913  ;;  %v2488_v50 = vadd.f32 %v529_v47, %v527_v48 }
 0x209   :  { %v1916_v54 = vpop.eup %1915  ;;  %v530_v57 = vmul.f32 %v1914_v53, %v1912_v49 }
 0x20a   :  { %v528_v58 = vmul.f32 %v1916_v54, %v2423_v56  ;;  %1919 = vtanh.f32 %v2488_v50  ;;  %v1640_v56 = vld [vmem:[%s3031_s0 + $0x80] sm:$0xff] }
 0x20b   :  { %1921 = vrcp.f32 %v522_v55  ;;  %v1643_v55 = vld [vmem:[%s3031_s0 + $0x98] sm:$0xff] }
 0x20c   :  { %v2491_v59 = vadd.f32 %v530_v57, %v528_v58  ;;  %v1642_v57 = vld [vmem:[%s3031_s0 + $0x90] sm:$0xff]  ;;  %v1647_v58 = vld [vmem:[%s3031_s0 + $0xb8] sm:$0xff] }
 0x20e   :  { %1923 = vtanh.f32 %v2491_v59 }
 0x214   :  { %v1918_v60 = vpop.eup %1917 }
 0x217   :  { %v1920_v51 = vpop.eup %1919 }
 0x218   :  { %v1922_v61 = vpop.eup %1921  ;;  %v535_v63 = vmul.f32 %v1920_v51, %v1918_v60 }
 0x21b   :  { %v1924_v62 = vpop.eup %1923 }
 0x21c   :  { %v536_v33 = vmul.f32 %v1924_v62, %v1922_v61 }
 0x21e   :  { %v1772_v34 = vpack.c.bf16 %v536_v33, %v535_v63 }
 0x220   :  { %1804 = vst [vmem:[%s3032_s2 + $0x8] sm:$0xff] %v1772_v34   ;;  %599 = vmatmul.mubr.bf16.vlgmr.msra.gmra.mxu0 %v1772_v34  ;;  %642 = vmatmul.mubr.bf16.vlgmr.msra.gmra.mxu1 %v1772_v34 }
 0x221   :  { %738 = vmatpush1.bf16.msra.mxu0 %v2176_v2  ;;  %781 = vmatpush1.bf16.msra.mxu1 %v2204_v7 }
 0x222   :  { %739 = vmatprep.subr.bf16.mxu0 %v2182_v3  ;;  %782 = vmatprep.subr.bf16.mxu1 %v2223_v10 }
 0x223   :  { %769 = vmatprep.mubr.bf16.mxu0 %v2149_v1  ;;  %812 = vmatprep.mubr.bf16.mxu1 %v2149_v1 }
 0x225   :  { %740 = vmatpush1.bf16.msra.mxu0 %v2188_v4  ;;  %783 = vmatpush1.bf16.msra.mxu1 %v2228_v11 }
 0x226   :  { %741 = vmatprep.subr.bf16.mxu0 %v2194_v5  ;;  %784 = vmatprep.subr.bf16.mxu1 %v2245_v14 }
 0x229   :  { %742 = vmatpush1.bf16.msra.mxu0 %v2210_v8  ;;  %785 = vmatpush1.bf16.msra.mxu1 %v2252_v15 }
 0x22a   :  { %743 = vmatprep.subr.bf16.mxu0 %v2217_v9  ;;  %786 = vmatprep.subr.bf16.mxu1 %v2258_v16 }
 0x22d   :  { %744 = vmatpush1.bf16.msra.mxu0 %v2235_v12  ;;  %787 = vmatpush1.bf16.msra.mxu1 %v2276_v19 }
 0x22e   :  { %745 = vmatprep.subr.bf16.mxu0 %v2240_v13  ;;  %788 = vmatprep.subr.bf16.mxu1 %v2282_v20 }
 0x231   :  { %746 = vmatpush1.bf16.msra.mxu0 %v2264_v17  ;;  %789 = vmatpush1.bf16.msra.mxu1 %v2300_v23 }
 0x232   :  { %747 = vmatprep.subr.bf16.mxu0 %v2270_v18  ;;  %790 = vmatprep.subr.bf16.mxu1 %v2306_v24 }
 0x235   :  { %748 = vmatpush1.bf16.msra.mxu0 %v2288_v21  ;;  %791 = vmatpush1.bf16.msra.mxu1 %v2324_v27 }
 0x236   :  { %749 = vmatprep.subr.bf16.mxu0 %v2293_v22  ;;  %792 = vmatprep.subr.bf16.mxu1 %v2330_v28 }
 0x239   :  { %750 = vmatpush1.bf16.msra.mxu0 %v2312_v25  ;;  %793 = vmatpush1.bf16.msra.mxu1 %v2343_v30 }
 0x23a   :  { %751 = vmatprep.subr.bf16.mxu0 %v2318_v26  ;;  %794 = vmatprep.subr.bf16.mxu1 %v2349_v31 }
 0x23d   :  { %752 = vmatpush1.bf16.msra.mxu0 %v2336_v29  ;;  %795 = vmatpush1.bf16.msra.mxu1 %v2356_v32 }
 0x23e   :  { %908 = vmatprep.subr.bf16.mxu0 %v2169_v0  ;;  %951 = vmatprep.subr.bf16.mxu1 %v2199_v6 }
 0x2e0   :  { %v600_v35 = vpop.f32.mrf.mxu0  ;;  %v643_v39 = vpop.f32.mrf.mxu1 }
 0x2e1   :  { %v652_v38 = vadd.f32 %v1640_v56, %v600_v35  ;;  %v654_v61 = vadd.f32 %v1642_v57, %v643_v39  ;;  %v1646_v56 = vld [vmem:[%s3031_s0 + $0xb0] sm:$0xff] }
 0x2e2   :  { %v602_v40 = vpop.f32.mrf.mxu0  ;;  %v645_v46 = vpop.f32.mrf.mxu1 }
 0x2e3   :  { %v1648_v37 = vmul.f32 -1.442695, %v652_v38  ;;  %v653_v42 = vadd.f32 %v1641_v36, %v602_v40  ;;  %v655_v51 = vadd.f32 %v1643_v55, %v645_v46 }
 0x2e4   :  { %v604_v43 = vpop.f32.mrf.mxu0  ;;  %v647_v53 = vpop.f32.mrf.mxu1 }
 0x2e5   :  { %1925 = vpow2.f32 %v1648_v37  ;;  %v1650_v45 = vmul.f32 -1.442695, %v653_v42  ;;  %v656_v47 = vadd.f32 %v1644_v41, %v604_v43  ;;  %v1652_v33 = vmul.f32 -1.442695, %v655_v51 }
 0x2e6   :  { %v606_v48 = vpop.f32.mrf.mxu0  ;;  %v649_v60 = vpop.f32.mrf.mxu1  ;;  %v658_v41 = vadd.f32 %v1646_v56, %v647_v53 }
 0x2e7   :  { %1927 = vpow2.f32 %v1650_v45  ;;  %v1649_v49 = vmul.f32 -1.442695, %v656_v47  ;;  %v657_v52 = vadd.f32 %v1645_v44, %v606_v48  ;;  %v659_v62 = vadd.f32 %v1647_v58, %v649_v60 }
 0x2e9   :  { %1929 = vpow2.f32 %v1649_v49  ;;  %v1651_v54 = vmul.f32 -1.442695, %v657_v52  ;;  %v1653_v36 = vmul.f32 -1.442695, %v659_v62 }
 0x2eb   :  { %1931 = vpow2.f32 %v1651_v54 }
 0x2ec   :  { %1933 = vtanh.f32 %v654_v61 }
 0x2f2   :  { %v1926_v63 = vpop.eup %1925 }
 0x2f3   :  { %v666_v34 = vadd.f32 1.0, %v1926_v63 }
 0x2f4   :  { %v1928_v35 = vpop.eup %1927 }
 0x2f5   :  { %1935 = vrcp.f32 %v666_v34  ;;  %v678_v38 = vadd.f32 1.0, %v1928_v35 }
 0x2f6   :  { %v1930_v40 = vpop.eup %1929  ;;  %1937 = vpow2.f32 %v1652_v33 }
 0x2f7   :  { %1939 = vrcp.f32 %v678_v38  ;;  %v667_v37 = vadd.f32 1.0, %v1930_v40 }
 0x2f8   :  { %v1932_v42 = vpop.eup %1931  ;;  %1941 = vpow2.f32 %v1653_v36 }
 0x2f9   :  { %1943 = vrcp.f32 %v667_v37  ;;  %v679_v39 = vadd.f32 1.0, %v1932_v42  ;;  %v1934_v43 = vpop.eup %1933 }
 0x2fa   :  { %1945 = vtanh.f32 %v658_v41 }
 0x2fb   :  { %1947 = vrcp.f32 %v679_v39  ;;  %v1664_v39 = vld [vmem:[%s3031_s0 + $0xf0] sm:$0xff] }
 0x302   :  { %v1936_v44 = vpop.eup %1935 }
 0x303   :  { %v1938_v45 = vpop.eup %1937  ;;  %v700_v48 = vmul.f32 %v1936_v44, %v1934_v43 }
 0x304   :  { %v1940_v46 = vpop.eup %1939  ;;  %v692_v54 = vadd.f32 1.0, %v1938_v45 }
 0x305   :  { %v1942_v47 = vpop.eup %1941  ;;  %v698_v49 = vmul.f32 %v1940_v46, %v2488_v50 }
 0x306   :  { %v1944_v52 = vpop.eup %1943  ;;  %v693_v58 = vadd.f32 1.0, %v1942_v47  ;;  %1949 = vrcp.f32 %v692_v54 }
 0x307   :  { %v1946_v55 = vpop.eup %1945  ;;  %v2557_v53 = vadd.f32 %v700_v48, %v698_v49 }
 0x308   :  { %v1948_v57 = vpop.eup %1947  ;;  %v701_v60 = vmul.f32 %v1946_v55, %v1944_v52 }
 0x309   :  { %v699_v51 = vmul.f32 %v1948_v57, %v2491_v59  ;;  %1951 = vtanh.f32 %v2557_v53 }
 0x30a   :  { %1953 = vrcp.f32 %v693_v58 }
 0x30b   :  { %v2560_v61 = vadd.f32 %v701_v60, %v699_v51 }
 0x30d   :  { %1955 = vtanh.f32 %v2560_v61 }
 0x313   :  { %v1950_v62 = vpop.eup %1949 }
 0x316   :  { %v1952_v50 = vpop.eup %1951 }
 0x317   :  { %v1954_v63 = vpop.eup %1953  ;;  %v706_v34 = vmul.f32 %v1952_v50, %v1950_v62 }
 0x31a   :  { %v1956_v33 = vpop.eup %1955 }
 0x31b   :  { %v707_v56 = vmul.f32 %v1956_v33, %v1954_v63 }
 0x31d   :  { %v1777_v35 = vpack.c.bf16 %v707_v56, %v706_v34 }
 0x31f   :  { %1805 = vst [vmem:[%s3032_s2 + $0x10] sm:$0xff] %v1777_v35   ;;  %770 = vmatmul.mubr.bf16.vlgmr.msra.gmra.mxu0 %v1777_v35  ;;  %813 = vmatmul.mubr.bf16.vlgmr.msra.gmra.mxu1 %v1777_v35 }
 0x320   :  { %909 = vmatpush1.bf16.msra.mxu0 %v2176_v2  ;;  %952 = vmatpush1.bf16.msra.mxu1 %v2204_v7  ;;  %v1658_v2 = vld [vmem:[%s3031_s0 + $0xc0] sm:$0xff] }
 0x321   :  { %910 = vmatprep.subr.bf16.mxu0 %v2182_v3  ;;  %953 = vmatprep.subr.bf16.mxu1 %v2223_v10 }
 0x322   :  { %940 = vmatprep.mubr.bf16.mxu0 %v2149_v1  ;;  %983 = vmatprep.mubr.bf16.mxu1 %v2149_v1 }
 0x324   :  { %911 = vmatpush1.bf16.msra.mxu0 %v2188_v4  ;;  %954 = vmatpush1.bf16.msra.mxu1 %v2228_v11  ;;  %v1659_v4 = vld [vmem:[%s3031_s0 + $0xc8] sm:$0xff] }
 0x325   :  { %912 = vmatprep.subr.bf16.mxu0 %v2194_v5  ;;  %955 = vmatprep.subr.bf16.mxu1 %v2245_v14 }
 0x328   :  { %913 = vmatpush1.bf16.msra.mxu0 %v2210_v8  ;;  %956 = vmatpush1.bf16.msra.mxu1 %v2252_v15 }
 0x329   :  { %914 = vmatprep.subr.bf16.mxu0 %v2217_v9  ;;  %957 = vmatprep.subr.bf16.mxu1 %v2258_v16  ;;  %v1662_v9 = vld [vmem:[%s3031_s0 + $0xe0] sm:$0xff] }
 0x32c   :  { %915 = vmatpush1.bf16.msra.mxu0 %v2235_v12  ;;  %958 = vmatpush1.bf16.msra.mxu1 %v2276_v19 }
 0x32d   :  { %916 = vmatprep.subr.bf16.mxu0 %v2240_v13  ;;  %959 = vmatprep.subr.bf16.mxu1 %v2282_v20  ;;  %v1661_v20 = vld [vmem:[%s3031_s0 + $0xd8] sm:$0xff] }
 0x330   :  { %917 = vmatpush1.bf16.msra.mxu0 %v2264_v17  ;;  %960 = vmatpush1.bf16.msra.mxu1 %v2300_v23 }
 0x331   :  { %918 = vmatprep.subr.bf16.mxu0 %v2270_v18  ;;  %961 = vmatprep.subr.bf16.mxu1 %v2306_v24 }
 0x334   :  { %919 = vmatpush1.bf16.msra.mxu0 %v2288_v21  ;;  %962 = vmatpush1.bf16.msra.mxu1 %v2324_v27  ;;  %v1660_v21 = vld [vmem:[%s3031_s0 + $0xd0] sm:$0xff] }
 0x335   :  { %920 = vmatprep.subr.bf16.mxu0 %v2293_v22  ;;  %963 = vmatprep.subr.bf16.mxu1 %v2330_v28  ;;  %v1665_v22 = vld [vmem:[%s3031_s0 + $0xf8] sm:$0xff] }
 0x338   :  { %921 = vmatpush1.bf16.msra.mxu0 %v2312_v25  ;;  %964 = vmatpush1.bf16.msra.mxu1 %v2343_v30 }
 0x339   :  { %922 = vmatprep.subr.bf16.mxu0 %v2318_v26  ;;  %965 = vmatprep.subr.bf16.mxu1 %v2349_v31 }
 0x33c   :  { %923 = vmatpush1.bf16.msra.mxu0 %v2336_v29  ;;  %966 = vmatpush1.bf16.msra.mxu1 %v2356_v32 }
 0x33d   :  { %1079 = vmatprep.subr.bf16.mxu0 %v2169_v0  ;;  %1122 = vmatprep.subr.bf16.mxu1 %v2199_v6  ;;  %v1663_v6 = vld [vmem:[%s3031_s0 + $0xe8] sm:$0xff] }
 0x3df   :  { %v771_v3 = vpop.f32.mrf.mxu0  ;;  %v814_v7 = vpop.f32.mrf.mxu1 }
 0x3e0   :  { %v823_v5 = vadd.f32 %v1658_v2, %v771_v3  ;;  %v825_v38 = vadd.f32 %v1660_v21, %v814_v7  ;;  %v2713_v21 = vld [vmem:[%s3030_s1 + $0x80] ss:$16 sps:$4 sm:$0xff]  }
 0x3e1   :  { %v773_v8 = vpop.f32.mrf.mxu0  ;;  %v816_v13 = vpop.f32.mrf.mxu1 }
 0x3e2   :  { %v1666_v10 = vmul.f32 -1.442695, %v823_v5  ;;  %v824_v0 = vadd.f32 %v1659_v4, %v773_v8  ;;  %v826_v36 = vadd.f32 %v1661_v20, %v816_v13  ;;  %v2665_v13 = vld [vmem:[%s3030_s1 + $0xc0] ss:$16 sps:$4 sm:$0xff]   ;;  %v2707_v20 = vld [vmem:[%s3030_s1 + $0x8c] ss:$16 sps:$4 sm:$0xff]  }
 0x3e3   :  { %v775_v11 = vpop.f32.mrf.mxu0  ;;  %v818_v18 = vpop.f32.mrf.mxu1 }
 0x3e4   :  { %1957 = vpow2.f32 %v1666_v10  ;;  %v1668_v12 = vmul.f32 -1.442695, %v824_v0  ;;  %v827_v14 = vadd.f32 %v1662_v9, %v775_v11  ;;  %v1670_v37 = vmul.f32 -1.442695, %v826_v36  ;;  %v2645_v11 = vld [vmem:[%s3030_s1 + $0xe8] ss:$16 sps:$4 sm:$0xff]  }
 0x3e5   :  { %v777_v15 = vpop.f32.mrf.mxu0  ;;  %v820_v59 = vpop.f32.mrf.mxu1  ;;  %v829_v47 = vadd.f32 %v1664_v39, %v818_v18  ;;  %v2695_v18 = vld [vmem:[%s3030_s1 + $0xa8] ss:$16 sps:$4 sm:$0xff]   ;;  %v2731_v36 = vld [vmem:[%s3030_s1 + $0x6c] ss:$16 sps:$4 sm:$0xff]  }
 0x3e6   :  { %1959 = vpow2.f32 %v1668_v12  ;;  %v1667_v16 = vmul.f32 -1.442695, %v827_v14  ;;  %v828_v17 = vadd.f32 %v1663_v6, %v777_v15  ;;  %v830_v40 = vadd.f32 %v1665_v22, %v820_v59  ;;  %v2651_v6 = vld [vmem:[%s3030_s1 + $0xc4] ss:$16 sps:$4 sm:$0xff]   ;;  %v2657_v12 = vld [vmem:[%s3030_s1 + $0xcc] ss:$16 sps:$4 sm:$0xff]  }
 0x3e7   :  { %v2671_v14 = vld [vmem:[%s3030_s1 + $0xc8] ss:$16 sps:$4 sm:$0xff]   ;;  %v2677_v15 = vld [vmem:[%s3030_s1 + $0xa4] ss:$16 sps:$4 sm:$0xff]  }
 0x3e8   :  { %1961 = vpow2.f32 %v1667_v16  ;;  %v1669_v19 = vmul.f32 -1.442695, %v828_v17  ;;  %v1671_v44 = vmul.f32 -1.442695, %v830_v40  ;;  %v2683_v16 = vld [vmem:[%s3030_s1 + $0xac] ss:$16 sps:$4 sm:$0xff]  }
 0x3e9   :  { %v2689_v17 = vld [vmem:[%s3030_s1 + $0xa0] ss:$16 sps:$4 sm:$0xff]   ;;  %v2719_v22 = vld [vmem:[%s3030_s1 + $0x88] ss:$16 sps:$4 sm:$0xff]   ;;  %v2725_v59 = vld [vmem:[%s3030_s1 + $0x64] ss:$16 sps:$4 sm:$0xff]  }
 0x3ea   :  { %1963 = vpow2.f32 %v1669_v19  ;;  %v2701_v19 = vld [vmem:[%s3030_s1 + $0x84] ss:$16 sps:$4 sm:$0xff]  }
 0x3eb   :  { %1965 = vtanh.f32 %v825_v38  ;;  %v2737_v38 = vld [vmem:[%s3030_s1 + $0x60] ss:$16 sps:$4 sm:$0xff]   ;;  %v2744_v40 = vld [vmem:[%s3030_s1 + $0x44] ss:$16 sps:$4 sm:$0xff]  }
 0x3f1   :  { %v1958_v41 = vpop.eup %1957 }
 0x3f2   :  { %v837_v42 = vadd.f32 1.0, %v1958_v41  ;;  %v2751_v41 = vld [vmem:[%s3030_s1 + $0x40] ss:$16 sps:$4 sm:$0xff]  }
 0x3f3   :  { %v1960_v43 = vpop.eup %1959 }
 0x3f4   :  { %1967 = vrcp.f32 %v837_v42  ;;  %v849_v45 = vadd.f32 1.0, %v1960_v43  ;;  %v1681_v43 = vld [vmem:[%s3031_s0 + $0x128] sm:$0xff] }
 0x3f5   :  { %v1962_v46 = vpop.eup %1961  ;;  %1969 = vpow2.f32 %v1670_v37 }
 0x3f6   :  { %1971 = vrcp.f32 %v849_v45  ;;  %v838_v48 = vadd.f32 1.0, %v1962_v46 }
 0x3f7   :  { %v1964_v49 = vpop.eup %1963  ;;  %1973 = vpow2.f32 %v1671_v44 }
 0x3f8   :  { %1975 = vrcp.f32 %v838_v48  ;;  %v850_v52 = vadd.f32 1.0, %v1964_v49  ;;  %v1966_v54 = vpop.eup %1965 }
 0x3f9   :  { %1977 = vtanh.f32 %v829_v47 }
 0x3fa   :  { %1979 = vrcp.f32 %v850_v52 }
 0x401   :  { %v1968_v55 = vpop.eup %1967 }
 0x402   :  { %v1970_v57 = vpop.eup %1969  ;;  %v871_v51 = vmul.f32 %v1968_v55, %v1966_v54  ;;  %v1679_v55 = vld [vmem:[%s3031_s0 + $0x118] sm:$0xff] }
 0x403   :  { %v1972_v58 = vpop.eup %1971  ;;  %v863_v63 = vadd.f32 1.0, %v1970_v57  ;;  %v1678_v57 = vld [vmem:[%s3031_s0 + $0x110] sm:$0xff] }
 0x404   :  { %v1974_v60 = vpop.eup %1973  ;;  %v869_v62 = vmul.f32 %v1972_v58, %v2557_v53  ;;  %v1683_v58 = vld [vmem:[%s3031_s0 + $0x138] sm:$0xff] }
 0x405   :  { %v1976_v50 = vpop.eup %1975  ;;  %v864_v35 = vadd.f32 1.0, %v1974_v60  ;;  %1981 = vrcp.f32 %v863_v63 }
 0x406   :  { %v1978_v33 = vpop.eup %1977  ;;  %v2626_v34 = vadd.f32 %v871_v51, %v869_v62 }
 0x407   :  { %v1980_v56 = vpop.eup %1979  ;;  %v872_v2 = vmul.f32 %v1978_v33, %v1976_v50 }
 0x408   :  { %v870_v3 = vmul.f32 %v1980_v56, %v2560_v61  ;;  %1983 = vtanh.f32 %v2626_v34  ;;  %v2639_v61 = vld [vmem:[%s3030_s1 + $0xe0] ss:$16 sps:$4 sm:$0xff]  }
 0x409   :  { %1985 = vrcp.f32 %v864_v35  ;;  %v1682_v35 = vld [vmem:[%s3031_s0 + $0x130] sm:$0xff] }
 0x40a   :  { %v2629_v4 = vadd.f32 %v872_v2, %v870_v3 }
 0x40c   :  { %1987 = vtanh.f32 %v2629_v4 }
 0x412   :  { %v1982_v5 = vpop.eup %1981 }
 0x415   :  { %v1984_v53 = vpop.eup %1983 }
 0x416   :  { %v1986_v7 = vpop.eup %1985  ;;  %v877_v9 = vmul.f32 %v1984_v53, %v1982_v5 }
 0x419   :  { %v1988_v8 = vpop.eup %1987 }
 0x41a   :  { %v878_v10 = vmul.f32 %v1988_v8, %v1986_v7 }
 0x41c   :  { %v1782_v0 = vpack.c.bf16 %v878_v10, %v877_v9 }
 0x41e   :  { %1806 = vst [vmem:[%s3032_s2 + $0x18] sm:$0xff] %v1782_v0   ;;  %941 = vmatmul.mubr.bf16.vlgmr.msra.gmra.mxu0 %v1782_v0  ;;  %984 = vmatmul.mubr.bf16.vlgmr.msra.gmra.mxu1 %v1782_v0 }
 0x41f   :  { %1080 = vmatpush1.bf16.msra.mxu0 %v2639_v61  ;;  %1123 = vmatpush1.bf16.msra.mxu1 %v2645_v11 }
 0x420   :  { %1081 = vmatprep.subr.bf16.mxu0 %v2651_v6  ;;  %1124 = vmatprep.subr.bf16.mxu1 %v2657_v12 }
 0x421   :  { %1111 = vmatprep.mubr.bf16.mxu0 %v2149_v1  ;;  %1154 = vmatprep.mubr.bf16.mxu1 %v2149_v1 }
 0x423   :  { %1082 = vmatpush1.bf16.msra.mxu0 %v2665_v13  ;;  %1125 = vmatpush1.bf16.msra.mxu1 %v2671_v14 }
 0x424   :  { %1083 = vmatprep.subr.bf16.mxu0 %v2677_v15  ;;  %1126 = vmatprep.subr.bf16.mxu1 %v2683_v16 }
 0x427   :  { %1084 = vmatpush1.bf16.msra.mxu0 %v2689_v17  ;;  %1127 = vmatpush1.bf16.msra.mxu1 %v2695_v18 }
 0x428   :  { %1085 = vmatprep.subr.bf16.mxu0 %v2701_v19  ;;  %1128 = vmatprep.subr.bf16.mxu1 %v2707_v20 }
 0x42b   :  { %1086 = vmatpush1.bf16.msra.mxu0 %v2713_v21  ;;  %1129 = vmatpush1.bf16.msra.mxu1 %v2719_v22 }
 0x42c   :  { %1087 = vmatprep.subr.bf16.mxu0 %v2725_v59  ;;  %1130 = vmatprep.subr.bf16.mxu1 %v2731_v36 }
 0x42f   :  { %1088 = vmatpush1.bf16.msra.mxu0 %v2737_v38  ;;  %1131 = vmatpush1.bf16.msra.mxu1 %v2300_v23  ;;  %v2758_v23 = vld [vmem:[%s3030_s1 + $0x24] ss:$16 sps:$4 sm:$0xff]  }
 0x430   :  { %1089 = vmatprep.subr.bf16.mxu0 %v2744_v40  ;;  %1132 = vmatprep.subr.bf16.mxu1 %v2306_v24  ;;  %v2771_v24 = vld [vmem:[%s3030_s1 + $0xe4] ss:$16 sps:$4 sm:$0xff]  }
 0x433   :  { %1090 = vmatpush1.bf16.msra.mxu0 %v2751_v41  ;;  %1133 = vmatpush1.bf16.msra.mxu1 %v2324_v27 }
 0x434   :  { %1091 = vmatprep.subr.bf16.mxu0 %v2758_v23  ;;  %1134 = vmatprep.subr.bf16.mxu1 %v2330_v28  ;;  %v1677_v28 = vld [vmem:[%s3031_s0 + $0x108] sm:$0xff] }
 0x437   :  { %1092 = vmatpush1.bf16.msra.mxu0 %v2312_v25  ;;  %1135 = vmatpush1.bf16.msra.mxu1 %v2343_v30  ;;  %v2777_v25 = vld [vmem:[%s3030_s1 + $0xec] ss:$16 sps:$4 sm:$0xff]  }
 0x438   :  { %1093 = vmatprep.subr.bf16.mxu0 %v2318_v26  ;;  %1136 = vmatprep.subr.bf16.mxu1 %v2349_v31  ;;  %v1676_v26 = vld [vmem:[%s3031_s0 + $0x100] sm:$0xff] }
 0x43b   :  { %1094 = vmatpush1.bf16.msra.mxu0 %v2336_v29  ;;  %1137 = vmatpush1.bf16.msra.mxu1 %v2356_v32  ;;  %v1680_v32 = vld [vmem:[%s3031_s0 + $0x120] sm:$0xff] }
 0x43c   :  { %1250 = vmatprep.subr.bf16.mxu0 %v2771_v24  ;;  %1293 = vmatprep.subr.bf16.mxu1 %v2777_v25 }
 0x4de   :  { %v942_v27 = vpop.f32.mrf.mxu0  ;;  %v985_v30 = vpop.f32.mrf.mxu1 }
 0x4df   :  { %v994_v29 = vadd.f32 %v1676_v26, %v942_v27  ;;  %v996_v62 = vadd.f32 %v1678_v57, %v985_v30 }
 0x4e0   :  { %v944_v31 = vpop.f32.mrf.mxu0  ;;  %v987_v45 = vpop.f32.mrf.mxu1 }
 0x4e1   :  { %v1684_v37 = vmul.f32 -1.442695, %v994_v29  ;;  %v995_v42 = vadd.f32 %v1677_v28, %v944_v31  ;;  %v997_v51 = vadd.f32 %v1679_v55, %v987_v45 }
 0x4e2   :  { %v946_v39 = vpop.f32.mrf.mxu0  ;;  %v989_v52 = vpop.f32.mrf.mxu1 }
 0x4e3   :  { %1989 = vpow2.f32 %v1684_v37  ;;  %v1686_v44 = vmul.f32 -1.442695, %v995_v42  ;;  %v998_v46 = vadd.f32 %v1680_v32, %v946_v39  ;;  %v1688_v33 = vmul.f32 -1.442695, %v997_v51  ;;  %v2858_v51 = vld [vmem:[%s3030_s1 + $0x2c] ss:$16 sps:$4 sm:$0xff]  }
 0x4e4   :  { %v948_v47 = vpop.f32.mrf.mxu0  ;;  %v991_v60 = vpop.f32.mrf.mxu1  ;;  %v1000_v7 = vadd.f32 %v1682_v35, %v989_v52  ;;  %v2894_v35 = vld [vmem:[%s3030_s1 + $0x8] ss:$16 sps:$4 sm:$0xff]  }
 0x4e5   :  { %1991 = vpow2.f32 %v1686_v44  ;;  %v1685_v48 = vmul.f32 -1.442695, %v998_v46  ;;  %v999_v49 = vadd.f32 %v1681_v43, %v948_v47  ;;  %v1001_v50 = vadd.f32 %v1683_v58, %v991_v60  ;;  %v2844_v58 = vld [vmem:[%s3030_s1 + $0x4c] ss:$16 sps:$4 sm:$0xff]   ;;  %v2851_v60 = vld [vmem:[%s3030_s1 + $0x48] ss:$16 sps:$4 sm:$0xff]  }
 0x4e7   :  { %1993 = vpow2.f32 %v1685_v48  ;;  %v1687_v54 = vmul.f32 -1.442695, %v999_v49  ;;  %v1689_v3 = vmul.f32 -1.442695, %v1001_v50  ;;  %v2870_v50 = vld [vmem:[%s3030_s1 + $0x28] ss:$16 sps:$4 sm:$0xff]  }
 0x4e9   :  { %1995 = vpow2.f32 %v1687_v54 }
 0x4ea   :  { %1997 = vtanh.f32 %v996_v62  ;;  %v2864_v62 = vld [vmem:[%s3030_s1 + $0x20] ss:$16 sps:$4 sm:$0xff]  }
 0x4f0   :  { %v1990_v63 = vpop.eup %1989 }
 0x4f1   :  { %v1008_v56 = vadd.f32 1.0, %v1990_v63  ;;  %v2876_v63 = vld [vmem:[%s3030_s1 + $0x4] ss:$16 sps:$4 sm:$0xff]  }
 0x4f2   :  { %v1992_v2 = vpop.eup %1991 }
 0x4f3   :  { %1999 = vrcp.f32 %v1008_v56  ;;  %v1020_v5 = vadd.f32 1.0, %v1992_v2  ;;  %v2888_v56 = vld [vmem:[%s3030_s1] ss:$16 sps:$4 sm:$0xff]  }
 0x4f4   :  { %v1994_v53 = vpop.eup %1993  ;;  %2001 = vpow2.f32 %v1688_v33  ;;  %v2882_v33 = vld [vmem:[%s3030_s1 + $0xc] ss:$16 sps:$4 sm:$0xff]   ;;  %v1694_v2 = vld [vmem:[%s3031_s0 + $0x140] sm:$0xff] }
 0x4f5   :  { %2003 = vrcp.f32 %v1020_v5  ;;  %v1009_v8 = vadd.f32 1.0, %v1994_v53  ;;  %v1695_v5 = vld [vmem:[%s3031_s0 + $0x148] sm:$0xff] }
 0x4f6   :  { %v1996_v9 = vpop.eup %1995  ;;  %2005 = vpow2.f32 %v1689_v3 }
 0x4f7   :  { %2007 = vrcp.f32 %v1009_v8  ;;  %v1021_v10 = vadd.f32 1.0, %v1996_v9  ;;  %v1998_v0 = vpop.eup %1997  ;;  %v1698_v9 = vld [vmem:[%s3031_s0 + $0x160] sm:$0xff] }
 0x4f8   :  { %2009 = vtanh.f32 %v1000_v7 }
 0x4f9   :  { %2011 = vrcp.f32 %v1021_v10 }
 0x500   :  { %v2000_v26 = vpop.eup %1999 }
 0x501   :  { %v2002_v27 = vpop.eup %2001  ;;  %v1042_v30 = vmul.f32 %v2000_v26, %v1998_v0 }
 0x502   :  { %v2004_v28 = vpop.eup %2003  ;;  %v1034_v37 = vadd.f32 1.0, %v2002_v27 }
 0x503   :  { %v2006_v29 = vpop.eup %2005  ;;  %v1040_v31 = vmul.f32 %v2004_v28, %v2626_v34 }
 0x504   :  { %v2008_v32 = vpop.eup %2007  ;;  %v1035_v44 = vadd.f32 1.0, %v2006_v29  ;;  %2013 = vrcp.f32 %v1034_v37 }
 0x505   :  { %v2010_v42 = vpop.eup %2009  ;;  %v2805_v39 = vadd.f32 %v1042_v30, %v1040_v31 }
 0x506   :  { %v2012_v43 = vpop.eup %2011  ;;  %v1043_v45 = vmul.f32 %v2010_v42, %v2008_v32  ;;  %v1697_v42 = vld [vmem:[%s3031_s0 + $0x158] sm:$0xff] }
 0x507   :  { %v1041_v46 = vmul.f32 %v2012_v43, %v2629_v4  ;;  %2015 = vtanh.f32 %v2805_v39  ;;  %v2837_v4 = vld [vmem:[%s3030_s1 + $0x68] ss:$16 sps:$4 sm:$0xff]   ;;  %v1696_v43 = vld [vmem:[%s3031_s0 + $0x150] sm:$0xff] }
 0x508   :  { %2017 = vrcp.f32 %v1035_v44  ;;  %v1701_v44 = vld [vmem:[%s3031_s0 + $0x178] sm:$0xff] }
 0x509   :  { %v2808_v47 = vadd.f32 %v1043_v45, %v1041_v46 }
 0x50b   :  { %2019 = vtanh.f32 %v2808_v47 }
 0x511   :  { %v2014_v48 = vpop.eup %2013 }
 0x514   :  { %v2016_v34 = vpop.eup %2015 }
 0x515   :  { %v2018_v49 = vpop.eup %2017  ;;  %v1048_v54 = vmul.f32 %v2016_v34, %v2014_v48 }
 0x518   :  { %v2020_v52 = vpop.eup %2019 }
 0x519   :  { %v1049_v55 = vmul.f32 %v2020_v52, %v2018_v49 }
 0x51b   :  { %v1787_v57 = vpack.c.bf16 %v1049_v55, %v1048_v54  ;;  %v1700_v55 = vld [vmem:[%s3031_s0 + $0x170] sm:$0xff] }
 0x51d   :  { %1807 = vst [vmem:[%s3032_s2 + $0x20] sm:$0xff] %v1787_v57   ;;  %1112 = vmatmul.mubr.bf16.vlgmr.msra.gmra.mxu0 %v1787_v57  ;;  %1155 = vmatmul.mubr.bf16.vlgmr.msra.gmra.mxu1 %v1787_v57 }
 0x51e   :  { %1251 = vmatpush1.bf16.msra.mxu0 %v2639_v61  ;;  %1294 = vmatpush1.bf16.msra.mxu1 %v2645_v11 }
 0x51f   :  { %1252 = vmatprep.subr.bf16.mxu0 %v2651_v6  ;;  %1295 = vmatprep.subr.bf16.mxu1 %v2657_v12 }
 0x520   :  { %1282 = vmatprep.mubr.bf16.mxu0 %v2149_v1  ;;  %1325 = vmatprep.mubr.bf16.mxu1 %v2149_v1 }
 0x522   :  { %1253 = vmatpush1.bf16.msra.mxu0 %v2665_v13  ;;  %1296 = vmatpush1.bf16.msra.mxu1 %v2671_v14 }
 0x523   :  { %1254 = vmatprep.subr.bf16.mxu0 %v2677_v15  ;;  %1297 = vmatprep.subr.bf16.mxu1 %v2683_v16 }
 0x526   :  { %1255 = vmatpush1.bf16.msra.mxu0 %v2689_v17  ;;  %1298 = vmatpush1.bf16.msra.mxu1 %v2695_v18 }
 0x527   :  { %1256 = vmatprep.subr.bf16.mxu0 %v2701_v19  ;;  %1299 = vmatprep.subr.bf16.mxu1 %v2707_v20 }
 0x52a   :  { %1257 = vmatpush1.bf16.msra.mxu0 %v2713_v21  ;;  %1300 = vmatpush1.bf16.msra.mxu1 %v2719_v22 }
 0x52b   :  { %1258 = vmatprep.subr.bf16.mxu0 %v2725_v59  ;;  %1301 = vmatprep.subr.bf16.mxu1 %v2731_v36 }
 0x52e   :  { %1259 = vmatpush1.bf16.msra.mxu0 %v2737_v38  ;;  %1302 = vmatpush1.bf16.msra.mxu1 %v2837_v4 }
 0x52f   :  { %1260 = vmatprep.subr.bf16.mxu0 %v2744_v40  ;;  %1303 = vmatprep.subr.bf16.mxu1 %v2844_v58 }
 0x532   :  { %1261 = vmatpush1.bf16.msra.mxu0 %v2751_v41  ;;  %1304 = vmatpush1.bf16.msra.mxu1 %v2851_v60 }
 0x533   :  { %1262 = vmatprep.subr.bf16.mxu0 %v2758_v23  ;;  %1305 = vmatprep.subr.bf16.mxu1 %v2858_v51 }
 0x536   :  { %1263 = vmatpush1.bf16.msra.mxu0 %v2864_v62  ;;  %1306 = vmatpush1.bf16.msra.mxu1 %v2870_v50 }
 0x537   :  { %1264 = vmatprep.subr.bf16.mxu0 %v2876_v63  ;;  %1307 = vmatprep.subr.bf16.mxu1 %v2882_v33 }
 0x53a   :  { %1265 = vmatpush1.bf16.msra.mxu0 %v2888_v56  ;;  %1308 = vmatpush1.bf16.msra.mxu1 %v2894_v35 }
 0x53b   :  { %1421 = vmatprep.subr.bf16.mxu0 %v2771_v24  ;;  %1464 = vmatprep.subr.bf16.mxu1 %v2777_v25  ;;  %v1699_v25 = vld [vmem:[%s3031_s0 + $0x168] sm:$0xff] }
 0x5dd   :  { %v1113_v3 = vpop.f32.mrf.mxu0  ;;  %v1156_v7 = vpop.f32.mrf.mxu1 }
 0x5de   :  { %v1165_v53 = vadd.f32 %v1694_v2, %v1113_v3  ;;  %v1167_v48 = vadd.f32 %v1696_v43, %v1156_v7 }
 0x5df   :  { %v1115_v8 = vpop.f32.mrf.mxu0  ;;  %v1158_v27 = vpop.f32.mrf.mxu1 }
 0x5e0   :  { %v1702_v10 = vmul.f32 -1.442695, %v1165_v53  ;;  %v1166_v24 = vadd.f32 %v1695_v5, %v1115_v8  ;;  %v1168_v46 = vadd.f32 %v1697_v42, %v1158_v27 }
 0x5e1   :  { %v1117_v0 = vpop.f32.mrf.mxu0  ;;  %v1160_v32 = vpop.f32.mrf.mxu1 }
 0x5e2   :  { %2021 = vpow2.f32 %v1702_v10  ;;  %v1704_v26 = vmul.f32 -1.442695, %v1166_v24  ;;  %v1169_v28 = vadd.f32 %v1698_v9, %v1117_v0  ;;  %v1706_v52 = vmul.f32 -1.442695, %v1168_v46 }
 0x5e3   :  { %v1119_v29 = vpop.f32.mrf.mxu0  ;;  %v1162_v45 = vpop.f32.mrf.mxu1  ;;  %v1171_v53 = vadd.f32 %v1700_v55, %v1160_v32 }
 0x5e4   :  { %2023 = vpow2.f32 %v1704_v26  ;;  %v1703_v30 = vmul.f32 -1.442695, %v1169_v28  ;;  %v1170_v31 = vadd.f32 %v1699_v25, %v1119_v29  ;;  %v1172_v34 = vadd.f32 %v1701_v44, %v1162_v45 }
 0x5e6   :  { %2025 = vpow2.f32 %v1703_v30  ;;  %v1705_v37 = vmul.f32 -1.442695, %v1170_v31  ;;  %v1707_v2 = vmul.f32 -1.442695, %v1172_v34 }
 0x5e8   :  { %2027 = vpow2.f32 %v1705_v37 }
 0x5e9   :  { %2029 = vtanh.f32 %v1167_v48 }
 0x5ef   :  { %v2022_v49 = vpop.eup %2021 }
 0x5f0   :  { %v1179_v54 = vadd.f32 1.0, %v2022_v49 }
 0x5f1   :  { %v2024_v57 = vpop.eup %2023 }
 0x5f2   :  { %2031 = vrcp.f32 %v1179_v54  ;;  %v1191_v3 = vadd.f32 1.0, %v2024_v57 }
 0x5f3   :  { %v2026_v5 = vpop.eup %2025  ;;  %2033 = vpow2.f32 %v1706_v52 }
 0x5f4   :  { %2035 = vrcp.f32 %v1191_v3  ;;  %v1180_v8 = vadd.f32 1.0, %v2026_v5 }
 0x5f5   :  { %v2028_v9 = vpop.eup %2027  ;;  %2037 = vpow2.f32 %v1707_v2 }
 0x5f6   :  { %2039 = vrcp.f32 %v1180_v8  ;;  %v1192_v7 = vadd.f32 1.0, %v2028_v9  ;;  %v2030_v10 = vpop.eup %2029 }
 0x5f7   :  { %2041 = vtanh.f32 %v1171_v53 }
 0x5f8   :  { %2043 = vrcp.f32 %v1192_v7 }
 0x5ff   :  { %v2032_v24 = vpop.eup %2031 }
 0x600   :  { %v2034_v0 = vpop.eup %2033  ;;  %v1213_v27 = vmul.f32 %v2032_v24, %v2030_v10 }
 0x601   :  { %v2036_v25 = vpop.eup %2035  ;;  %v1205_v30 = vadd.f32 1.0, %v2034_v0 }
 0x602   :  { %v2038_v26 = vpop.eup %2037  ;;  %v1211_v28 = vmul.f32 %v2036_v25, %v2805_v39 }
 0x603   :  { %v2040_v29 = vpop.eup %2039  ;;  %v1206_v42 = vadd.f32 1.0, %v2038_v26  ;;  %2045 = vrcp.f32 %v1205_v30 }
 0x604   :  { %v2042_v31 = vpop.eup %2041  ;;  %v2924_v32 = vadd.f32 %v1213_v27, %v1211_v28 }
 0x605   :  { %v2044_v37 = vpop.eup %2043  ;;  %v1214_v43 = vmul.f32 %v2042_v31, %v2040_v29 }
 0x606   :  { %v1212_v44 = vmul.f32 %v2044_v37, %v2808_v47  ;;  %2047 = vtanh.f32 %v2924_v32  ;;  %v1719_v47 = vld [vmem:[%s3031_s0 + $0x1b8] sm:$0xff] }
 0x607   :  { %2049 = vrcp.f32 %v1206_v42 }
 0x608   :  { %v2927_v45 = vadd.f32 %v1214_v43, %v1212_v44 }
 0x60a   :  { %2051 = vtanh.f32 %v2927_v45 }
 0x610   :  { %v2046_v46 = vpop.eup %2045 }
 0x613   :  { %v2048_v39 = vpop.eup %2047 }
 0x614   :  { %v2050_v48 = vpop.eup %2049  ;;  %v1219_v49 = vmul.f32 %v2048_v39, %v2046_v46 }
 0x617   :  { %v2052_v34 = vpop.eup %2051 }
 0x618   :  { %v1220_v52 = vmul.f32 %v2052_v34, %v2050_v48 }
 0x61a   :  { %v1792_v54 = vpack.c.bf16 %v1220_v52, %v1219_v49 }
 0x61c   :  { %1808 = vst [vmem:[%s3032_s2 + $0x28] sm:$0xff] %v1792_v54   ;;  %1283 = vmatmul.mubr.bf16.vlgmr.msra.gmra.mxu0 %v1792_v54  ;;  %1326 = vmatmul.mubr.bf16.vlgmr.msra.gmra.mxu1 %v1792_v54  ;;  %v1731_v54 = vld [vmem:[%s3031_s0 + $0x1c8] sm:$0xff] }
 0x61d   :  { %1422 = vmatpush1.bf16.msra.mxu0 %v2639_v61  ;;  %1465 = vmatpush1.bf16.msra.mxu1 %v2645_v11  ;;  %v1713_v11 = vld [vmem:[%s3031_s0 + $0x188] sm:$0xff] }
 0x61e   :  { %1423 = vmatprep.subr.bf16.mxu0 %v2651_v6  ;;  %1466 = vmatprep.subr.bf16.mxu1 %v2657_v12 }
 0x61f   :  { %1453 = vmatprep.mubr.bf16.mxu0 %v2149_v1  ;;  %1496 = vmatprep.mubr.bf16.mxu1 %v2149_v1  ;;  %v1712_v1 = vld [vmem:[%s3031_s0 + $0x180] sm:$0xff] }
 0x621   :  { %1424 = vmatpush1.bf16.msra.mxu0 %v2665_v13  ;;  %1467 = vmatpush1.bf16.msra.mxu1 %v2671_v14  ;;  %v1716_v14 = vld [vmem:[%s3031_s0 + $0x1a0] sm:$0xff] }
 0x622   :  { %1425 = vmatprep.subr.bf16.mxu0 %v2677_v15  ;;  %1468 = vmatprep.subr.bf16.mxu1 %v2683_v16 }
 0x625   :  { %1426 = vmatpush1.bf16.msra.mxu0 %v2689_v17  ;;  %1469 = vmatpush1.bf16.msra.mxu1 %v2695_v18  ;;  %v1717_v18 = vld [vmem:[%s3031_s0 + $0x1a8] sm:$0xff] }
 0x626   :  { %1427 = vmatprep.subr.bf16.mxu0 %v2701_v19  ;;  %1470 = vmatprep.subr.bf16.mxu1 %v2707_v20 }
 0x629   :  { %1428 = vmatpush1.bf16.msra.mxu0 %v2713_v21  ;;  %1471 = vmatpush1.bf16.msra.mxu1 %v2719_v22 }
 0x62a   :  { %1429 = vmatprep.subr.bf16.mxu0 %v2725_v59  ;;  %1472 = vmatprep.subr.bf16.mxu1 %v2731_v36 }
 0x62d   :  { %1430 = vmatpush1.bf16.msra.mxu0 %v2737_v38  ;;  %1473 = vmatpush1.bf16.msra.mxu1 %v2837_v4 }
 0x62e   :  { %1431 = vmatprep.subr.bf16.mxu0 %v2744_v40  ;;  %1474 = vmatprep.subr.bf16.mxu1 %v2844_v58 }
 0x631   :  { %1432 = vmatpush1.bf16.msra.mxu0 %v2751_v41  ;;  %1475 = vmatpush1.bf16.msra.mxu1 %v2851_v60  ;;  %v1715_v41 = vld [vmem:[%s3031_s0 + $0x198] sm:$0xff] }
 0x632   :  { %1433 = vmatprep.subr.bf16.mxu0 %v2758_v23  ;;  %1476 = vmatprep.subr.bf16.mxu1 %v2858_v51  ;;  %v1714_v23 = vld [vmem:[%s3031_s0 + $0x190] sm:$0xff] }
 0x635   :  { %1434 = vmatpush1.bf16.msra.mxu0 %v2864_v62  ;;  %1477 = vmatpush1.bf16.msra.mxu1 %v2870_v50 }
 0x636   :  { %1435 = vmatprep.subr.bf16.mxu0 %v2876_v63  ;;  %1478 = vmatprep.subr.bf16.mxu1 %v2882_v33  ;;  %v1718_v33 = vld [vmem:[%s3031_s0 + $0x1b0] sm:$0xff] }
 0x639   :  { %1436 = vmatpush1.bf16.msra.mxu0 %v2888_v56  ;;  %1479 = vmatpush1.bf16.msra.mxu1 %v2894_v35 }
 0x6dc   :  { %v1284_v61 = vpop.f32.mrf.mxu0  ;;  %v1327_v12 = vpop.f32.mrf.mxu1 }
 0x6dd   :  { %v1336_v6 = vadd.f32 %v1712_v1, %v1284_v61  ;;  %v1338_v60 = vadd.f32 %v1714_v23, %v1327_v12 }
 0x6de   :  { %v1286_v13 = vpop.f32.mrf.mxu0  ;;  %v1329_v20 = vpop.f32.mrf.mxu1 }
 0x6df   :  { %v1720_v15 = vmul.f32 -1.442695, %v1336_v6  ;;  %v1337_v16 = vadd.f32 %v1713_v11, %v1286_v13  ;;  %v1339_v58 = vadd.f32 %v1715_v41, %v1329_v20  ;;  %v1734_v6 = vld [vmem:[%s3031_s0 + $0x1e0] sm:$0xff] }
 0x6e0   :  { %v1288_v17 = vpop.f32.mrf.mxu0  ;;  %v1331_v38 = vpop.f32.mrf.mxu1 }
 0x6e1   :  { %2053 = vpow2.f32 %v1720_v15  ;;  %v1722_v19 = vmul.f32 -1.442695, %v1337_v16  ;;  %v1340_v21 = vadd.f32 %v1716_v14, %v1288_v17  ;;  %v1724_v50 = vmul.f32 -1.442695, %v1339_v58  ;;  %v1735_v15 = vld [vmem:[%s3031_s0 + $0x1e8] sm:$0xff] }
 0x6e2   :  { %v1290_v22 = vpop.f32.mrf.mxu0  ;;  %v1333_v4 = vpop.f32.mrf.mxu1  ;;  %v1342_v2 = vadd.f32 %v1718_v33, %v1331_v38  ;;  %v1732_v38 = vld [vmem:[%s3031_s0 + $0x1d0] sm:$0xff] }
 0x6e3   :  { %2055 = vpow2.f32 %v1722_v19  ;;  %v1721_v59 = vmul.f32 -1.442695, %v1340_v21  ;;  %v1341_v36 = vadd.f32 %v1717_v18, %v1290_v22  ;;  %v1343_v51 = vadd.f32 %v1719_v47, %v1333_v4 }
 0x6e5   :  { %2057 = vpow2.f32 %v1721_v59  ;;  %v1723_v40 = vmul.f32 -1.442695, %v1341_v36  ;;  %v1725_v35 = vmul.f32 -1.442695, %v1343_v51  ;;  %v1733_v36 = vld [vmem:[%s3031_s0 + $0x1d8] sm:$0xff] }
 0x6e7   :  { %2059 = vpow2.f32 %v1723_v40  ;;  %v1737_v40 = vld [vmem:[%s3031_s0 + $0x1f8] sm:$0xff] }
 0x6e8   :  { %2061 = vtanh.f32 %v1338_v60 }
 0x6ee   :  { %v2054_v62 = vpop.eup %2053 }
 0x6ef   :  { %v1350_v63 = vadd.f32 1.0, %v2054_v62  ;;  %v1736_v62 = vld [vmem:[%s3031_s0 + $0x1f0] sm:$0xff] }
 0x6f0   :  { %v2056_v56 = vpop.eup %2055 }
 0x6f1   :  { %2063 = vrcp.f32 %v1350_v63  ;;  %v1362_v55 = vadd.f32 1.0, %v2056_v56 }
 0x6f2   :  { %v2058_v57 = vpop.eup %2057  ;;  %2065 = vpow2.f32 %v1724_v50 }
 0x6f3   :  { %2067 = vrcp.f32 %v1362_v55  ;;  %v1351_v3 = vadd.f32 1.0, %v2058_v57 }
 0x6f4   :  { %v2060_v5 = vpop.eup %2059  ;;  %2069 = vpow2.f32 %v1725_v35 }
 0x6f5   :  { %2071 = vrcp.f32 %v1351_v3  ;;  %v1363_v53 = vadd.f32 1.0, %v2060_v5  ;;  %v2062_v8 = vpop.eup %2061 }
 0x6f6   :  { %2073 = vtanh.f32 %v1342_v2 }
 0x6f7   :  { %2075 = vrcp.f32 %v1363_v53 }
 0x6fe   :  { %v2064_v9 = vpop.eup %2063 }
 0x6ff   :  { %v2066_v7 = vpop.eup %2065  ;;  %v1384_v0 = vmul.f32 %v2064_v9, %v2062_v8 }
 0x700   :  { %v2068_v10 = vpop.eup %2067  ;;  %v1376_v27 = vadd.f32 1.0, %v2066_v7 }
 0x701   :  { %v2070_v24 = vpop.eup %2069  ;;  %v1382_v25 = vmul.f32 %v2068_v10, %v2924_v32 }
 0x702   :  { %v2072_v26 = vpop.eup %2071  ;;  %v1377_v31 = vadd.f32 1.0, %v2070_v24  ;;  %2077 = vrcp.f32 %v1376_v27 }
 0x703   :  { %v2074_v28 = vpop.eup %2073  ;;  %v2991_v29 = vadd.f32 %v1384_v0, %v1382_v25 }
 0x704   :  { %v2076_v30 = vpop.eup %2075  ;;  %v1385_v37 = vmul.f32 %v2074_v28, %v2072_v26 }
 0x705   :  { %v1383_v42 = vmul.f32 %v2076_v30, %v2927_v45  ;;  %2079 = vtanh.f32 %v2991_v29  ;;  %v1730_v45 = vld [vmem:[%s3031_s0 + $0x1c0] sm:$0xff] }
 0x706   :  { %2081 = vrcp.f32 %v1377_v31 }
 0x707   :  { %v2994_v43 = vadd.f32 %v1385_v37, %v1383_v42 }
 0x709   :  { %2083 = vtanh.f32 %v2994_v43 }
 0x70f   :  { %v2078_v44 = vpop.eup %2077 }
 0x712   :  { %v2080_v32 = vpop.eup %2079 }
 0x713   :  { %v2082_v46 = vpop.eup %2081  ;;  %v1390_v48 = vmul.f32 %v2080_v32, %v2078_v44 }
 0x716   :  { %v2084_v39 = vpop.eup %2083 }
 0x717   :  { %v1391_v34 = vmul.f32 %v2084_v39, %v2082_v46 }
 0x719   :  { %v1797_v49 = vpack.c.bf16 %v1391_v34, %v1390_v48 }
 0x71b   :  { %1809 = vst [vmem:[%s3032_s2 + $0x30] sm:$0xff] %v1797_v49   ;;  %1454 = vmatmul.mubr.bf16.vlgmr.msra.gmra.mxu0 %v1797_v49  ;;  %1497 = vmatmul.mubr.bf16.vlgmr.msra.gmra.mxu1 %v1797_v49 }
 0x7db   :  { %v1455_v52 = vpop.f32.mrf.mxu0  ;;  %v1498_v61 = vpop.f32.mrf.mxu1 }
 0x7dc   :  { %v1507_v1 = vadd.f32 %v1730_v45, %v1455_v52  ;;  %v1509_v47 = vadd.f32 %v1732_v38, %v1498_v61 }
 0x7dd   :  { %v1457_v11 = vpop.f32.mrf.mxu0  ;;  %v1500_v17 = vpop.f32.mrf.mxu1 }
 0x7de   :  { %v1738_v12 = vmul.f32 -1.442695, %v1507_v1  ;;  %v1508_v13 = vadd.f32 %v1731_v54, %v1457_v11  ;;  %v1510_v23 = vadd.f32 %v1733_v36, %v1500_v17 }
 0x7df   :  { %v1459_v14 = vpop.f32.mrf.mxu0  ;;  %v1502_v22 = vpop.f32.mrf.mxu1 }
 0x7e0   :  { %2085 = vpow2.f32 %v1738_v12  ;;  %v1740_v16 = vmul.f32 -1.442695, %v1508_v13  ;;  %v1511_v18 = vadd.f32 %v1734_v6, %v1459_v14  ;;  %v1742_v60 = vmul.f32 -1.442695, %v1510_v23 }
 0x7e1   :  { %v1461_v19 = vpop.f32.mrf.mxu0  ;;  %v1504_v41 = vpop.f32.mrf.mxu1  ;;  %v1513_v35 = vadd.f32 %v1736_v62, %v1502_v22 }
 0x7e2   :  { %2087 = vpow2.f32 %v1740_v16  ;;  %v1739_v20 = vmul.f32 -1.442695, %v1511_v18  ;;  %v1512_v21 = vadd.f32 %v1735_v15, %v1461_v19  ;;  %v1514_v4 = vadd.f32 %v1737_v40, %v1504_v41 }
 0x7e4   :  { %2089 = vpow2.f32 %v1739_v20  ;;  %v1741_v59 = vmul.f32 -1.442695, %v1512_v21  ;;  %v1743_v63 = vmul.f32 -1.442695, %v1514_v4 }
 0x7e6   :  { %2091 = vpow2.f32 %v1741_v59 }
 0x7e7   :  { %2093 = vtanh.f32 %v1509_v47 }
 0x7ed   :  { %v2086_v58 = vpop.eup %2085 }
 0x7ee   :  { %v1521_v51 = vadd.f32 1.0, %v2086_v58 }
 0x7ef   :  { %v2088_v50 = vpop.eup %2087 }
 0x7f0   :  { %2095 = vrcp.f32 %v1521_v51  ;;  %v1533_v33 = vadd.f32 1.0, %v2088_v50 }
 0x7f1   :  { %v2090_v56 = vpop.eup %2089  ;;  %2097 = vpow2.f32 %v1742_v60 }
 0x7f2   :  { %2099 = vrcp.f32 %v1533_v33  ;;  %v1522_v55 = vadd.f32 1.0, %v2090_v56 }
 0x7f3   :  { %v2092_v57 = vpop.eup %2091  ;;  %2101 = vpow2.f32 %v1743_v63 }
 0x7f4   :  { %2103 = vrcp.f32 %v1522_v55  ;;  %v1534_v2 = vadd.f32 1.0, %v2092_v57  ;;  %v2094_v3 = vpop.eup %2093 }
 0x7f5   :  { %2105 = vtanh.f32 %v1513_v35 }
 0x7f6   :  { %2107 = vrcp.f32 %v1534_v2 }
 0x7fd   :  { %v2096_v5 = vpop.eup %2095 }
 0x7fe   :  { %v2098_v53 = vpop.eup %2097  ;;  %v1555_v7 = vmul.f32 %v2096_v5, %v2094_v3 }
 0x7ff   :  { %v2100_v8 = vpop.eup %2099  ;;  %v1547_v0 = vadd.f32 1.0, %v2098_v53 }
 0x800   :  { %v2102_v9 = vpop.eup %2101  ;;  %v1553_v10 = vmul.f32 %v2100_v8, %v2991_v29 }
 0x801   :  { %v2104_v24 = vpop.eup %2103  ;;  %v1548_v28 = vadd.f32 1.0, %v2102_v9  ;;  %2109 = vrcp.f32 %v1547_v0 }
 0x802   :  { %v2106_v25 = vpop.eup %2105  ;;  %v1557_v26 = vadd.f32 %v1555_v7, %v1553_v10 }
 0x803   :  { %v2108_v27 = vpop.eup %2107  ;;  %v1556_v30 = vmul.f32 %v2106_v25, %v2104_v24 }
 0x804   :  { %v1554_v31 = vmul.f32 %v2108_v27, %v2994_v43  ;;  %2111 = vtanh.f32 %v1557_v26 }
 0x805   :  { %2113 = vrcp.f32 %v1548_v28 }
 0x806   :  { %v1558_v37 = vadd.f32 %v1556_v30, %v1554_v31 }
 0x808   :  { %2115 = vtanh.f32 %v1558_v37 }
 0x80e   :  { %v2110_v42 = vpop.eup %2109 }
 0x811   :  { %v2112_v44 = vpop.eup %2111 }
 0x812   :  { %v2114_v32 = vpop.eup %2113  ;;  %v1561_v39 = vmul.f32 %v2112_v44, %v2110_v42 }
 0x815   :  { %v2116_v46 = vpop.eup %2115 }
 0x816   :  { %v1562_v29 = vmul.f32 %v2116_v46, %v2114_v32 }
 0x818   :  { %v1802_v48 = vpack.c.bf16 %v1562_v29, %v1561_v39 }
 0x81a   :  { %1810 = vst [vmem:[%s3032_s2 + $0x38] sm:$0xff] %v1802_v48  }

</bundles_post_ra>
